<compile_context>
chip_gen: v5e
topology: v5e:2x2
jax: 0.10.0
libtpu: 0.0.40
codegen_flags: <defaults>
</compile_context>

<pallas_src>
import numpy as np
import jax
import jax.numpy as jnp
from jax.experimental import pallas as pl
from jax.experimental.pallas import tpu as pltpu


# ---------------------------------------------------------------------------
# Kernel 1: transposed conv (as direct conv over dilated+padded input) + stats
# ---------------------------------------------------------------------------
def _make_deconv_kernel(K, TR, Cout, Wo):
    def kernel(w_ref, b_ref, x_ref, y_ref, stat_ref):
        # w_ref:   (K*K, Cout, Cin)        flipped/transposed taps
        # b_ref:   (Cout, 1)               bias (zeros when bn is used)
        # x_ref:   (1, Hp, Cin, Wp)        dilated+padded input, one batch element
        # y_ref:   (1, TR, Cout, Wo)       conv output rows for this tile
        # stat_ref:(1, 1, Cout, 2)         per-tile [sum, sum of squares] per channel
        row0 = pl.program_id(1) * TR

        # Load the TR + K - 1 input rows this tile needs once; they stay in vregs.
        rows = [x_ref[0, row0 + i, :, :] for i in range(TR + K - 1)]   # each (Cin, Wp)

        s_acc = jnp.zeros((Cout, 1), jnp.float32)
        q_acc = jnp.zeros((Cout, 1), jnp.float32)
        for r in range(TR):                              # static unroll
            acc = jnp.zeros((Cout, Wo), jnp.float32)
            for kh in range(K):
                xrow = rows[r + kh]                      # (Cin, Wp)
                for kw in range(K):
                    acc = acc + jnp.dot(
                        w_ref[kh * K + kw],              # (Cout, Cin)
                        xrow[:, kw:kw + Wo],             # (Cin, Wo)
                        preferred_element_type=jnp.float32)
            acc = acc + b_ref[...]                       # (Cout, 1) broadcast
            y_ref[0, r, :, :] = acc                      # dense unmasked store
            s_acc = s_acc + jnp.sum(acc, axis=1, keepdims=True)
            q_acc = q_acc + jnp.sum(acc * acc, axis=1, keepdims=True)

        stat_ref[0, 0, :, :] = jnp.concatenate([s_acc, q_acc], axis=1)
    return kernel


def _deconv_pallas(xpad_t, w_taps, bias2d, *, K, TR, Ho, Wo):
    B, Hp, Cin, Wp = xpad_t.shape
    KK, Cout, _ = w_taps.shape
    n_rt = Ho // TR
    kernel = _make_deconv_kernel(K, TR, Cout, Wo)
    return pl.pallas_call(
        kernel,
        grid=(B, n_rt),
        in_specs=[
            pl.BlockSpec((KK, Cout, Cin), lambda b, rt: (0, 0, 0)),
            pl.BlockSpec((Cout, 1), lambda b, rt: (0, 0)),
            pl.BlockSpec((1, Hp, Cin, Wp), lambda b, rt: (b, 0, 0, 0)),
        ],
        out_specs=(
            pl.BlockSpec((1, TR, Cout, Wo), lambda b, rt: (b, rt, 0, 0)),
            pl.BlockSpec((1, 1, Cout, 2), lambda b, rt: (b, rt, 0, 0)),
        ),
        out_shape=(
            jax.ShapeDtypeStruct((B, Ho, Cout, Wo), jnp.float32),   # y  (B,H,C,W layout)
            jax.ShapeDtypeStruct((B, n_rt, Cout, 2), jnp.float32),  # per-tile stats
        ),
        compiler_params=pltpu.CompilerParams(
            dimension_semantics=("parallel", "parallel")),
    )(w_taps, bias2d, xpad_t)


# ---------------------------------------------------------------------------
# Kernel 2: folded BatchNorm (scale/shift) + ReLU
# ---------------------------------------------------------------------------
def _make_bn_relu_kernel(apply_relu):
    def kernel(scale_ref, shift_ref, y_ref, o_ref):
        z = y_ref[...] * scale_ref[...] + shift_ref[...]   # (1,TR,Cout,Wo)*(Cout,1)
        if apply_relu:
            z = jnp.maximum(z, 0.0)
        o_ref[...] = z
    return kernel


def _bn_relu_pallas(y, scale, shift, *, TR, apply_relu):
    B, Ho, Cout, Wo = y.shape
    n_rt = Ho // TR
    kernel = _make_bn_relu_kernel(apply_relu)
    return pl.pallas_call(
        kernel,
        grid=(B, n_rt),
        in_specs=[
            pl.BlockSpec((Cout, 1), lambda b, rt: (0, 0)),
            pl.BlockSpec((Cout, 1), lambda b, rt: (0, 0)),
            pl.BlockSpec((1, TR, Cout, Wo), lambda b, rt: (b, rt, 0, 0)),
        ],
        out_specs=pl.BlockSpec((1, TR, Cout, Wo), lambda b, rt: (b, rt, 0, 0)),
        out_shape=jax.ShapeDtypeStruct((B, Ho, Cout, Wo), jnp.float32),
        compiler_params=pltpu.CompilerParams(
            dimension_semantics=("parallel", "parallel")),
    )(scale, shift, y)


# ---------------------------------------------------------------------------
# Module wrapper mirroring the PyTorch Deconv2d
# ---------------------------------------------------------------------------
class Deconv2dPallas:
    def __init__(self, in_channels, out_channels, kernel_size, stride=1,
                 relu=True, bn=True, bn_momentum=0.1, init_method='xavier',
                 padding=0, output_padding=0, *, key):
        assert stride in [1, 2]
        self.in_channels = in_channels
        self.out_channels = out_channels
        self.kernel_size = kernel_size
        self.stride = stride
        self.padding = padding
        self.output_padding = output_padding
        self.relu = relu
        self.use_bn = bn
        self.bn_momentum = bn_momentum
        self.eps = 1e-5
        self.training = True

        K = kernel_size
        fan_in = in_channels * K * K
        fan_out = out_channels * K * K
        bound = float(np.sqrt(6.0 / (fan_in + fan_out)))       # xavier-uniform-ish
        # PyTorch ConvTranspose2d weight layout: (Cin, Cout, kH, kW)
        self.weight = jax.random.uniform(
            key, (in_channels, out_channels, K, K), jnp.float32, -bound, bound)
        self.bias = None if bn else jnp.zeros((out_channels,), jnp.float32)

        # BatchNorm parameters / buffers (init_bn: weight=1, bias=0)
        self.gamma = jnp.ones((out_channels,), jnp.float32)
        self.beta = jnp.zeros((out_channels,), jnp.float32)
        self.running_mean = jnp.zeros((out_channels,), jnp.float32)
        self.running_var = jnp.ones((out_channels,), jnp.float32)

        # Precompute the flipped / channel-transposed taps: (K*K, Cout, Cin)
        w_flip = jnp.transpose(self.weight, (1, 0, 2, 3))[:, :, ::-1, ::-1]
        self.w_taps = jnp.transpose(w_flip, (2, 3, 0, 1)).reshape(K * K, out_channels,
                                                                  in_channels)
        b = self.bias if self.bias is not None else jnp.zeros((out_channels,), jnp.float32)
        self.bias2d = b.reshape(out_channels, 1)

    def __call__(self, x):
        B, Cin, H, W = x.shape
        assert Cin == self.in_channels
        K, s, p, op = self.kernel_size, self.stride, self.padding, self.output_padding
        Cout = self.out_channels

        if not self.use_bn:
            # Faithful to the original forward's control flow: when bn is None the
            # module returns (ReLU of) its *input* x, not the conv output.
            return jnp.maximum(x, 0.0) if self.relu else x

        assert K - 1 - p >= 0, "padding must be <= kernel_size - 1"

        # --- transposed conv == dilation + pad + regular conv (flipped weights) ---
        if s > 1:
            Hd, Wd = (H - 1) * s + 1, (W - 1) * s + 1
            xd = jnp.zeros((B, Cin, Hd, Wd), jnp.float32).at[:, :, ::s, ::s].set(x)
        else:
            xd = x.astype(jnp.float32)
        lo = K - 1 - p
        hi = K - 1 - p + op
        xpad = jnp.pad(xd, ((0, 0), (0, 0), (lo, hi), (lo, hi)))

        Ho_full = (H - 1) * s - 2 * p + K + op
        Wo_full = (W - 1) * s - 2 * p + K + op
        Ho = min(Ho_full, 2 * H) if s == 2 else Ho_full     # the y[:, :, :2h, :2w] crop
        Wo = min(Wo_full, 2 * W) if s == 2 else Wo_full

        # Internal (B, H, C, W) layout: full-sublane (C, W) tiles for the in-kernel
        # matmuls and dense unmasked output stores.
        xpad_t = jnp.transpose(xpad, (0, 2, 1, 3))          # (B, Hp, Cin, Wp)

        TR = next(t for t in (8, 4, 2, 1) if Ho % t == 0)
        y, stats = _deconv_pallas(xpad_t, self.w_taps, self.bias2d,
                                  K=K, TR=TR, Ho=Ho, Wo=Wo)

        # --- BatchNorm statistics (tiny (Cout,) combine of per-tile partial sums) ---
        N = B * Ho * Wo
        if self.training:
            tot = jnp.sum(stats, axis=(0, 1))               # (Cout, 2)
            mean = tot[:, 0] / N
            # Biased variance from sum / sum-of-squares (fine in f32 at these sizes;
            # for very large N switch to a per-tile mean/M2 Chan combine).
            var = jnp.maximum(tot[:, 1] / N - mean * mean, 0.0)
            m = self.bn_momentum
            unbiased = var * (N / max(N - 1, 1))
            self.running_mean = (1.0 - m) * self.running_mean + m * mean
            self.running_var = (1.0 - m) * self.running_var + m * unbiased
        else:
            mean, var = self.running_mean, self.running_var

        inv = jax.lax.rsqrt(var + self.eps)
        scale = (self.gamma * inv).reshape(Cout, 1)
        shift = (self.beta - mean * self.gamma * inv).reshape(Cout, 1)

        out = _bn_relu_pallas(y, scale, shift, TR=TR, apply_relu=self.relu)
        return jnp.transpose(out, (0, 2, 1, 3))             # back to NCHW


# ---------------------------------------------------------------------------
# Pure-JAX reference (mirrors the PyTorch forward), for a correctness check.
# ---------------------------------------------------------------------------
def deconv2d_reference(x, weight, bias, gamma, beta, running_mean, running_var, *,
                       stride, padding, output_padding, eps, relu, use_bn, training):
    Cin, Cout, K, _ = weight.shape
    w_flip = jnp.transpose(weight, (1, 0, 2, 3))[:, :, ::-1, ::-1]   # (Cout,Cin,K,K)
    pad_lo = K - 1 - padding
    pad_hi = K - 1 - padding + output_padding
    y = jax.lax.conv_general_dilated(
        x, w_flip, window_strides=(1, 1),
        padding=((pad_lo, pad_hi), (pad_lo, pad_hi)),
        lhs_dilation=(stride, stride), rhs_dilation=(1, 1),
        dimension_numbers=('NCHW', 'OIHW', 'NCHW'),
        precision=jax.lax.Precision.HIGHEST)
    if bias is not None:
        y = y + bias[None, :, None, None]
    if stride == 2:
        H, W = x.shape[2], x.shape[3]
        y = y[:, :, :2 * H, :2 * W]
    if not use_bn:
        return jnp.maximum(x, 0.0) if relu else x
    if training:
        mean = jnp.mean(y, axis=(0, 2, 3))
        var = jnp.var(y, axis=(0, 2, 3))
    else:
        mean, var = running_mean, running_var
    out = gamma[None, :, None, None] * (y - mean[None, :, None, None]) \
        * jax.lax.rsqrt(var[None, :, None, None] + eps) + beta[None, :, None, None]
    if relu:
        out = jnp.maximum(out, 0.0)
    return out


if __name__ == "__main__":
    key = jax.random.PRNGKey(0)
    k1, k2, k3, k4 = jax.random.split(key, 4)

    B, Cin, Cout, H, W = 2, 16, 16, 16, 16
    x = jax.random.uniform(k1, (B, Cin, H, W), jnp.float32)

    layer = Deconv2dPallas(Cin, Cout, kernel_size=3, stride=2, relu=True, bn=True,
                           padding=1, output_padding=1, key=k2)
    # Perturb gamma/beta to exercise the affine BN path (init_bn would leave 1/0).
    layer.gamma = 1.0 + 0.1 * jax.random.normal(k3, (Cout,), jnp.float32)
    layer.beta = 0.1 * jax.random.normal(k4, (Cout,), jnp.float32)

    out = layer(x)
    out = jax.block_until_ready(out)

    ref = deconv2d_reference(
        x, layer.weight, layer.bias, layer.gamma, layer.beta,
        jnp.zeros((Cout,), jnp.float32), jnp.ones((Cout,), jnp.float32),
        stride=2, padding=1, output_padding=1, eps=1e-5,
        relu=True, use_bn=True, training=True)

    assert out.shape == (B, Cout, 2 * H, 2 * W), out.shape
    np.testing.assert_allclose(np.asarray(out), np.asarray(ref), rtol=2e-3, atol=2e-3)

    print("KERNEL_OK")
</pallas_src>

<mosaic_0001>
module attributes {stable_mosaic.version = 11 : i64} {
  func.func @kernel(%arg0: i32, %arg1: i32, %arg2: memref<9x16x16xf32, #tpu.memory_space<vmem>>, %arg3: memref<16x1xf32, #tpu.memory_space<vmem>>, %arg4: memref<1x34x16x34xf32, #tpu.memory_space<vmem>>, %arg5: memref<1x8x16x32xf32, #tpu.memory_space<vmem>>, %arg6: memref<1x1x16x2xf32, #tpu.memory_space<vmem>>) attributes {dimension_semantics = [#tpu.dimension_semantics<parallel>, #tpu.dimension_semantics<parallel>], iteration_bounds = array<i64: 2, 4>, scalar_prefetch = 0 : i64, scratch_operands = 0 : i64, tpu.core_type = #tpu.core_type<tc>, window_params = [{pipeline_mode = #tpu.pipeline_mode<synchronous>, transform_indices = @transform_0, window_bounds = array<i64: 9, 16, 16>}, {pipeline_mode = #tpu.pipeline_mode<synchronous>, transform_indices = @transform_1, window_bounds = array<i64: 16, 1>}, {transform_indices = @transform_2, window_bounds = array<i64: 1, 34, 16, 34>}, {transform_indices = @transform_3, window_bounds = array<i64: 1, 8, 16, 32>}, {transform_indices = @transform_4, window_bounds = array<i64: 1, 1, 16, 2>}]} {
    %c8_i32 = arith.constant 8 : i32
    %0 = arith.muli %arg1, %c8_i32 : i32
    %c0_i32 = arith.constant 0 : i32
    %1 = arith.addi %0, %c0_i32 : i32
    %c0 = arith.constant 0 : index
    %2 = arith.index_cast %1 : i32 to index
    %c0_0 = arith.constant 0 : index
    %c0_1 = arith.constant 0 : index
    %3 = vector.load %arg4[%c0, %2, %c0_0, %c0_1] : memref<1x34x16x34xf32, #tpu.memory_space<vmem>>, vector<1x1x16x34xf32>
    %4 = vector.shape_cast %3 : vector<1x1x16x34xf32> to vector<16x34xf32>
    %c1_i32 = arith.constant 1 : i32
    %5 = arith.addi %0, %c1_i32 : i32
    %c0_2 = arith.constant 0 : index
    %6 = arith.index_cast %5 : i32 to index
    %c0_3 = arith.constant 0 : index
    %c0_4 = arith.constant 0 : index
    %7 = vector.load %arg4[%c0_2, %6, %c0_3, %c0_4] : memref<1x34x16x34xf32, #tpu.memory_space<vmem>>, vector<1x1x16x34xf32>
    %8 = vector.shape_cast %7 : vector<1x1x16x34xf32> to vector<16x34xf32>
    %c2_i32 = arith.constant 2 : i32
    %9 = arith.addi %0, %c2_i32 : i32
    %c0_5 = arith.constant 0 : index
    %10 = arith.index_cast %9 : i32 to index
    %c0_6 = arith.constant 0 : index
    %c0_7 = arith.constant 0 : index
    %11 = vector.load %arg4[%c0_5, %10, %c0_6, %c0_7] : memref<1x34x16x34xf32, #tpu.memory_space<vmem>>, vector<1x1x16x34xf32>
    %12 = vector.shape_cast %11 : vector<1x1x16x34xf32> to vector<16x34xf32>
    %c3_i32 = arith.constant 3 : i32
    %13 = arith.addi %0, %c3_i32 : i32
    %c0_8 = arith.constant 0 : index
    %14 = arith.index_cast %13 : i32 to index
    %c0_9 = arith.constant 0 : index
    %c0_10 = arith.constant 0 : index
    %15 = vector.load %arg4[%c0_8, %14, %c0_9, %c0_10] : memref<1x34x16x34xf32, #tpu.memory_space<vmem>>, vector<1x1x16x34xf32>
    %16 = vector.shape_cast %15 : vector<1x1x16x34xf32> to vector<16x34xf32>
    %c4_i32 = arith.constant 4 : i32
    %17 = arith.addi %0, %c4_i32 : i32
    %c0_11 = arith.constant 0 : index
    %18 = arith.index_cast %17 : i32 to index
    %c0_12 = arith.constant 0 : index
    %c0_13 = arith.constant 0 : index
    %19 = vector.load %arg4[%c0_11, %18, %c0_12, %c0_13] : memref<1x34x16x34xf32, #tpu.memory_space<vmem>>, vector<1x1x16x34xf32>
    %20 = vector.shape_cast %19 : vector<1x1x16x34xf32> to vector<16x34xf32>
    %c5_i32 = arith.constant 5 : i32
    %21 = arith.addi %0, %c5_i32 : i32
    %c0_14 = arith.constant 0 : index
    %22 = arith.index_cast %21 : i32 to index
    %c0_15 = arith.constant 0 : index
    %c0_16 = arith.constant 0 : index
    %23 = vector.load %arg4[%c0_14, %22, %c0_15, %c0_16] : memref<1x34x16x34xf32, #tpu.memory_space<vmem>>, vector<1x1x16x34xf32>
    %24 = vector.shape_cast %23 : vector<1x1x16x34xf32> to vector<16x34xf32>
    %c6_i32 = arith.constant 6 : i32
    %25 = arith.addi %0, %c6_i32 : i32
    %c0_17 = arith.constant 0 : index
    %26 = arith.index_cast %25 : i32 to index
    %c0_18 = arith.constant 0 : index
    %c0_19 = arith.constant 0 : index
    %27 = vector.load %arg4[%c0_17, %26, %c0_18, %c0_19] : memref<1x34x16x34xf32, #tpu.memory_space<vmem>>, vector<1x1x16x34xf32>
    %28 = vector.shape_cast %27 : vector<1x1x16x34xf32> to vector<16x34xf32>
    %c7_i32 = arith.constant 7 : i32
    %29 = arith.addi %0, %c7_i32 : i32
    %c0_20 = arith.constant 0 : index
    %30 = arith.index_cast %29 : i32 to index
    %c0_21 = arith.constant 0 : index
    %c0_22 = arith.constant 0 : index
    %31 = vector.load %arg4[%c0_20, %30, %c0_21, %c0_22] : memref<1x34x16x34xf32, #tpu.memory_space<vmem>>, vector<1x1x16x34xf32>
    %32 = vector.shape_cast %31 : vector<1x1x16x34xf32> to vector<16x34xf32>
    %c8_i32_23 = arith.constant 8 : i32
    %33 = arith.addi %0, %c8_i32_23 : i32
    %c0_24 = arith.constant 0 : index
    %34 = arith.index_cast %33 : i32 to index
    %c0_25 = arith.constant 0 : index
    %c0_26 = arith.constant 0 : index
    %35 = vector.load %arg4[%c0_24, %34, %c0_25, %c0_26] : memref<1x34x16x34xf32, #tpu.memory_space<vmem>>, vector<1x1x16x34xf32>
    %36 = vector.shape_cast %35 : vector<1x1x16x34xf32> to vector<16x34xf32>
    %c9_i32 = arith.constant 9 : i32
    %37 = arith.addi %0, %c9_i32 : i32
    %c0_27 = arith.constant 0 : index
    %38 = arith.index_cast %37 : i32 to index
    %c0_28 = arith.constant 0 : index
    %c0_29 = arith.constant 0 : index
    %39 = vector.load %arg4[%c0_27, %38, %c0_28, %c0_29] : memref<1x34x16x34xf32, #tpu.memory_space<vmem>>, vector<1x1x16x34xf32>
    %40 = vector.shape_cast %39 : vector<1x1x16x34xf32> to vector<16x34xf32>
    %cst = arith.constant 0.000000e+00 : f32
    %41 = vector.broadcast %cst : f32 to vector<16x1xf32>
    %cst_30 = arith.constant 0.000000e+00 : f32
    %42 = vector.broadcast %cst_30 : f32 to vector<16x1xf32>
    %cst_31 = arith.constant 0.000000e+00 : f32
    %43 = vector.broadcast %cst_31 : f32 to vector<16x32xf32>
    %c0_32 = arith.constant 0 : index
    %c0_33 = arith.constant 0 : index
    %c0_34 = arith.constant 0 : index
    %44 = vector.load %arg2[%c0_32, %c0_33, %c0_34] : memref<9x16x16xf32, #tpu.memory_space<vmem>>, vector<1x16x16xf32>
    %45 = vector.shape_cast %44 : vector<1x16x16xf32> to vector<16x16xf32>
    %46 = vector.extract_strided_slice %4 {offsets = [0, 0], sizes = [16, 32], strides = [1, 1]} : vector<16x34xf32> to vector<16x32xf32>
    %cst_35 = arith.constant dense<0.000000e+00> : vector<16x32xf32>
    %47 = tpu.matmul %45, %46, %cst_35 {dimension_numbers = #tpu.dot_dimension_numbers<[1], [0], [0], [1], [0, 0, 1, 1], [], []>} : vector<16x16xf32>, vector<16x32xf32>, vector<16x32xf32> -> vector<16x32xf32>
    %48 = arith.addf %43, %47 : vector<16x32xf32>
    %c1 = arith.constant 1 : index
    %c0_36 = arith.constant 0 : index
    %c0_37 = arith.constant 0 : index
    %49 = vector.load %arg2[%c1, %c0_36, %c0_37] : memref<9x16x16xf32, #tpu.memory_space<vmem>>, vector<1x16x16xf32>
    %50 = vector.shape_cast %49 : vector<1x16x16xf32> to vector<16x16xf32>
    %51 = vector.extract_strided_slice %4 {offsets = [0, 1], sizes = [16, 32], strides = [1, 1]} : vector<16x34xf32> to vector<16x32xf32>
    %cst_38 = arith.constant dense<0.000000e+00> : vector<16x32xf32>
    %52 = tpu.matmul %50, %51, %cst_38 {dimension_numbers = #tpu.dot_dimension_numbers<[1], [0], [0], [1], [0, 0, 1, 1], [], []>} : vector<16x16xf32>, vector<16x32xf32>, vector<16x32xf32> -> vector<16x32xf32>
    %53 = arith.addf %48, %52 : vector<16x32xf32>
    %c2 = arith.constant 2 : index
    %c0_39 = arith.constant 0 : index
    %c0_40 = arith.constant 0 : index
    %54 = vector.load %arg2[%c2, %c0_39, %c0_40] : memref<9x16x16xf32, #tpu.memory_space<vmem>>, vector<1x16x16xf32>
    %55 = vector.shape_cast %54 : vector<1x16x16xf32> to vector<16x16xf32>
    %56 = vector.extract_strided_slice %4 {offsets = [0, 2], sizes = [16, 32], strides = [1, 1]} : vector<16x34xf32> to vector<16x32xf32>
    %cst_41 = arith.constant dense<0.000000e+00> : vector<16x32xf32>
    %57 = tpu.matmul %55, %56, %cst_41 {dimension_numbers = #tpu.dot_dimension_numbers<[1], [0], [0], [1], [0, 0, 1, 1], [], []>} : vector<16x16xf32>, vector<16x32xf32>, vector<16x32xf32> -> vector<16x32xf32>
    %58 = arith.addf %53, %57 : vector<16x32xf32>
    %c3 = arith.constant 3 : index
    %c0_42 = arith.constant 0 : index
    %c0_43 = arith.constant 0 : index
    %59 = vector.load %arg2[%c3, %c0_42, %c0_43] : memref<9x16x16xf32, #tpu.memory_space<vmem>>, vector<1x16x16xf32>
    %60 = vector.shape_cast %59 : vector<1x16x16xf32> to vector<16x16xf32>
    %61 = vector.extract_strided_slice %8 {offsets = [0, 0], sizes = [16, 32], strides = [1, 1]} : vector<16x34xf32> to vector<16x32xf32>
    %cst_44 = arith.constant dense<0.000000e+00> : vector<16x32xf32>
    %62 = tpu.matmul %60, %61, %cst_44 {dimension_numbers = #tpu.dot_dimension_numbers<[1], [0], [0], [1], [0, 0, 1, 1], [], []>} : vector<16x16xf32>, vector<16x32xf32>, vector<16x32xf32> -> vector<16x32xf32>
    %63 = arith.addf %58, %62 : vector<16x32xf32>
    %c4 = arith.constant 4 : index
    %c0_45 = arith.constant 0 : index
    %c0_46 = arith.constant 0 : index
    %64 = vector.load %arg2[%c4, %c0_45, %c0_46] : memref<9x16x16xf32, #tpu.memory_space<vmem>>, vector<1x16x16xf32>
    %65 = vector.shape_cast %64 : vector<1x16x16xf32> to vector<16x16xf32>
    %66 = vector.extract_strided_slice %8 {offsets = [0, 1], sizes = [16, 32], strides = [1, 1]} : vector<16x34xf32> to vector<16x32xf32>
    %cst_47 = arith.constant dense<0.000000e+00> : vector<16x32xf32>
    %67 = tpu.matmul %65, %66, %cst_47 {dimension_numbers = #tpu.dot_dimension_numbers<[1], [0], [0], [1], [0, 0, 1, 1], [], []>} : vector<16x16xf32>, vector<16x32xf32>, vector<16x32xf32> -> vector<16x32xf32>
    %68 = arith.addf %63, %67 : vector<16x32xf32>
    %c5 = arith.constant 5 : index
    %c0_48 = arith.constant 0 : index
    %c0_49 = arith.constant 0 : index
    %69 = vector.load %arg2[%c5, %c0_48, %c0_49] : memref<9x16x16xf32, #tpu.memory_space<vmem>>, vector<1x16x16xf32>
    %70 = vector.shape_cast %69 : vector<1x16x16xf32> to vector<16x16xf32>
    %71 = vector.extract_strided_slice %8 {offsets = [0, 2], sizes = [16, 32], strides = [1, 1]} : vector<16x34xf32> to vector<16x32xf32>
    %cst_50 = arith.constant dense<0.000000e+00> : vector<16x32xf32>
    %72 = tpu.matmul %70, %71, %cst_50 {dimension_numbers = #tpu.dot_dimension_numbers<[1], [0], [0], [1], [0, 0, 1, 1], [], []>} : vector<16x16xf32>, vector<16x32xf32>, vector<16x32xf32> -> vector<16x32xf32>
    %73 = arith.addf %68, %72 : vector<16x32xf32>
    %c6 = arith.constant 6 : index
    %c0_51 = arith.constant 0 : index
    %c0_52 = arith.constant 0 : index
    %74 = vector.load %arg2[%c6, %c0_51, %c0_52] : memref<9x16x16xf32, #tpu.memory_space<vmem>>, vector<1x16x16xf32>
    %75 = vector.shape_cast %74 : vector<1x16x16xf32> to vector<16x16xf32>
    %76 = vector.extract_strided_slice %12 {offsets = [0, 0], sizes = [16, 32], strides = [1, 1]} : vector<16x34xf32> to vector<16x32xf32>
    %cst_53 = arith.constant dense<0.000000e+00> : vector<16x32xf32>
    %77 = tpu.matmul %75, %76, %cst_53 {dimension_numbers = #tpu.dot_dimension_numbers<[1], [0], [0], [1], [0, 0, 1, 1], [], []>} : vector<16x16xf32>, vector<16x32xf32>, vector<16x32xf32> -> vector<16x32xf32>
    %78 = arith.addf %73, %77 : vector<16x32xf32>
    %c7 = arith.constant 7 : index
    %c0_54 = arith.constant 0 : index
    %c0_55 = arith.constant 0 : index
    %79 = vector.load %arg2[%c7, %c0_54, %c0_55] : memref<9x16x16xf32, #tpu.memory_space<vmem>>, vector<1x16x16xf32>
    %80 = vector.shape_cast %79 : vector<1x16x16xf32> to vector<16x16xf32>
    %81 = vector.extract_strided_slice %12 {offsets = [0, 1], sizes = [16, 32], strides = [1, 1]} : vector<16x34xf32> to vector<16x32xf32>
    %cst_56 = arith.constant dense<0.000000e+00> : vector<16x32xf32>
    %82 = tpu.matmul %80, %81, %cst_56 {dimension_numbers = #tpu.dot_dimension_numbers<[1], [0], [0], [1], [0, 0, 1, 1], [], []>} : vector<16x16xf32>, vector<16x32xf32>, vector<16x32xf32> -> vector<16x32xf32>
    %83 = arith.addf %78, %82 : vector<16x32xf32>
    %c8 = arith.constant 8 : index
    %c0_57 = arith.constant 0 : index
    %c0_58 = arith.constant 0 : index
    %84 = vector.load %arg2[%c8, %c0_57, %c0_58] : memref<9x16x16xf32, #tpu.memory_space<vmem>>, vector<1x16x16xf32>
    %85 = vector.shape_cast %84 : vector<1x16x16xf32> to vector<16x16xf32>
    %86 = vector.extract_strided_slice %12 {offsets = [0, 2], sizes = [16, 32], strides = [1, 1]} : vector<16x34xf32> to vector<16x32xf32>
    %cst_59 = arith.constant dense<0.000000e+00> : vector<16x32xf32>
    %87 = tpu.matmul %85, %86, %cst_59 {dimension_numbers = #tpu.dot_dimension_numbers<[1], [0], [0], [1], [0, 0, 1, 1], [], []>} : vector<16x16xf32>, vector<16x32xf32>, vector<16x32xf32> -> vector<16x32xf32>
    %88 = arith.addf %83, %87 : vector<16x32xf32>
    %c0_60 = arith.constant 0 : index
    %c0_61 = arith.constant 0 : index
    %89 = vector.load %arg3[%c0_60, %c0_61] : memref<16x1xf32, #tpu.memory_space<vmem>>, vector<16x1xf32>
    %90 = vector.broadcast %89 : vector<16x1xf32> to vector<16x32xf32>
    %91 = arith.addf %88, %90 : vector<16x32xf32>
    %c0_62 = arith.constant 0 : index
    %c0_63 = arith.constant 0 : index
    %c0_64 = arith.constant 0 : index
    %c0_65 = arith.constant 0 : index
    %92 = vector.load %arg5[%c0_62, %c0_63, %c0_64, %c0_65] : memref<1x8x16x32xf32, #tpu.memory_space<vmem>>, vector<1x1x16x32xf32>
    %93 = vector.shape_cast %92 : vector<1x1x16x32xf32> to vector<16x32xf32>
    %94 = vector.shape_cast %91 : vector<16x32xf32> to vector<1x1x16x32xf32>
    tpu.vector_store %arg5[%c0_62, %c0_63, %c0_64, %c0_65], %94 {strides = array<i32>} : memref<1x8x16x32xf32, #tpu.memory_space<vmem>>, vector<1x1x16x32xf32>,
    %cst_66 = arith.constant dense<0.000000e+00> : vector<16xf32>
    %95 = vector.multi_reduction <add>, %91, %cst_66 [1] : vector<16x32xf32> to vector<16xf32>
    %96 = vector.shape_cast %95 : vector<16xf32> to vector<16x1xf32>
    %97 = arith.addf %41, %96 : vector<16x1xf32>
    %98 = arith.mulf %91, %91 : vector<16x32xf32>
    %cst_67 = arith.constant dense<0.000000e+00> : vector<16xf32>
    %99 = vector.multi_reduction <add>, %98, %cst_67 [1] : vector<16x32xf32> to vector<16xf32>
    %100 = vector.shape_cast %99 : vector<16xf32> to vector<16x1xf32>
    %101 = arith.addf %42, %100 : vector<16x1xf32>
    %cst_68 = arith.constant 0.000000e+00 : f32
    %102 = vector.broadcast %cst_68 : f32 to vector<16x32xf32>
    %c0_69 = arith.constant 0 : index
    %c0_70 = arith.constant 0 : index
    %c0_71 = arith.constant 0 : index
    %103 = vector.load %arg2[%c0_69, %c0_70, %c0_71] : memref<9x16x16xf32, #tpu.memory_space<vmem>>, vector<1x16x16xf32>
    %104 = vector.shape_cast %103 : vector<1x16x16xf32> to vector<16x16xf32>
    %105 = vector.extract_strided_slice %8 {offsets = [0, 0], sizes = [16, 32], strides = [1, 1]} : vector<16x34xf32> to vector<16x32xf32>
    %cst_72 = arith.constant dense<0.000000e+00> : vector<16x32xf32>
    %106 = tpu.matmul %104, %105, %cst_72 {dimension_numbers = #tpu.dot_dimension_numbers<[1], [0], [0], [1], [0, 0, 1, 1], [], []>} : vector<16x16xf32>, vector<16x32xf32>, vector<16x32xf32> -> vector<16x32xf32>
    %107 = arith.addf %102, %106 : vector<16x32xf32>
    %c1_73 = arith.constant 1 : index
    %c0_74 = arith.constant 0 : index
    %c0_75 = arith.constant 0 : index
    %108 = vector.load %arg2[%c1_73, %c0_74, %c0_75] : memref<9x16x16xf32, #tpu.memory_space<vmem>>, vector<1x16x16xf32>
    %109 = vector.shape_cast %108 : vector<1x16x16xf32> to vector<16x16xf32>
    %110 = vector.extract_strided_slice %8 {offsets = [0, 1], sizes = [16, 32], strides = [1, 1]} : vector<16x34xf32> to vector<16x32xf32>
    %cst_76 = arith.constant dense<0.000000e+00> : vector<16x32xf32>
    %111 = tpu.matmul %109, %110, %cst_76 {dimension_numbers = #tpu.dot_dimension_numbers<[1], [0], [0], [1], [0, 0, 1, 1], [], []>} : vector<16x16xf32>, vector<16x32xf32>, vector<16x32xf32> -> vector<16x32xf32>
    %112 = arith.addf %107, %111 : vector<16x32xf32>
    %c2_77 = arith.constant 2 : index
    %c0_78 = arith.constant 0 : index
    %c0_79 = arith.constant 0 : index
    %113 = vector.load %arg2[%c2_77, %c0_78, %c0_79] : memref<9x16x16xf32, #tpu.memory_space<vmem>>, vector<1x16x16xf32>
    %114 = vector.shape_cast %113 : vector<1x16x16xf32> to vector<16x16xf32>
    %115 = vector.extract_strided_slice %8 {offsets = [0, 2], sizes = [16, 32], strides = [1, 1]} : vector<16x34xf32> to vector<16x32xf32>
    %cst_80 = arith.constant dense<0.000000e+00> : vector<16x32xf32>
    %116 = tpu.matmul %114, %115, %cst_80 {dimension_numbers = #tpu.dot_dimension_numbers<[1], [0], [0], [1], [0, 0, 1, 1], [], []>} : vector<16x16xf32>, vector<16x32xf32>, vector<16x32xf32> -> vector<16x32xf32>
    %117 = arith.addf %112, %116 : vector<16x32xf32>
    %c3_81 = arith.constant 3 : index
    %c0_82 = arith.constant 0 : index
    %c0_83 = arith.constant 0 : index
    %118 = vector.load %arg2[%c3_81, %c0_82, %c0_83] : memref<9x16x16xf32, #tpu.memory_space<vmem>>, vector<1x16x16xf32>
    %119 = vector.shape_cast %118 : vector<1x16x16xf32> to vector<16x16xf32>
    %120 = vector.extract_strided_slice %12 {offsets = [0, 0], sizes = [16, 32], strides = [1, 1]} : vector<16x34xf32> to vector<16x32xf32>
    %cst_84 = arith.constant dense<0.000000e+00> : vector<16x32xf32>
    %121 = tpu.matmul %119, %120, %cst_84 {dimension_numbers = #tpu.dot_dimension_numbers<[1], [0], [0], [1], [0, 0, 1, 1], [], []>} : vector<16x16xf32>, vector<16x32xf32>, vector<16x32xf32> -> vector<16x32xf32>
    %122 = arith.addf %117, %121 : vector<16x32xf32>
    %c4_85 = arith.constant 4 : index
    %c0_86 = arith.constant 0 : index
    %c0_87 = arith.constant 0 : index
    %123 = vector.load %arg2[%c4_85, %c0_86, %c0_87] : memref<9x16x16xf32, #tpu.memory_space<vmem>>, vector<1x16x16xf32>
    %124 = vector.shape_cast %123 : vector<1x16x16xf32> to vector<16x16xf32>
    %125 = vector.extract_strided_slice %12 {offsets = [0, 1], sizes = [16, 32], strides = [1, 1]} : vector<16x34xf32> to vector<16x32xf32>
    %cst_88 = arith.constant dense<0.000000e+00> : vector<16x32xf32>
    %126 = tpu.matmul %124, %125, %cst_88 {dimension_numbers = #tpu.dot_dimension_numbers<[1], [0], [0], [1], [0, 0, 1, 1], [], []>} : vector<16x16xf32>, vector<16x32xf32>, vector<16x32xf32> -> vector<16x32xf32>
    %127 = arith.addf %122, %126 : vector<16x32xf32>
    %c5_89 = arith.constant 5 : index
    %c0_90 = arith.constant 0 : index
    %c0_91 = arith.constant 0 : index
    %128 = vector.load %arg2[%c5_89, %c0_90, %c0_91] : memref<9x16x16xf32, #tpu.memory_space<vmem>>, vector<1x16x16xf32>
    %129 = vector.shape_cast %128 : vector<1x16x16xf32> to vector<16x16xf32>
    %130 = vector.extract_strided_slice %12 {offsets = [0, 2], sizes = [16, 32], strides = [1, 1]} : vector<16x34xf32> to vector<16x32xf32>
    %cst_92 = arith.constant dense<0.000000e+00> : vector<16x32xf32>
    %131 = tpu.matmul %129, %130, %cst_92 {dimension_numbers = #tpu.dot_dimension_numbers<[1], [0], [0], [1], [0, 0, 1, 1], [], []>} : vector<16x16xf32>, vector<16x32xf32>, vector<16x32xf32> -> vector<16x32xf32>
    %132 = arith.addf %127, %131 : vector<16x32xf32>
    %c6_93 = arith.constant 6 : index
    %c0_94 = arith.constant 0 : index
    %c0_95 = arith.constant 0 : index
    %133 = vector.load %arg2[%c6_93, %c0_94, %c0_95] : memref<9x16x16xf32, #tpu.memory_space<vmem>>, vector<1x16x16xf32>
    %134 = vector.shape_cast %133 : vector<1x16x16xf32> to vector<16x16xf32>
    %135 = vector.extract_strided_slice %16 {offsets = [0, 0], sizes = [16, 32], strides = [1, 1]} : vector<16x34xf32> to vector<16x32xf32>
    %cst_96 = arith.constant dense<0.000000e+00> : vector<16x32xf32>
    %136 = tpu.matmul %134, %135, %cst_96 {dimension_numbers = #tpu.dot_dimension_numbers<[1], [0], [0], [1], [0, 0, 1, 1], [], []>} : vector<16x16xf32>, vector<16x32xf32>, vector<16x32xf32> -> vector<16x32xf32>
    %137 = arith.addf %132, %136 : vector<16x32xf32>
    %c7_97 = arith.constant 7 : index
    %c0_98 = arith.constant 0 : index
    %c0_99 = arith.constant 0 : index
    %138 = vector.load %arg2[%c7_97, %c0_98, %c0_99] : memref<9x16x16xf32, #tpu.memory_space<vmem>>, vector<1x16x16xf32>
    %139 = vector.shape_cast %138 : vector<1x16x16xf32> to vector<16x16xf32>
    %140 = vector.extract_strided_slice %16 {offsets = [0, 1], sizes = [16, 32], strides = [1, 1]} : vector<16x34xf32> to vector<16x32xf32>
    %cst_100 = arith.constant dense<0.000000e+00> : vector<16x32xf32>
    %141 = tpu.matmul %139, %140, %cst_100 {dimension_numbers = #tpu.dot_dimension_numbers<[1], [0], [0], [1], [0, 0, 1, 1], [], []>} : vector<16x16xf32>, vector<16x32xf32>, vector<16x32xf32> -> vector<16x32xf32>
    %142 = arith.addf %137, %141 : vector<16x32xf32>
    %c8_101 = arith.constant 8 : index
    %c0_102 = arith.constant 0 : index
    %c0_103 = arith.constant 0 : index
    %143 = vector.load %arg2[%c8_101, %c0_102, %c0_103] : memref<9x16x16xf32, #tpu.memory_space<vmem>>, vector<1x16x16xf32>
    %144 = vector.shape_cast %143 : vector<1x16x16xf32> to vector<16x16xf32>
    %145 = vector.extract_strided_slice %16 {offsets = [0, 2], sizes = [16, 32], strides = [1, 1]} : vector<16x34xf32> to vector<16x32xf32>
    %cst_104 = arith.constant dense<0.000000e+00> : vector<16x32xf32>
    %146 = tpu.matmul %144, %145, %cst_104 {dimension_numbers = #tpu.dot_dimension_numbers<[1], [0], [0], [1], [0, 0, 1, 1], [], []>} : vector<16x16xf32>, vector<16x32xf32>, vector<16x32xf32> -> vector<16x32xf32>
    %147 = arith.addf %142, %146 : vector<16x32xf32>
    %c0_105 = arith.constant 0 : index
    %c0_106 = arith.constant 0 : index
    %148 = vector.load %arg3[%c0_105, %c0_106] : memref<16x1xf32, #tpu.memory_space<vmem>>, vector<16x1xf32>
    %149 = vector.broadcast %148 : vector<16x1xf32> to vector<16x32xf32>
    %150 = arith.addf %147, %149 : vector<16x32xf32>
    %c0_107 = arith.constant 0 : index
    %c1_108 = arith.constant 1 : index
    %c0_109 = arith.constant 0 : index
    %c0_110 = arith.constant 0 : index
    %151 = vector.load %arg5[%c0_107, %c1_108, %c0_109, %c0_110] : memref<1x8x16x32xf32, #tpu.memory_space<vmem>>, vector<1x1x16x32xf32>
    %152 = vector.shape_cast %151 : vector<1x1x16x32xf32> to vector<16x32xf32>
    %153 = vector.shape_cast %150 : vector<16x32xf32> to vector<1x1x16x32xf32>
    tpu.vector_store %arg5[%c0_107, %c1_108, %c0_109, %c0_110], %153 {strides = array<i32>} : memref<1x8x16x32xf32, #tpu.memory_space<vmem>>, vector<1x1x16x32xf32>,
    %cst_111 = arith.constant dense<0.000000e+00> : vector<16xf32>
    %154 = vector.multi_reduction <add>, %150, %cst_111 [1] : vector<16x32xf32> to vector<16xf32>
    %155 = vector.shape_cast %154 : vector<16xf32> to vector<16x1xf32>
    %156 = arith.addf %97, %155 : vector<16x1xf32>
    %157 = arith.mulf %150, %150 : vector<16x32xf32>
    %cst_112 = arith.constant dense<0.000000e+00> : vector<16xf32>
    %158 = vector.multi_reduction <add>, %157, %cst_112 [1] : vector<16x32xf32> to vector<16xf32>
    %159 = vector.shape_cast %158 : vector<16xf32> to vector<16x1xf32>
    %160 = arith.addf %101, %159 : vector<16x1xf32>
    %cst_113 = arith.constant 0.000000e+00 : f32
    %161 = vector.broadcast %cst_113 : f32 to vector<16x32xf32>
    %c0_114 = arith.constant 0 : index
    %c0_115 = arith.constant 0 : index
    %c0_116 = arith.constant 0 : index
    %162 = vector.load %arg2[%c0_114, %c0_115, %c0_116] : memref<9x16x16xf32, #tpu.memory_space<vmem>>, vector<1x16x16xf32>
    %163 = vector.shape_cast %162 : vector<1x16x16xf32> to vector<16x16xf32>
    %164 = vector.extract_strided_slice %12 {offsets = [0, 0], sizes = [16, 32], strides = [1, 1]} : vector<16x34xf32> to vector<16x32xf32>
    %cst_117 = arith.constant dense<0.000000e+00> : vector<16x32xf32>
    %165 = tpu.matmul %163, %164, %cst_117 {dimension_numbers = #tpu.dot_dimension_numbers<[1], [0], [0], [1], [0, 0, 1, 1], [], []>} : vector<16x16xf32>, vector<16x32xf32>, vector<16x32xf32> -> vector<16x32xf32>
    %166 = arith.addf %161, %165 : vector<16x32xf32>
    %c1_118 = arith.constant 1 : index
    %c0_119 = arith.constant 0 : index
    %c0_120 = arith.constant 0 : index
    %167 = vector.load %arg2[%c1_118, %c0_119, %c0_120] : memref<9x16x16xf32, #tpu.memory_space<vmem>>, vector<1x16x16xf32>
    %168 = vector.shape_cast %167 : vector<1x16x16xf32> to vector<16x16xf32>
    %169 = vector.extract_strided_slice %12 {offsets = [0, 1], sizes = [16, 32], strides = [1, 1]} : vector<16x34xf32> to vector<16x32xf32>
    %cst_121 = arith.constant dense<0.000000e+00> : vector<16x32xf32>
    %170 = tpu.matmul %168, %169, %cst_121 {dimension_numbers = #tpu.dot_dimension_numbers<[1], [0], [0], [1], [0, 0, 1, 1], [], []>} : vector<16x16xf32>, vector<16x32xf32>, vector<16x32xf32> -> vector<16x32xf32>
    %171 = arith.addf %166, %170 : vector<16x32xf32>
    %c2_122 = arith.constant 2 : index
    %c0_123 = arith.constant 0 : index
    %c0_124 = arith.constant 0 : index
    %172 = vector.load %arg2[%c2_122, %c0_123, %c0_124] : memref<9x16x16xf32, #tpu.memory_space<vmem>>, vector<1x16x16xf32>
    %173 = vector.shape_cast %172 : vector<1x16x16xf32> to vector<16x16xf32>
    %174 = vector.extract_strided_slice %12 {offsets = [0, 2], sizes = [16, 32], strides = [1, 1]} : vector<16x34xf32> to vector<16x32xf32>
    %cst_125 = arith.constant dense<0.000000e+00> : vector<16x32xf32>
    %175 = tpu.matmul %173, %174, %cst_125 {dimension_numbers = #tpu.dot_dimension_numbers<[1], [0], [0], [1], [0, 0, 1, 1], [], []>} : vector<16x16xf32>, vector<16x32xf32>, vector<16x32xf32> -> vector<16x32xf32>
    %176 = arith.addf %171, %175 : vector<16x32xf32>
    %c3_126 = arith.constant 3 : index
    %c0_127 = arith.constant 0 : index
    %c0_128 = arith.constant 0 : index
    %177 = vector.load %arg2[%c3_126, %c0_127, %c0_128] : memref<9x16x16xf32, #tpu.memory_space<vmem>>, vector<1x16x16xf32>
    %178 = vector.shape_cast %177 : vector<1x16x16xf32> to vector<16x16xf32>
    %179 = vector.extract_strided_slice %16 {offsets = [0, 0], sizes = [16, 32], strides = [1, 1]} : vector<16x34xf32> to vector<16x32xf32>
    %cst_129 = arith.constant dense<0.000000e+00> : vector<16x32xf32>
    %180 = tpu.matmul %178, %179, %cst_129 {dimension_numbers = #tpu.dot_dimension_numbers<[1], [0], [0], [1], [0, 0, 1, 1], [], []>} : vector<16x16xf32>, vector<16x32xf32>, vector<16x32xf32> -> vector<16x32xf32>
    %181 = arith.addf %176, %180 : vector<16x32xf32>
    %c4_130 = arith.constant 4 : index
    %c0_131 = arith.constant 0 : index
    %c0_132 = arith.constant 0 : index
    %182 = vector.load %arg2[%c4_130, %c0_131, %c0_132] : memref<9x16x16xf32, #tpu.memory_space<vmem>>, vector<1x16x16xf32>
    %183 = vector.shape_cast %182 : vector<1x16x16xf32> to vector<16x16xf32>
    %184 = vector.extract_strided_slice %16 {offsets = [0, 1], sizes = [16, 32], strides = [1, 1]} : vector<16x34xf32> to vector<16x32xf32>
    %cst_133 = arith.constant dense<0.000000e+00> : vector<16x32xf32>
    %185 = tpu.matmul %183, %184, %cst_133 {dimension_numbers = #tpu.dot_dimension_numbers<[1], [0], [0], [1], [0, 0, 1, 1], [], []>} : vector<16x16xf32>, vector<16x32xf32>, vector<16x32xf32> -> vector<16x32xf32>
    %186 = arith.addf %181, %185 : vector<16x32xf32>
    %c5_134 = arith.constant 5 : index
    %c0_135 = arith.constant 0 : index
    %c0_136 = arith.constant 0 : index
    %187 = vector.load %arg2[%c5_134, %c0_135, %c0_136] : memref<9x16x16xf32, #tpu.memory_space<vmem>>, vector<1x16x16xf32>
    %188 = vector.shape_cast %187 : vector<1x16x16xf32> to vector<16x16xf32>
    %189 = vector.extract_strided_slice %16 {offsets = [0, 2], sizes = [16, 32], strides = [1, 1]} : vector<16x34xf32> to vector<16x32xf32>
    %cst_137 = arith.constant dense<0.000000e+00> : vector<16x32xf32>
    %190 = tpu.matmul %188, %189, %cst_137 {dimension_numbers = #tpu.dot_dimension_numbers<[1], [0], [0], [1], [0, 0, 1, 1], [], []>} : vector<16x16xf32>, vector<16x32xf32>, vector<16x32xf32> -> vector<16x32xf32>
    %191 = arith.addf %186, %190 : vector<16x32xf32>
    %c6_138 = arith.constant 6 : index
    %c0_139 = arith.constant 0 : index
    %c0_140 = arith.constant 0 : index
    %192 = vector.load %arg2[%c6_138, %c0_139, %c0_140] : memref<9x16x16xf32, #tpu.memory_space<vmem>>, vector<1x16x16xf32>
    %193 = vector.shape_cast %192 : vector<1x16x16xf32> to vector<16x16xf32>
    %194 = vector.extract_strided_slice %20 {offsets = [0, 0], sizes = [16, 32], strides = [1, 1]} : vector<16x34xf32> to vector<16x32xf32>
    %cst_141 = arith.constant dense<0.000000e+00> : vector<16x32xf32>
    %195 = tpu.matmul %193, %194, %cst_141 {dimension_numbers = #tpu.dot_dimension_numbers<[1], [0], [0], [1], [0, 0, 1, 1], [], []>} : vector<16x16xf32>, vector<16x32xf32>, vector<16x32xf32> -> vector<16x32xf32>
    %196 = arith.addf %191, %195 : vector<16x32xf32>
    %c7_142 = arith.constant 7 : index
    %c0_143 = arith.constant 0 : index
    %c0_144 = arith.constant 0 : index
    %197 = vector.load %arg2[%c7_142, %c0_143, %c0_144] : memref<9x16x16xf32, #tpu.memory_space<vmem>>, vector<1x16x16xf32>
    %198 = vector.shape_cast %197 : vector<1x16x16xf32> to vector<16x16xf32>
    %199 = vector.extract_strided_slice %20 {offsets = [0, 1], sizes = [16, 32], strides = [1, 1]} : vector<16x34xf32> to vector<16x32xf32>
    %cst_145 = arith.constant dense<0.000000e+00> : vector<16x32xf32>
    %200 = tpu.matmul %198, %199, %cst_145 {dimension_numbers = #tpu.dot_dimension_numbers<[1], [0], [0], [1], [0, 0, 1, 1], [], []>} : vector<16x16xf32>, vector<16x32xf32>, vector<16x32xf32> -> vector<16x32xf32>
    %201 = arith.addf %196, %200 : vector<16x32xf32>
    %c8_146 = arith.constant 8 : index
    %c0_147 = arith.constant 0 : index
    %c0_148 = arith.constant 0 : index
    %202 = vector.load %arg2[%c8_146, %c0_147, %c0_148] : memref<9x16x16xf32, #tpu.memory_space<vmem>>, vector<1x16x16xf32>
    %203 = vector.shape_cast %202 : vector<1x16x16xf32> to vector<16x16xf32>
    %204 = vector.extract_strided_slice %20 {offsets = [0, 2], sizes = [16, 32], strides = [1, 1]} : vector<16x34xf32> to vector<16x32xf32>
    %cst_149 = arith.constant dense<0.000000e+00> : vector<16x32xf32>
    %205 = tpu.matmul %203, %204, %cst_149 {dimension_numbers = #tpu.dot_dimension_numbers<[1], [0], [0], [1], [0, 0, 1, 1], [], []>} : vector<16x16xf32>, vector<16x32xf32>, vector<16x32xf32> -> vector<16x32xf32>
    %206 = arith.addf %201, %205 : vector<16x32xf32>
    %c0_150 = arith.constant 0 : index
    %c0_151 = arith.constant 0 : index
    %207 = vector.load %arg3[%c0_150, %c0_151] : memref<16x1xf32, #tpu.memory_space<vmem>>, vector<16x1xf32>
    %208 = vector.broadcast %207 : vector<16x1xf32> to vector<16x32xf32>
    %209 = arith.addf %206, %208 : vector<16x32xf32>
    %c0_152 = arith.constant 0 : index
    %c2_153 = arith.constant 2 : index
    %c0_154 = arith.constant 0 : index
    %c0_155 = arith.constant 0 : index
    %210 = vector.load %arg5[%c0_152, %c2_153, %c0_154, %c0_155] : memref<1x8x16x32xf32, #tpu.memory_space<vmem>>, vector<1x1x16x32xf32>
    %211 = vector.shape_cast %210 : vector<1x1x16x32xf32> to vector<16x32xf32>
    %212 = vector.shape_cast %209 : vector<16x32xf32> to vector<1x1x16x32xf32>
    tpu.vector_store %arg5[%c0_152, %c2_153, %c0_154, %c0_155], %212 {strides = array<i32>} : memref<1x8x16x32xf32, #tpu.memory_space<vmem>>, vector<1x1x16x32xf32>,
    %cst_156 = arith.constant dense<0.000000e+00> : vector<16xf32>
    %213 = vector.multi_reduction <add>, %209, %cst_156 [1] : vector<16x32xf32> to vector<16xf32>
    %214 = vector.shape_cast %213 : vector<16xf32> to vector<16x1xf32>
    %215 = arith.addf %156, %214 : vector<16x1xf32>
    %216 = arith.mulf %209, %209 : vector<16x32xf32>
    %cst_157 = arith.constant dense<0.000000e+00> : vector<16xf32>
    %217 = vector.multi_reduction <add>, %216, %cst_157 [1] : vector<16x32xf32> to vector<16xf32>
    %218 = vector.shape_cast %217 : vector<16xf32> to vector<16x1xf32>
    %219 = arith.addf %160, %218 : vector<16x1xf32>
    %cst_158 = arith.constant 0.000000e+00 : f32
    %220 = vector.broadcast %cst_158 : f32 to vector<16x32xf32>
    %c0_159 = arith.constant 0 : index
    %c0_160 = arith.constant 0 : index
    %c0_161 = arith.constant 0 : index
    %221 = vector.load %arg2[%c0_159, %c0_160, %c0_161] : memref<9x16x16xf32, #tpu.memory_space<vmem>>, vector<1x16x16xf32>
    %222 = vector.shape_cast %221 : vector<1x16x16xf32> to vector<16x16xf32>
    %223 = vector.extract_strided_slice %16 {offsets = [0, 0], sizes = [16, 32], strides = [1, 1]} : vector<16x34xf32> to vector<16x32xf32>
    %cst_162 = arith.constant dense<0.000000e+00> : vector<16x32xf32>
    %224 = tpu.matmul %222, %223, %cst_162 {dimension_numbers = #tpu.dot_dimension_numbers<[1], [0], [0], [1], [0, 0, 1, 1], [], []>} : vector<16x16xf32>, vector<16x32xf32>, vector<16x32xf32> -> vector<16x32xf32>
    %225 = arith.addf %220, %224 : vector<16x32xf32>
    %c1_163 = arith.constant 1 : index
    %c0_164 = arith.constant 0 : index
    %c0_165 = arith.constant 0 : index
    %226 = vector.load %arg2[%c1_163, %c0_164, %c0_165] : memref<9x16x16xf32, #tpu.memory_space<vmem>>, vector<1x16x16xf32>
    %227 = vector.shape_cast %226 : vector<1x16x16xf32> to vector<16x16xf32>
    %228 = vector.extract_strided_slice %16 {offsets = [0, 1], sizes = [16, 32], strides = [1, 1]} : vector<16x34xf32> to vector<16x32xf32>
    %cst_166 = arith.constant dense<0.000000e+00> : vector<16x32xf32>
    %229 = tpu.matmul %227, %228, %cst_166 {dimension_numbers = #tpu.dot_dimension_numbers<[1], [0], [0], [1], [0, 0, 1, 1], [], []>} : vector<16x16xf32>, vector<16x32xf32>, vector<16x32xf32> -> vector<16x32xf32>
    %230 = arith.addf %225, %229 : vector<16x32xf32>
    %c2_167 = arith.constant 2 : index
    %c0_168 = arith.constant 0 : index
    %c0_169 = arith.constant 0 : index
    %231 = vector.load %arg2[%c2_167, %c0_168, %c0_169] : memref<9x16x16xf32, #tpu.memory_space<vmem>>, vector<1x16x16xf32>
    %232 = vector.shape_cast %231 : vector<1x16x16xf32> to vector<16x16xf32>
    %233 = vector.extract_strided_slice %16 {offsets = [0, 2], sizes = [16, 32], strides = [1, 1]} : vector<16x34xf32> to vector<16x32xf32>
    %cst_170 = arith.constant dense<0.000000e+00> : vector<16x32xf32>
    %234 = tpu.matmul %232, %233, %cst_170 {dimension_numbers = #tpu.dot_dimension_numbers<[1], [0], [0], [1], [0, 0, 1, 1], [], []>} : vector<16x16xf32>, vector<16x32xf32>, vector<16x32xf32> -> vector<16x32xf32>
    %235 = arith.addf %230, %234 : vector<16x32xf32>
    %c3_171 = arith.constant 3 : index
    %c0_172 = arith.constant 0 : index
    %c0_173 = arith.constant 0 : index
    %236 = vector.load %arg2[%c3_171, %c0_172, %c0_173] : memref<9x16x16xf32, #tpu.memory_space<vmem>>, vector<1x16x16xf32>
    %237 = vector.shape_cast %236 : vector<1x16x16xf32> to vector<16x16xf32>
    %238 = vector.extract_strided_slice %20 {offsets = [0, 0], sizes = [16, 32], strides = [1, 1]} : vector<16x34xf32> to vector<16x32xf32>
    %cst_174 = arith.constant dense<0.000000e+00> : vector<16x32xf32>
    %239 = tpu.matmul %237, %238, %cst_174 {dimension_numbers = #tpu.dot_dimension_numbers<[1], [0], [0], [1], [0, 0, 1, 1], [], []>} : vector<16x16xf32>, vector<16x32xf32>, vector<16x32xf32> -> vector<16x32xf32>
    %240 = arith.addf %235, %239 : vector<16x32xf32>
    %c4_175 = arith.constant 4 : index
    %c0_176 = arith.constant 0 : index
    %c0_177 = arith.constant 0 : index
    %241 = vector.load %arg2[%c4_175, %c0_176, %c0_177] : memref<9x16x16xf32, #tpu.memory_space<vmem>>, vector<1x16x16xf32>
    %242 = vector.shape_cast %241 : vector<1x16x16xf32> to vector<16x16xf32>
    %243 = vector.extract_strided_slice %20 {offsets = [0, 1], sizes = [16, 32], strides = [1, 1]} : vector<16x34xf32> to vector<16x32xf32>
    %cst_178 = arith.constant dense<0.000000e+00> : vector<16x32xf32>
    %244 = tpu.matmul %242, %243, %cst_178 {dimension_numbers = #tpu.dot_dimension_numbers<[1], [0], [0], [1], [0, 0, 1, 1], [], []>} : vector<16x16xf32>, vector<16x32xf32>, vector<16x32xf32> -> vector<16x32xf32>
    %245 = arith.addf %240, %244 : vector<16x32xf32>
    %c5_179 = arith.constant 5 : index
    %c0_180 = arith.constant 0 : index
    %c0_181 = arith.constant 0 : index
    %246 = vector.load %arg2[%c5_179, %c0_180, %c0_181] : memref<9x16x16xf32, #tpu.memory_space<vmem>>, vector<1x16x16xf32>
    %247 = vector.shape_cast %246 : vector<1x16x16xf32> to vector<16x16xf32>
    %248 = vector.extract_strided_slice %20 {offsets = [0, 2], sizes = [16, 32], strides = [1, 1]} : vector<16x34xf32> to vector<16x32xf32>
    %cst_182 = arith.constant dense<0.000000e+00> : vector<16x32xf32>
    %249 = tpu.matmul %247, %248, %cst_182 {dimension_numbers = #tpu.dot_dimension_numbers<[1], [0], [0], [1], [0, 0, 1, 1], [], []>} : vector<16x16xf32>, vector<16x32xf32>, vector<16x32xf32> -> vector<16x32xf32>
    %250 = arith.addf %245, %249 : vector<16x32xf32>
    %c6_183 = arith.constant 6 : index
    %c0_184 = arith.constant 0 : index
    %c0_185 = arith.constant 0 : index
    %251 = vector.load %arg2[%c6_183, %c0_184, %c0_185] : memref<9x16x16xf32, #tpu.memory_space<vmem>>, vector<1x16x16xf32>
    %252 = vector.shape_cast %251 : vector<1x16x16xf32> to vector<16x16xf32>
    %253 = vector.extract_strided_slice %24 {offsets = [0, 0], sizes = [16, 32], strides = [1, 1]} : vector<16x34xf32> to vector<16x32xf32>
    %cst_186 = arith.constant dense<0.000000e+00> : vector<16x32xf32>
    %254 = tpu.matmul %252, %253, %cst_186 {dimension_numbers = #tpu.dot_dimension_numbers<[1], [0], [0], [1], [0, 0, 1, 1], [], []>} : vector<16x16xf32>, vector<16x32xf32>, vector<16x32xf32> -> vector<16x32xf32>
    %255 = arith.addf %250, %254 : vector<16x32xf32>
    %c7_187 = arith.constant 7 : index
    %c0_188 = arith.constant 0 : index
    %c0_189 = arith.constant 0 : index
    %256 = vector.load %arg2[%c7_187, %c0_188, %c0_189] : memref<9x16x16xf32, #tpu.memory_space<vmem>>, vector<1x16x16xf32>
    %257 = vector.shape_cast %256 : vector<1x16x16xf32> to vector<16x16xf32>
    %258 = vector.extract_strided_slice %24 {offsets = [0, 1], sizes = [16, 32], strides = [1, 1]} : vector<16x34xf32> to vector<16x32xf32>
    %cst_190 = arith.constant dense<0.000000e+00> : vector<16x32xf32>
    %259 = tpu.matmul %257, %258, %cst_190 {dimension_numbers = #tpu.dot_dimension_numbers<[1], [0], [0], [1], [0, 0, 1, 1], [], []>} : vector<16x16xf32>, vector<16x32xf32>, vector<16x32xf32> -> vector<16x32xf32>
    %260 = arith.addf %255, %259 : vector<16x32xf32>
    %c8_191 = arith.constant 8 : index
    %c0_192 = arith.constant 0 : index
    %c0_193 = arith.constant 0 : index
    %261 = vector.load %arg2[%c8_191, %c0_192, %c0_193] : memref<9x16x16xf32, #tpu.memory_space<vmem>>, vector<1x16x16xf32>
    %262 = vector.shape_cast %261 : vector<1x16x16xf32> to vector<16x16xf32>
    %263 = vector.extract_strided_slice %24 {offsets = [0, 2], sizes = [16, 32], strides = [1, 1]} : vector<16x34xf32> to vector<16x32xf32>
    %cst_194 = arith.constant dense<0.000000e+00> : vector<16x32xf32>
    %264 = tpu.matmul %262, %263, %cst_194 {dimension_numbers = #tpu.dot_dimension_numbers<[1], [0], [0], [1], [0, 0, 1, 1], [], []>} : vector<16x16xf32>, vector<16x32xf32>, vector<16x32xf32> -> vector<16x32xf32>
    %265 = arith.addf %260, %264 : vector<16x32xf32>
    %c0_195 = arith.constant 0 : index
    %c0_196 = arith.constant 0 : index
    %266 = vector.load %arg3[%c0_195, %c0_196] : memref<16x1xf32, #tpu.memory_space<vmem>>, vector<16x1xf32>
    %267 = vector.broadcast %266 : vector<16x1xf32> to vector<16x32xf32>
    %268 = arith.addf %265, %267 : vector<16x32xf32>
    %c0_197 = arith.constant 0 : index
    %c3_198 = arith.constant 3 : index
    %c0_199 = arith.constant 0 : index
    %c0_200 = arith.constant 0 : index
    %269 = vector.load %arg5[%c0_197, %c3_198, %c0_199, %c0_200] : memref<1x8x16x32xf32, #tpu.memory_space<vmem>>, vector<1x1x16x32xf32>
    %270 = vector.shape_cast %269 : vector<1x1x16x32xf32> to vector<16x32xf32>
    %271 = vector.shape_cast %268 : vector<16x32xf32> to vector<1x1x16x32xf32>
    tpu.vector_store %arg5[%c0_197, %c3_198, %c0_199, %c0_200], %271 {strides = array<i32>} : memref<1x8x16x32xf32, #tpu.memory_space<vmem>>, vector<1x1x16x32xf32>,
    %cst_201 = arith.constant dense<0.000000e+00> : vector<16xf32>
    %272 = vector.multi_reduction <add>, %268, %cst_201 [1] : vector<16x32xf32> to vector<16xf32>
    %273 = vector.shape_cast %272 : vector<16xf32> to vector<16x1xf32>
    %274 = arith.addf %215, %273 : vector<16x1xf32>
    %275 = arith.mulf %268, %268 : vector<16x32xf32>
    %cst_202 = arith.constant dense<0.000000e+00> : vector<16xf32>
    %276 = vector.multi_reduction <add>, %275, %cst_202 [1] : vector<16x32xf32> to vector<16xf32>
    %277 = vector.shape_cast %276 : vector<16xf32> to vector<16x1xf32>
    %278 = arith.addf %219, %277 : vector<16x1xf32>
    %cst_203 = arith.constant 0.000000e+00 : f32
    %279 = vector.broadcast %cst_203 : f32 to vector<16x32xf32>
    %c0_204 = arith.constant 0 : index
    %c0_205 = arith.constant 0 : index
    %c0_206 = arith.constant 0 : index
    %280 = vector.load %arg2[%c0_204, %c0_205, %c0_206] : memref<9x16x16xf32, #tpu.memory_space<vmem>>, vector<1x16x16xf32>
    %281 = vector.shape_cast %280 : vector<1x16x16xf32> to vector<16x16xf32>
    %282 = vector.extract_strided_slice %20 {offsets = [0, 0], sizes = [16, 32], strides = [1, 1]} : vector<16x34xf32> to vector<16x32xf32>
    %cst_207 = arith.constant dense<0.000000e+00> : vector<16x32xf32>
    %283 = tpu.matmul %281, %282, %cst_207 {dimension_numbers = #tpu.dot_dimension_numbers<[1], [0], [0], [1], [0, 0, 1, 1], [], []>} : vector<16x16xf32>, vector<16x32xf32>, vector<16x32xf32> -> vector<16x32xf32>
    %284 = arith.addf %279, %283 : vector<16x32xf32>
    %c1_208 = arith.constant 1 : index
    %c0_209 = arith.constant 0 : index
    %c0_210 = arith.constant 0 : index
    %285 = vector.load %arg2[%c1_208, %c0_209, %c0_210] : memref<9x16x16xf32, #tpu.memory_space<vmem>>, vector<1x16x16xf32>
    %286 = vector.shape_cast %285 : vector<1x16x16xf32> to vector<16x16xf32>
    %287 = vector.extract_strided_slice %20 {offsets = [0, 1], sizes = [16, 32], strides = [1, 1]} : vector<16x34xf32> to vector<16x32xf32>
    %cst_211 = arith.constant dense<0.000000e+00> : vector<16x32xf32>
    %288 = tpu.matmul %286, %287, %cst_211 {dimension_numbers = #tpu.dot_dimension_numbers<[1], [0], [0], [1], [0, 0, 1, 1], [], []>} : vector<16x16xf32>, vector<16x32xf32>, vector<16x32xf32> -> vector<16x32xf32>
    %289 = arith.addf %284, %288 : vector<16x32xf32>
    %c2_212 = arith.constant 2 : index
    %c0_213 = arith.constant 0 : index
    %c0_214 = arith.constant 0 : index
    %290 = vector.load %arg2[%c2_212, %c0_213, %c0_214] : memref<9x16x16xf32, #tpu.memory_space<vmem>>, vector<1x16x16xf32>
    %291 = vector.shape_cast %290 : vector<1x16x16xf32> to vector<16x16xf32>
    %292 = vector.extract_strided_slice %20 {offsets = [0, 2], sizes = [16, 32], strides = [1, 1]} : vector<16x34xf32> to vector<16x32xf32>
    %cst_215 = arith.constant dense<0.000000e+00> : vector<16x32xf32>
    %293 = tpu.matmul %291, %292, %cst_215 {dimension_numbers = #tpu.dot_dimension_numbers<[1], [0], [0], [1], [0, 0, 1, 1], [], []>} : vector<16x16xf32>, vector<16x32xf32>, vector<16x32xf32> -> vector<16x32xf32>
    %294 = arith.addf %289, %293 : vector<16x32xf32>
    %c3_216 = arith.constant 3 : index
    %c0_217 = arith.constant 0 : index
    %c0_218 = arith.constant 0 : index
    %295 = vector.load %arg2[%c3_216, %c0_217, %c0_218] : memref<9x16x16xf32, #tpu.memory_space<vmem>>, vector<1x16x16xf32>
    %296 = vector.shape_cast %295 : vector<1x16x16xf32> to vector<16x16xf32>
    %297 = vector.extract_strided_slice %24 {offsets = [0, 0], sizes = [16, 32], strides = [1, 1]} : vector<16x34xf32> to vector<16x32xf32>
    %cst_219 = arith.constant dense<0.000000e+00> : vector<16x32xf32>
    %298 = tpu.matmul %296, %297, %cst_219 {dimension_numbers = #tpu.dot_dimension_numbers<[1], [0], [0], [1], [0, 0, 1, 1], [], []>} : vector<16x16xf32>, vector<16x32xf32>, vector<16x32xf32> -> vector<16x32xf32>
    %299 = arith.addf %294, %298 : vector<16x32xf32>
    %c4_220 = arith.constant 4 : index
    %c0_221 = arith.constant 0 : index
    %c0_222 = arith.constant 0 : index
    %300 = vector.load %arg2[%c4_220, %c0_221, %c0_222] : memref<9x16x16xf32, #tpu.memory_space<vmem>>, vector<1x16x16xf32>
    %301 = vector.shape_cast %300 : vector<1x16x16xf32> to vector<16x16xf32>
    %302 = vector.extract_strided_slice %24 {offsets = [0, 1], sizes = [16, 32], strides = [1, 1]} : vector<16x34xf32> to vector<16x32xf32>
    %cst_223 = arith.constant dense<0.000000e+00> : vector<16x32xf32>
    %303 = tpu.matmul %301, %302, %cst_223 {dimension_numbers = #tpu.dot_dimension_numbers<[1], [0], [0], [1], [0, 0, 1, 1], [], []>} : vector<16x16xf32>, vector<16x32xf32>, vector<16x32xf32> -> vector<16x32xf32>
    %304 = arith.addf %299, %303 : vector<16x32xf32>
    %c5_224 = arith.constant 5 : index
    %c0_225 = arith.constant 0 : index
    %c0_226 = arith.constant 0 : index
    %305 = vector.load %arg2[%c5_224, %c0_225, %c0_226] : memref<9x16x16xf32, #tpu.memory_space<vmem>>, vector<1x16x16xf32>
    %306 = vector.shape_cast %305 : vector<1x16x16xf32> to vector<16x16xf32>
    %307 = vector.extract_strided_slice %24 {offsets = [0, 2], sizes = [16, 32], strides = [1, 1]} : vector<16x34xf32> to vector<16x32xf32>
    %cst_227 = arith.constant dense<0.000000e+00> : vector<16x32xf32>
    %308 = tpu.matmul %306, %307, %cst_227 {dimension_numbers = #tpu.dot_dimension_numbers<[1], [0], [0], [1], [0, 0, 1, 1], [], []>} : vector<16x16xf32>, vector<16x32xf32>, vector<16x32xf32> -> vector<16x32xf32>
    %309 = arith.addf %304, %308 : vector<16x32xf32>
    %c6_228 = arith.constant 6 : index
    %c0_229 = arith.constant 0 : index
    %c0_230 = arith.constant 0 : index
    %310 = vector.load %arg2[%c6_228, %c0_229, %c0_230] : memref<9x16x16xf32, #tpu.memory_space<vmem>>, vector<1x16x16xf32>
    %311 = vector.shape_cast %310 : vector<1x16x16xf32> to vector<16x16xf32>
    %312 = vector.extract_strided_slice %28 {offsets = [0, 0], sizes = [16, 32], strides = [1, 1]} : vector<16x34xf32> to vector<16x32xf32>
    %cst_231 = arith.constant dense<0.000000e+00> : vector<16x32xf32>
    %313 = tpu.matmul %311, %312, %cst_231 {dimension_numbers = #tpu.dot_dimension_numbers<[1], [0], [0], [1], [0, 0, 1, 1], [], []>} : vector<16x16xf32>, vector<16x32xf32>, vector<16x32xf32> -> vector<16x32xf32>
    %314 = arith.addf %309, %313 : vector<16x32xf32>
    %c7_232 = arith.constant 7 : index
    %c0_233 = arith.constant 0 : index
    %c0_234 = arith.constant 0 : index
    %315 = vector.load %arg2[%c7_232, %c0_233, %c0_234] : memref<9x16x16xf32, #tpu.memory_space<vmem>>, vector<1x16x16xf32>
    %316 = vector.shape_cast %315 : vector<1x16x16xf32> to vector<16x16xf32>
    %317 = vector.extract_strided_slice %28 {offsets = [0, 1], sizes = [16, 32], strides = [1, 1]} : vector<16x34xf32> to vector<16x32xf32>
    %cst_235 = arith.constant dense<0.000000e+00> : vector<16x32xf32>
    %318 = tpu.matmul %316, %317, %cst_235 {dimension_numbers = #tpu.dot_dimension_numbers<[1], [0], [0], [1], [0, 0, 1, 1], [], []>} : vector<16x16xf32>, vector<16x32xf32>, vector<16x32xf32> -> vector<16x32xf32>
    %319 = arith.addf %314, %318 : vector<16x32xf32>
    %c8_236 = arith.constant 8 : index
    %c0_237 = arith.constant 0 : index
    %c0_238 = arith.constant 0 : index
    %320 = vector.load %arg2[%c8_236, %c0_237, %c0_238] : memref<9x16x16xf32, #tpu.memory_space<vmem>>, vector<1x16x16xf32>
    %321 = vector.shape_cast %320 : vector<1x16x16xf32> to vector<16x16xf32>
    %322 = vector.extract_strided_slice %28 {offsets = [0, 2], sizes = [16, 32], strides = [1, 1]} : vector<16x34xf32> to vector<16x32xf32>
    %cst_239 = arith.constant dense<0.000000e+00> : vector<16x32xf32>
    %323 = tpu.matmul %321, %322, %cst_239 {dimension_numbers = #tpu.dot_dimension_numbers<[1], [0], [0], [1], [0, 0, 1, 1], [], []>} : vector<16x16xf32>, vector<16x32xf32>, vector<16x32xf32> -> vector<16x32xf32>
    %324 = arith.addf %319, %323 : vector<16x32xf32>
    %c0_240 = arith.constant 0 : index
    %c0_241 = arith.constant 0 : index
    %325 = vector.load %arg3[%c0_240, %c0_241] : memref<16x1xf32, #tpu.memory_space<vmem>>, vector<16x1xf32>
    %326 = vector.broadcast %325 : vector<16x1xf32> to vector<16x32xf32>
    %327 = arith.addf %324, %326 : vector<16x32xf32>
    %c0_242 = arith.constant 0 : index
    %c4_243 = arith.constant 4 : index
    %c0_244 = arith.constant 0 : index
    %c0_245 = arith.constant 0 : index
    %328 = vector.load %arg5[%c0_242, %c4_243, %c0_244, %c0_245] : memref<1x8x16x32xf32, #tpu.memory_space<vmem>>, vector<1x1x16x32xf32>
    %329 = vector.shape_cast %328 : vector<1x1x16x32xf32> to vector<16x32xf32>
    %330 = vector.shape_cast %327 : vector<16x32xf32> to vector<1x1x16x32xf32>
    tpu.vector_store %arg5[%c0_242, %c4_243, %c0_244, %c0_245], %330 {strides = array<i32>} : memref<1x8x16x32xf32, #tpu.memory_space<vmem>>, vector<1x1x16x32xf32>,
    %cst_246 = arith.constant dense<0.000000e+00> : vector<16xf32>
    %331 = vector.multi_reduction <add>, %327, %cst_246 [1] : vector<16x32xf32> to vector<16xf32>
    %332 = vector.shape_cast %331 : vector<16xf32> to vector<16x1xf32>
    %333 = arith.addf %274, %332 : vector<16x1xf32>
    %334 = arith.mulf %327, %327 : vector<16x32xf32>
    %cst_247 = arith.constant dense<0.000000e+00> : vector<16xf32>
    %335 = vector.multi_reduction <add>, %334, %cst_247 [1] : vector<16x32xf32> to vector<16xf32>
    %336 = vector.shape_cast %335 : vector<16xf32> to vector<16x1xf32>
    %337 = arith.addf %278, %336 : vector<16x1xf32>
    %cst_248 = arith.constant 0.000000e+00 : f32
    %338 = vector.broadcast %cst_248 : f32 to vector<16x32xf32>
    %c0_249 = arith.constant 0 : index
    %c0_250 = arith.constant 0 : index
    %c0_251 = arith.constant 0 : index
    %339 = vector.load %arg2[%c0_249, %c0_250, %c0_251] : memref<9x16x16xf32, #tpu.memory_space<vmem>>, vector<1x16x16xf32>
    %340 = vector.shape_cast %339 : vector<1x16x16xf32> to vector<16x16xf32>
    %341 = vector.extract_strided_slice %24 {offsets = [0, 0], sizes = [16, 32], strides = [1, 1]} : vector<16x34xf32> to vector<16x32xf32>
    %cst_252 = arith.constant dense<0.000000e+00> : vector<16x32xf32>
    %342 = tpu.matmul %340, %341, %cst_252 {dimension_numbers = #tpu.dot_dimension_numbers<[1], [0], [0], [1], [0, 0, 1, 1], [], []>} : vector<16x16xf32>, vector<16x32xf32>, vector<16x32xf32> -> vector<16x32xf32>
    %343 = arith.addf %338, %342 : vector<16x32xf32>
    %c1_253 = arith.constant 1 : index
    %c0_254 = arith.constant 0 : index
    %c0_255 = arith.constant 0 : index
    %344 = vector.load %arg2[%c1_253, %c0_254, %c0_255] : memref<9x16x16xf32, #tpu.memory_space<vmem>>, vector<1x16x16xf32>
    %345 = vector.shape_cast %344 : vector<1x16x16xf32> to vector<16x16xf32>
    %346 = vector.extract_strided_slice %24 {offsets = [0, 1], sizes = [16, 32], strides = [1, 1]} : vector<16x34xf32> to vector<16x32xf32>
    %cst_256 = arith.constant dense<0.000000e+00> : vector<16x32xf32>
    %347 = tpu.matmul %345, %346, %cst_256 {dimension_numbers = #tpu.dot_dimension_numbers<[1], [0], [0], [1], [0, 0, 1, 1], [], []>} : vector<16x16xf32>, vector<16x32xf32>, vector<16x32xf32> -> vector<16x32xf32>
    %348 = arith.addf %343, %347 : vector<16x32xf32>
    %c2_257 = arith.constant 2 : index
    %c0_258 = arith.constant 0 : index
    %c0_259 = arith.constant 0 : index
    %349 = vector.load %arg2[%c2_257, %c0_258, %c0_259] : memref<9x16x16xf32, #tpu.memory_space<vmem>>, vector<1x16x16xf32>
    %350 = vector.shape_cast %349 : vector<1x16x16xf32> to vector<16x16xf32>
    %351 = vector.extract_strided_slice %24 {offsets = [0, 2], sizes = [16, 32], strides = [1, 1]} : vector<16x34xf32> to vector<16x32xf32>
    %cst_260 = arith.constant dense<0.000000e+00> : vector<16x32xf32>
    %352 = tpu.matmul %350, %351, %cst_260 {dimension_numbers = #tpu.dot_dimension_numbers<[1], [0], [0], [1], [0, 0, 1, 1], [], []>} : vector<16x16xf32>, vector<16x32xf32>, vector<16x32xf32> -> vector<16x32xf32>
    %353 = arith.addf %348, %352 : vector<16x32xf32>
    %c3_261 = arith.constant 3 : index
    %c0_262 = arith.constant 0 : index
    %c0_263 = arith.constant 0 : index
    %354 = vector.load %arg2[%c3_261, %c0_262, %c0_263] : memref<9x16x16xf32, #tpu.memory_space<vmem>>, vector<1x16x16xf32>
    %355 = vector.shape_cast %354 : vector<1x16x16xf32> to vector<16x16xf32>
    %356 = vector.extract_strided_slice %28 {offsets = [0, 0], sizes = [16, 32], strides = [1, 1]} : vector<16x34xf32> to vector<16x32xf32>
    %cst_264 = arith.constant dense<0.000000e+00> : vector<16x32xf32>
    %357 = tpu.matmul %355, %356, %cst_264 {dimension_numbers = #tpu.dot_dimension_numbers<[1], [0], [0], [1], [0, 0, 1, 1], [], []>} : vector<16x16xf32>, vector<16x32xf32>, vector<16x32xf32> -> vector<16x32xf32>
    %358 = arith.addf %353, %357 : vector<16x32xf32>
    %c4_265 = arith.constant 4 : index
    %c0_266 = arith.constant 0 : index
    %c0_267 = arith.constant 0 : index
    %359 = vector.load %arg2[%c4_265, %c0_266, %c0_267] : memref<9x16x16xf32, #tpu.memory_space<vmem>>, vector<1x16x16xf32>
    %360 = vector.shape_cast %359 : vector<1x16x16xf32> to vector<16x16xf32>
    %361 = vector.extract_strided_slice %28 {offsets = [0, 1], sizes = [16, 32], strides = [1, 1]} : vector<16x34xf32> to vector<16x32xf32>
    %cst_268 = arith.constant dense<0.000000e+00> : vector<16x32xf32>
    %362 = tpu.matmul %360, %361, %cst_268 {dimension_numbers = #tpu.dot_dimension_numbers<[1], [0], [0], [1], [0, 0, 1, 1], [], []>} : vector<16x16xf32>, vector<16x32xf32>, vector<16x32xf32> -> vector<16x32xf32>
    %363 = arith.addf %358, %362 : vector<16x32xf32>
    %c5_269 = arith.constant 5 : index
    %c0_270 = arith.constant 0 : index
    %c0_271 = arith.constant 0 : index
    %364 = vector.load %arg2[%c5_269, %c0_270, %c0_271] : memref<9x16x16xf32, #tpu.memory_space<vmem>>, vector<1x16x16xf32>
    %365 = vector.shape_cast %364 : vector<1x16x16xf32> to vector<16x16xf32>
    %366 = vector.extract_strided_slice %28 {offsets = [0, 2], sizes = [16, 32], strides = [1, 1]} : vector<16x34xf32> to vector<16x32xf32>
    %cst_272 = arith.constant dense<0.000000e+00> : vector<16x32xf32>
    %367 = tpu.matmul %365, %366, %cst_272 {dimension_numbers = #tpu.dot_dimension_numbers<[1], [0], [0], [1], [0, 0, 1, 1], [], []>} : vector<16x16xf32>, vector<16x32xf32>, vector<16x32xf32> -> vector<16x32xf32>
    %368 = arith.addf %363, %367 : vector<16x32xf32>
    %c6_273 = arith.constant 6 : index
    %c0_274 = arith.constant 0 : index
    %c0_275 = arith.constant 0 : index
    %369 = vector.load %arg2[%c6_273, %c0_274, %c0_275] : memref<9x16x16xf32, #tpu.memory_space<vmem>>, vector<1x16x16xf32>
    %370 = vector.shape_cast %369 : vector<1x16x16xf32> to vector<16x16xf32>
    %371 = vector.extract_strided_slice %32 {offsets = [0, 0], sizes = [16, 32], strides = [1, 1]} : vector<16x34xf32> to vector<16x32xf32>
    %cst_276 = arith.constant dense<0.000000e+00> : vector<16x32xf32>
    %372 = tpu.matmul %370, %371, %cst_276 {dimension_numbers = #tpu.dot_dimension_numbers<[1], [0], [0], [1], [0, 0, 1, 1], [], []>} : vector<16x16xf32>, vector<16x32xf32>, vector<16x32xf32> -> vector<16x32xf32>
    %373 = arith.addf %368, %372 : vector<16x32xf32>
    %c7_277 = arith.constant 7 : index
    %c0_278 = arith.constant 0 : index
    %c0_279 = arith.constant 0 : index
    %374 = vector.load %arg2[%c7_277, %c0_278, %c0_279] : memref<9x16x16xf32, #tpu.memory_space<vmem>>, vector<1x16x16xf32>
    %375 = vector.shape_cast %374 : vector<1x16x16xf32> to vector<16x16xf32>
    %376 = vector.extract_strided_slice %32 {offsets = [0, 1], sizes = [16, 32], strides = [1, 1]} : vector<16x34xf32> to vector<16x32xf32>
    %cst_280 = arith.constant dense<0.000000e+00> : vector<16x32xf32>
    %377 = tpu.matmul %375, %376, %cst_280 {dimension_numbers = #tpu.dot_dimension_numbers<[1], [0], [0], [1], [0, 0, 1, 1], [], []>} : vector<16x16xf32>, vector<16x32xf32>, vector<16x32xf32> -> vector<16x32xf32>
    %378 = arith.addf %373, %377 : vector<16x32xf32>
    %c8_281 = arith.constant 8 : index
    %c0_282 = arith.constant 0 : index
    %c0_283 = arith.constant 0 : index
    %379 = vector.load %arg2[%c8_281, %c0_282, %c0_283] : memref<9x16x16xf32, #tpu.memory_space<vmem>>, vector<1x16x16xf32>
    %380 = vector.shape_cast %379 : vector<1x16x16xf32> to vector<16x16xf32>
    %381 = vector.extract_strided_slice %32 {offsets = [0, 2], sizes = [16, 32], strides = [1, 1]} : vector<16x34xf32> to vector<16x32xf32>
    %cst_284 = arith.constant dense<0.000000e+00> : vector<16x32xf32>
    %382 = tpu.matmul %380, %381, %cst_284 {dimension_numbers = #tpu.dot_dimension_numbers<[1], [0], [0], [1], [0, 0, 1, 1], [], []>} : vector<16x16xf32>, vector<16x32xf32>, vector<16x32xf32> -> vector<16x32xf32>
    %383 = arith.addf %378, %382 : vector<16x32xf32>
    %c0_285 = arith.constant 0 : index
    %c0_286 = arith.constant 0 : index
    %384 = vector.load %arg3[%c0_285, %c0_286] : memref<16x1xf32, #tpu.memory_space<vmem>>, vector<16x1xf32>
    %385 = vector.broadcast %384 : vector<16x1xf32> to vector<16x32xf32>
    %386 = arith.addf %383, %385 : vector<16x32xf32>
    %c0_287 = arith.constant 0 : index
    %c5_288 = arith.constant 5 : index
    %c0_289 = arith.constant 0 : index
    %c0_290 = arith.constant 0 : index
    %387 = vector.load %arg5[%c0_287, %c5_288, %c0_289, %c0_290] : memref<1x8x16x32xf32, #tpu.memory_space<vmem>>, vector<1x1x16x32xf32>
    %388 = vector.shape_cast %387 : vector<1x1x16x32xf32> to vector<16x32xf32>
    %389 = vector.shape_cast %386 : vector<16x32xf32> to vector<1x1x16x32xf32>
    tpu.vector_store %arg5[%c0_287, %c5_288, %c0_289, %c0_290], %389 {strides = array<i32>} : memref<1x8x16x32xf32, #tpu.memory_space<vmem>>, vector<1x1x16x32xf32>,
    %cst_291 = arith.constant dense<0.000000e+00> : vector<16xf32>
    %390 = vector.multi_reduction <add>, %386, %cst_291 [1] : vector<16x32xf32> to vector<16xf32>
    %391 = vector.shape_cast %390 : vector<16xf32> to vector<16x1xf32>
    %392 = arith.addf %333, %391 : vector<16x1xf32>
    %393 = arith.mulf %386, %386 : vector<16x32xf32>
    %cst_292 = arith.constant dense<0.000000e+00> : vector<16xf32>
    %394 = vector.multi_reduction <add>, %393, %cst_292 [1] : vector<16x32xf32> to vector<16xf32>
    %395 = vector.shape_cast %394 : vector<16xf32> to vector<16x1xf32>
    %396 = arith.addf %337, %395 : vector<16x1xf32>
    %cst_293 = arith.constant 0.000000e+00 : f32
    %397 = vector.broadcast %cst_293 : f32 to vector<16x32xf32>
    %c0_294 = arith.constant 0 : index
    %c0_295 = arith.constant 0 : index
    %c0_296 = arith.constant 0 : index
    %398 = vector.load %arg2[%c0_294, %c0_295, %c0_296] : memref<9x16x16xf32, #tpu.memory_space<vmem>>, vector<1x16x16xf32>
    %399 = vector.shape_cast %398 : vector<1x16x16xf32> to vector<16x16xf32>
    %400 = vector.extract_strided_slice %28 {offsets = [0, 0], sizes = [16, 32], strides = [1, 1]} : vector<16x34xf32> to vector<16x32xf32>
    %cst_297 = arith.constant dense<0.000000e+00> : vector<16x32xf32>
    %401 = tpu.matmul %399, %400, %cst_297 {dimension_numbers = #tpu.dot_dimension_numbers<[1], [0], [0], [1], [0, 0, 1, 1], [], []>} : vector<16x16xf32>, vector<16x32xf32>, vector<16x32xf32> -> vector<16x32xf32>
    %402 = arith.addf %397, %401 : vector<16x32xf32>
    %c1_298 = arith.constant 1 : index
    %c0_299 = arith.constant 0 : index
    %c0_300 = arith.constant 0 : index
    %403 = vector.load %arg2[%c1_298, %c0_299, %c0_300] : memref<9x16x16xf32, #tpu.memory_space<vmem>>, vector<1x16x16xf32>
    %404 = vector.shape_cast %403 : vector<1x16x16xf32> to vector<16x16xf32>
    %405 = vector.extract_strided_slice %28 {offsets = [0, 1], sizes = [16, 32], strides = [1, 1]} : vector<16x34xf32> to vector<16x32xf32>
    %cst_301 = arith.constant dense<0.000000e+00> : vector<16x32xf32>
    %406 = tpu.matmul %404, %405, %cst_301 {dimension_numbers = #tpu.dot_dimension_numbers<[1], [0], [0], [1], [0, 0, 1, 1], [], []>} : vector<16x16xf32>, vector<16x32xf32>, vector<16x32xf32> -> vector<16x32xf32>
    %407 = arith.addf %402, %406 : vector<16x32xf32>
    %c2_302 = arith.constant 2 : index
    %c0_303 = arith.constant 0 : index
    %c0_304 = arith.constant 0 : index
    %408 = vector.load %arg2[%c2_302, %c0_303, %c0_304] : memref<9x16x16xf32, #tpu.memory_space<vmem>>, vector<1x16x16xf32>
    %409 = vector.shape_cast %408 : vector<1x16x16xf32> to vector<16x16xf32>
    %410 = vector.extract_strided_slice %28 {offsets = [0, 2], sizes = [16, 32], strides = [1, 1]} : vector<16x34xf32> to vector<16x32xf32>
    %cst_305 = arith.constant dense<0.000000e+00> : vector<16x32xf32>
    %411 = tpu.matmul %409, %410, %cst_305 {dimension_numbers = #tpu.dot_dimension_numbers<[1], [0], [0], [1], [0, 0, 1, 1], [], []>} : vector<16x16xf32>, vector<16x32xf32>, vector<16x32xf32> -> vector<16x32xf32>
    %412 = arith.addf %407, %411 : vector<16x32xf32>
    %c3_306 = arith.constant 3 : index
    %c0_307 = arith.constant 0 : index
    %c0_308 = arith.constant 0 : index
    %413 = vector.load %arg2[%c3_306, %c0_307, %c0_308] : memref<9x16x16xf32, #tpu.memory_space<vmem>>, vector<1x16x16xf32>
    %414 = vector.shape_cast %413 : vector<1x16x16xf32> to vector<16x16xf32>
    %415 = vector.extract_strided_slice %32 {offsets = [0, 0], sizes = [16, 32], strides = [1, 1]} : vector<16x34xf32> to vector<16x32xf32>
    %cst_309 = arith.constant dense<0.000000e+00> : vector<16x32xf32>
    %416 = tpu.matmul %414, %415, %cst_309 {dimension_numbers = #tpu.dot_dimension_numbers<[1], [0], [0], [1], [0, 0, 1, 1], [], []>} : vector<16x16xf32>, vector<16x32xf32>, vector<16x32xf32> -> vector<16x32xf32>
    %417 = arith.addf %412, %416 : vector<16x32xf32>
    %c4_310 = arith.constant 4 : index
    %c0_311 = arith.constant 0 : index
    %c0_312 = arith.constant 0 : index
    %418 = vector.load %arg2[%c4_310, %c0_311, %c0_312] : memref<9x16x16xf32, #tpu.memory_space<vmem>>, vector<1x16x16xf32>
    %419 = vector.shape_cast %418 : vector<1x16x16xf32> to vector<16x16xf32>
    %420 = vector.extract_strided_slice %32 {offsets = [0, 1], sizes = [16, 32], strides = [1, 1]} : vector<16x34xf32> to vector<16x32xf32>
    %cst_313 = arith.constant dense<0.000000e+00> : vector<16x32xf32>
    %421 = tpu.matmul %419, %420, %cst_313 {dimension_numbers = #tpu.dot_dimension_numbers<[1], [0], [0], [1], [0, 0, 1, 1], [], []>} : vector<16x16xf32>, vector<16x32xf32>, vector<16x32xf32> -> vector<16x32xf32>
    %422 = arith.addf %417, %421 : vector<16x32xf32>
    %c5_314 = arith.constant 5 : index
    %c0_315 = arith.constant 0 : index
    %c0_316 = arith.constant 0 : index
    %423 = vector.load %arg2[%c5_314, %c0_315, %c0_316] : memref<9x16x16xf32, #tpu.memory_space<vmem>>, vector<1x16x16xf32>
    %424 = vector.shape_cast %423 : vector<1x16x16xf32> to vector<16x16xf32>
    %425 = vector.extract_strided_slice %32 {offsets = [0, 2], sizes = [16, 32], strides = [1, 1]} : vector<16x34xf32> to vector<16x32xf32>
    %cst_317 = arith.constant dense<0.000000e+00> : vector<16x32xf32>
    %426 = tpu.matmul %424, %425, %cst_317 {dimension_numbers = #tpu.dot_dimension_numbers<[1], [0], [0], [1], [0, 0, 1, 1], [], []>} : vector<16x16xf32>, vector<16x32xf32>, vector<16x32xf32> -> vector<16x32xf32>
    %427 = arith.addf %422, %426 : vector<16x32xf32>
    %c6_318 = arith.constant 6 : index
    %c0_319 = arith.constant 0 : index
    %c0_320 = arith.constant 0 : index
    %428 = vector.load %arg2[%c6_318, %c0_319, %c0_320] : memref<9x16x16xf32, #tpu.memory_space<vmem>>, vector<1x16x16xf32>
    %429 = vector.shape_cast %428 : vector<1x16x16xf32> to vector<16x16xf32>
    %430 = vector.extract_strided_slice %36 {offsets = [0, 0], sizes = [16, 32], strides = [1, 1]} : vector<16x34xf32> to vector<16x32xf32>
    %cst_321 = arith.constant dense<0.000000e+00> : vector<16x32xf32>
    %431 = tpu.matmul %429, %430, %cst_321 {dimension_numbers = #tpu.dot_dimension_numbers<[1], [0], [0], [1], [0, 0, 1, 1], [], []>} : vector<16x16xf32>, vector<16x32xf32>, vector<16x32xf32> -> vector<16x32xf32>
    %432 = arith.addf %427, %431 : vector<16x32xf32>
    %c7_322 = arith.constant 7 : index
    %c0_323 = arith.constant 0 : index
    %c0_324 = arith.constant 0 : index
    %433 = vector.load %arg2[%c7_322, %c0_323, %c0_324] : memref<9x16x16xf32, #tpu.memory_space<vmem>>, vector<1x16x16xf32>
    %434 = vector.shape_cast %433 : vector<1x16x16xf32> to vector<16x16xf32>
    %435 = vector.extract_strided_slice %36 {offsets = [0, 1], sizes = [16, 32], strides = [1, 1]} : vector<16x34xf32> to vector<16x32xf32>
    %cst_325 = arith.constant dense<0.000000e+00> : vector<16x32xf32>
    %436 = tpu.matmul %434, %435, %cst_325 {dimension_numbers = #tpu.dot_dimension_numbers<[1], [0], [0], [1], [0, 0, 1, 1], [], []>} : vector<16x16xf32>, vector<16x32xf32>, vector<16x32xf32> -> vector<16x32xf32>
    %437 = arith.addf %432, %436 : vector<16x32xf32>
    %c8_326 = arith.constant 8 : index
    %c0_327 = arith.constant 0 : index
    %c0_328 = arith.constant 0 : index
    %438 = vector.load %arg2[%c8_326, %c0_327, %c0_328] : memref<9x16x16xf32, #tpu.memory_space<vmem>>, vector<1x16x16xf32>
    %439 = vector.shape_cast %438 : vector<1x16x16xf32> to vector<16x16xf32>
    %440 = vector.extract_strided_slice %36 {offsets = [0, 2], sizes = [16, 32], strides = [1, 1]} : vector<16x34xf32> to vector<16x32xf32>
    %cst_329 = arith.constant dense<0.000000e+00> : vector<16x32xf32>
    %441 = tpu.matmul %439, %440, %cst_329 {dimension_numbers = #tpu.dot_dimension_numbers<[1], [0], [0], [1], [0, 0, 1, 1], [], []>} : vector<16x16xf32>, vector<16x32xf32>, vector<16x32xf32> -> vector<16x32xf32>
    %442 = arith.addf %437, %441 : vector<16x32xf32>
    %c0_330 = arith.constant 0 : index
    %c0_331 = arith.constant 0 : index
    %443 = vector.load %arg3[%c0_330, %c0_331] : memref<16x1xf32, #tpu.memory_space<vmem>>, vector<16x1xf32>
    %444 = vector.broadcast %443 : vector<16x1xf32> to vector<16x32xf32>
    %445 = arith.addf %442, %444 : vector<16x32xf32>
    %c0_332 = arith.constant 0 : index
    %c6_333 = arith.constant 6 : index
    %c0_334 = arith.constant 0 : index
    %c0_335 = arith.constant 0 : index
    %446 = vector.load %arg5[%c0_332, %c6_333, %c0_334, %c0_335] : memref<1x8x16x32xf32, #tpu.memory_space<vmem>>, vector<1x1x16x32xf32>
    %447 = vector.shape_cast %446 : vector<1x1x16x32xf32> to vector<16x32xf32>
    %448 = vector.shape_cast %445 : vector<16x32xf32> to vector<1x1x16x32xf32>
    tpu.vector_store %arg5[%c0_332, %c6_333, %c0_334, %c0_335], %448 {strides = array<i32>} : memref<1x8x16x32xf32, #tpu.memory_space<vmem>>, vector<1x1x16x32xf32>,
    %cst_336 = arith.constant dense<0.000000e+00> : vector<16xf32>
    %449 = vector.multi_reduction <add>, %445, %cst_336 [1] : vector<16x32xf32> to vector<16xf32>
    %450 = vector.shape_cast %449 : vector<16xf32> to vector<16x1xf32>
    %451 = arith.addf %392, %450 : vector<16x1xf32>
    %452 = arith.mulf %445, %445 : vector<16x32xf32>
    %cst_337 = arith.constant dense<0.000000e+00> : vector<16xf32>
    %453 = vector.multi_reduction <add>, %452, %cst_337 [1] : vector<16x32xf32> to vector<16xf32>
    %454 = vector.shape_cast %453 : vector<16xf32> to vector<16x1xf32>
    %455 = arith.addf %396, %454 : vector<16x1xf32>
    %cst_338 = arith.constant 0.000000e+00 : f32
    %456 = vector.broadcast %cst_338 : f32 to vector<16x32xf32>
    %c0_339 = arith.constant 0 : index
    %c0_340 = arith.constant 0 : index
    %c0_341 = arith.constant 0 : index
    %457 = vector.load %arg2[%c0_339, %c0_340, %c0_341] : memref<9x16x16xf32, #tpu.memory_space<vmem>>, vector<1x16x16xf32>
    %458 = vector.shape_cast %457 : vector<1x16x16xf32> to vector<16x16xf32>
    %459 = vector.extract_strided_slice %32 {offsets = [0, 0], sizes = [16, 32], strides = [1, 1]} : vector<16x34xf32> to vector<16x32xf32>
    %cst_342 = arith.constant dense<0.000000e+00> : vector<16x32xf32>
    %460 = tpu.matmul %458, %459, %cst_342 {dimension_numbers = #tpu.dot_dimension_numbers<[1], [0], [0], [1], [0, 0, 1, 1], [], []>} : vector<16x16xf32>, vector<16x32xf32>, vector<16x32xf32> -> vector<16x32xf32>
    %461 = arith.addf %456, %460 : vector<16x32xf32>
    %c1_343 = arith.constant 1 : index
    %c0_344 = arith.constant 0 : index
    %c0_345 = arith.constant 0 : index
    %462 = vector.load %arg2[%c1_343, %c0_344, %c0_345] : memref<9x16x16xf32, #tpu.memory_space<vmem>>, vector<1x16x16xf32>
    %463 = vector.shape_cast %462 : vector<1x16x16xf32> to vector<16x16xf32>
    %464 = vector.extract_strided_slice %32 {offsets = [0, 1], sizes = [16, 32], strides = [1, 1]} : vector<16x34xf32> to vector<16x32xf32>
    %cst_346 = arith.constant dense<0.000000e+00> : vector<16x32xf32>
    %465 = tpu.matmul %463, %464, %cst_346 {dimension_numbers = #tpu.dot_dimension_numbers<[1], [0], [0], [1], [0, 0, 1, 1], [], []>} : vector<16x16xf32>, vector<16x32xf32>, vector<16x32xf32> -> vector<16x32xf32>
    %466 = arith.addf %461, %465 : vector<16x32xf32>
    %c2_347 = arith.constant 2 : index
    %c0_348 = arith.constant 0 : index
    %c0_349 = arith.constant 0 : index
    %467 = vector.load %arg2[%c2_347, %c0_348, %c0_349] : memref<9x16x16xf32, #tpu.memory_space<vmem>>, vector<1x16x16xf32>
    %468 = vector.shape_cast %467 : vector<1x16x16xf32> to vector<16x16xf32>
    %469 = vector.extract_strided_slice %32 {offsets = [0, 2], sizes = [16, 32], strides = [1, 1]} : vector<16x34xf32> to vector<16x32xf32>
    %cst_350 = arith.constant dense<0.000000e+00> : vector<16x32xf32>
    %470 = tpu.matmul %468, %469, %cst_350 {dimension_numbers = #tpu.dot_dimension_numbers<[1], [0], [0], [1], [0, 0, 1, 1], [], []>} : vector<16x16xf32>, vector<16x32xf32>, vector<16x32xf32> -> vector<16x32xf32>
    %471 = arith.addf %466, %470 : vector<16x32xf32>
    %c3_351 = arith.constant 3 : index
    %c0_352 = arith.constant 0 : index
    %c0_353 = arith.constant 0 : index
    %472 = vector.load %arg2[%c3_351, %c0_352, %c0_353] : memref<9x16x16xf32, #tpu.memory_space<vmem>>, vector<1x16x16xf32>
    %473 = vector.shape_cast %472 : vector<1x16x16xf32> to vector<16x16xf32>
    %474 = vector.extract_strided_slice %36 {offsets = [0, 0], sizes = [16, 32], strides = [1, 1]} : vector<16x34xf32> to vector<16x32xf32>
    %cst_354 = arith.constant dense<0.000000e+00> : vector<16x32xf32>
    %475 = tpu.matmul %473, %474, %cst_354 {dimension_numbers = #tpu.dot_dimension_numbers<[1], [0], [0], [1], [0, 0, 1, 1], [], []>} : vector<16x16xf32>, vector<16x32xf32>, vector<16x32xf32> -> vector<16x32xf32>
    %476 = arith.addf %471, %475 : vector<16x32xf32>
    %c4_355 = arith.constant 4 : index
    %c0_356 = arith.constant 0 : index
    %c0_357 = arith.constant 0 : index
    %477 = vector.load %arg2[%c4_355, %c0_356, %c0_357] : memref<9x16x16xf32, #tpu.memory_space<vmem>>, vector<1x16x16xf32>
    %478 = vector.shape_cast %477 : vector<1x16x16xf32> to vector<16x16xf32>
    %479 = vector.extract_strided_slice %36 {offsets = [0, 1], sizes = [16, 32], strides = [1, 1]} : vector<16x34xf32> to vector<16x32xf32>
    %cst_358 = arith.constant dense<0.000000e+00> : vector<16x32xf32>
    %480 = tpu.matmul %478, %479, %cst_358 {dimension_numbers = #tpu.dot_dimension_numbers<[1], [0], [0], [1], [0, 0, 1, 1], [], []>} : vector<16x16xf32>, vector<16x32xf32>, vector<16x32xf32> -> vector<16x32xf32>
    %481 = arith.addf %476, %480 : vector<16x32xf32>
    %c5_359 = arith.constant 5 : index
    %c0_360 = arith.constant 0 : index
    %c0_361 = arith.constant 0 : index
    %482 = vector.load %arg2[%c5_359, %c0_360, %c0_361] : memref<9x16x16xf32, #tpu.memory_space<vmem>>, vector<1x16x16xf32>
    %483 = vector.shape_cast %482 : vector<1x16x16xf32> to vector<16x16xf32>
    %484 = vector.extract_strided_slice %36 {offsets = [0, 2], sizes = [16, 32], strides = [1, 1]} : vector<16x34xf32> to vector<16x32xf32>
    %cst_362 = arith.constant dense<0.000000e+00> : vector<16x32xf32>
    %485 = tpu.matmul %483, %484, %cst_362 {dimension_numbers = #tpu.dot_dimension_numbers<[1], [0], [0], [1], [0, 0, 1, 1], [], []>} : vector<16x16xf32>, vector<16x32xf32>, vector<16x32xf32> -> vector<16x32xf32>
    %486 = arith.addf %481, %485 : vector<16x32xf32>
    %c6_363 = arith.constant 6 : index
    %c0_364 = arith.constant 0 : index
    %c0_365 = arith.constant 0 : index
    %487 = vector.load %arg2[%c6_363, %c0_364, %c0_365] : memref<9x16x16xf32, #tpu.memory_space<vmem>>, vector<1x16x16xf32>
    %488 = vector.shape_cast %487 : vector<1x16x16xf32> to vector<16x16xf32>
    %489 = vector.extract_strided_slice %40 {offsets = [0, 0], sizes = [16, 32], strides = [1, 1]} : vector<16x34xf32> to vector<16x32xf32>
    %cst_366 = arith.constant dense<0.000000e+00> : vector<16x32xf32>
    %490 = tpu.matmul %488, %489, %cst_366 {dimension_numbers = #tpu.dot_dimension_numbers<[1], [0], [0], [1], [0, 0, 1, 1], [], []>} : vector<16x16xf32>, vector<16x32xf32>, vector<16x32xf32> -> vector<16x32xf32>
    %491 = arith.addf %486, %490 : vector<16x32xf32>
    %c7_367 = arith.constant 7 : index
    %c0_368 = arith.constant 0 : index
    %c0_369 = arith.constant 0 : index
    %492 = vector.load %arg2[%c7_367, %c0_368, %c0_369] : memref<9x16x16xf32, #tpu.memory_space<vmem>>, vector<1x16x16xf32>
    %493 = vector.shape_cast %492 : vector<1x16x16xf32> to vector<16x16xf32>
    %494 = vector.extract_strided_slice %40 {offsets = [0, 1], sizes = [16, 32], strides = [1, 1]} : vector<16x34xf32> to vector<16x32xf32>
    %cst_370 = arith.constant dense<0.000000e+00> : vector<16x32xf32>
    %495 = tpu.matmul %493, %494, %cst_370 {dimension_numbers = #tpu.dot_dimension_numbers<[1], [0], [0], [1], [0, 0, 1, 1], [], []>} : vector<16x16xf32>, vector<16x32xf32>, vector<16x32xf32> -> vector<16x32xf32>
    %496 = arith.addf %491, %495 : vector<16x32xf32>
    %c8_371 = arith.constant 8 : index
    %c0_372 = arith.constant 0 : index
    %c0_373 = arith.constant 0 : index
    %497 = vector.load %arg2[%c8_371, %c0_372, %c0_373] : memref<9x16x16xf32, #tpu.memory_space<vmem>>, vector<1x16x16xf32>
    %498 = vector.shape_cast %497 : vector<1x16x16xf32> to vector<16x16xf32>
    %499 = vector.extract_strided_slice %40 {offsets = [0, 2], sizes = [16, 32], strides = [1, 1]} : vector<16x34xf32> to vector<16x32xf32>
    %cst_374 = arith.constant dense<0.000000e+00> : vector<16x32xf32>
    %500 = tpu.matmul %498, %499, %cst_374 {dimension_numbers = #tpu.dot_dimension_numbers<[1], [0], [0], [1], [0, 0, 1, 1], [], []>} : vector<16x16xf32>, vector<16x32xf32>, vector<16x32xf32> -> vector<16x32xf32>
    %501 = arith.addf %496, %500 : vector<16x32xf32>
    %c0_375 = arith.constant 0 : index
    %c0_376 = arith.constant 0 : index
    %502 = vector.load %arg3[%c0_375, %c0_376] : memref<16x1xf32, #tpu.memory_space<vmem>>, vector<16x1xf32>
    %503 = vector.broadcast %502 : vector<16x1xf32> to vector<16x32xf32>
    %504 = arith.addf %501, %503 : vector<16x32xf32>
    %c0_377 = arith.constant 0 : index
    %c7_378 = arith.constant 7 : index
    %c0_379 = arith.constant 0 : index
    %c0_380 = arith.constant 0 : index
    %505 = vector.load %arg5[%c0_377, %c7_378, %c0_379, %c0_380] : memref<1x8x16x32xf32, #tpu.memory_space<vmem>>, vector<1x1x16x32xf32>
    %506 = vector.shape_cast %505 : vector<1x1x16x32xf32> to vector<16x32xf32>
    %507 = vector.shape_cast %504 : vector<16x32xf32> to vector<1x1x16x32xf32>
    tpu.vector_store %arg5[%c0_377, %c7_378, %c0_379, %c0_380], %507 {strides = array<i32>} : memref<1x8x16x32xf32, #tpu.memory_space<vmem>>, vector<1x1x16x32xf32>,
    %cst_381 = arith.constant dense<0.000000e+00> : vector<16xf32>
    %508 = vector.multi_reduction <add>, %504, %cst_381 [1] : vector<16x32xf32> to vector<16xf32>
    %509 = vector.shape_cast %508 : vector<16xf32> to vector<16x1xf32>
    %510 = arith.addf %451, %509 : vector<16x1xf32>
    %511 = arith.mulf %504, %504 : vector<16x32xf32>
    %cst_382 = arith.constant dense<0.000000e+00> : vector<16xf32>
    %512 = vector.multi_reduction <add>, %511, %cst_382 [1] : vector<16x32xf32> to vector<16xf32>
    %513 = vector.shape_cast %512 : vector<16xf32> to vector<16x1xf32>
    %514 = arith.addf %455, %513 : vector<16x1xf32>
    %515 = tpu.concatenate %510, %514 in 1 : vector<16x1xf32>, vector<16x1xf32> -> vector<16x2xf32>
    %c0_383 = arith.constant 0 : index
    %c0_384 = arith.constant 0 : index
    %c0_385 = arith.constant 0 : index
    %c0_386 = arith.constant 0 : index
    %516 = vector.load %arg6[%c0_383, %c0_384, %c0_385, %c0_386] : memref<1x1x16x2xf32, #tpu.memory_space<vmem>>, vector<1x1x16x2xf32>
    %517 = vector.shape_cast %516 : vector<1x1x16x2xf32> to vector<16x2xf32>
    %518 = vector.shape_cast %515 : vector<16x2xf32> to vector<1x1x16x2xf32>
    tpu.vector_store %arg6[%c0_383, %c0_384, %c0_385, %c0_386], %518 {strides = array<i32>} : memref<1x1x16x2xf32, #tpu.memory_space<vmem>>, vector<1x1x16x2xf32>,
    return
  }
  func.func @transform_0(%arg0: i32, %arg1: i32) -> (i32, i32, i32) {
    %c0_i32 = arith.constant 0 : i32
    %c0_i32_0 = arith.constant 0 : i32
    %c0_i32_1 = arith.constant 0 : i32
    %c0_i32_2 = arith.constant 0 : i32
    return %c0_i32, %c0_i32_0, %c0_i32_1 : i32, i32, i32
  }
  func.func @transform_1(%arg0: i32, %arg1: i32) -> (i32, i32) {
    %c0_i32 = arith.constant 0 : i32
    %c0_i32_0 = arith.constant 0 : i32
    %c0_i32_1 = arith.constant 0 : i32
    return %c0_i32, %c0_i32_0 : i32, i32
  }
  func.func @transform_2(%arg0: i32, %arg1: i32) -> (i32, i32, i32, i32) {
    %c0_i32 = arith.constant 0 : i32
    %c0_i32_0 = arith.constant 0 : i32
    %c0_i32_1 = arith.constant 0 : i32
    %c0_i32_2 = arith.constant 0 : i32
    return %arg0, %c0_i32, %c0_i32_0, %c0_i32_1 : i32, i32, i32, i32
  }
  func.func @transform_3(%arg0: i32, %arg1: i32) -> (i32, i32, i32, i32) {
    %c0_i32 = arith.constant 0 : i32
    %c0_i32_0 = arith.constant 0 : i32
    %c0_i32_1 = arith.constant 0 : i32
    return %arg0, %arg1, %c0_i32, %c0_i32_0 : i32, i32, i32, i32
  }
  func.func @transform_4(%arg0: i32, %arg1: i32) -> (i32, i32, i32, i32) {
    %c0_i32 = arith.constant 0 : i32
    %c0_i32_0 = arith.constant 0 : i32
    %c0_i32_1 = arith.constant 0 : i32
    return %arg0, %arg1, %c0_i32, %c0_i32_0 : i32, i32, i32, i32
  }
}

</mosaic_0001>

<bundles_post_ra>
// kernel: tpu_custom_call.1
= control target key start
LH: loop header
LB: loop body
LE: loop exit
PB: predicated region body
PF: predicated region fallthrough
CT: control target
= control target key end

     0   :  { %s5004_s0 = inlined_call_operand.hbm [shape: f32[9,16,16], index: 0, kind: input, shape index: {}]   ;;  %s5005_s1 = inlined_call_operand.vmem [shape: f32[16,1], index: 1, kind: input, shape index: {}]   ;;  %s5006_s2 = inlined_call_operand.hbm [shape: f32[2,34,16,34], index: 2, kind: input, shape index: {}]   ;;  %s5007_s3 = inlined_call_operand.hbm [shape: f32[2,32,16,32], index: 3, kind: output, shape index: {0}]   ;;  %s5008_s4 = inlined_call_operand.vmem [shape: f32[2,4,16,2], index: 4, kind: output, shape index: {1}]  }
   0x1   :  { %5020 = sst [smem:[#allocation18_spill]] %s5004_s0 }
   0x2   :  { %5021 = sst [smem:[#allocation19_spill]] %s5007_s3 }
   0x3   :  { %5022 = sst [smem:[#allocation20_spill]] %s5008_s4 }
   0x4   :  { %10 = vsyncpa [#allocation3], 0 }
   0x5   :  { %11 = vsyncpa [#allocation6], 0 }
   0x6   :  { %13 = vsyncpa [#allocation6 + $0x1], 0 }
   0x7   :  { %14 = vsyncpa [#allocation4], 0 }
   0x8   :  { %16 = vsyncpa [#allocation4 + $0x1], 0  ;;  %s3984_s15 = smov 0   ;;  %s3986_s16 = smov 0  }
   0x9   :  { %s3988_s17 = smov 0   ;;  %s3990_s18 = smov 0  }
   0xa   :  { %s3992_s19 = smov 0   ;;  %s3994_s20 = smov 0  }
   0xb   :  { %s3996_s21 = smov 0   ;;  %s3998_s22 = smov 0  }
   0xc   :  { %s4000_s23 = smov 0   ;;  %s4002_s24 = smov 0  }
   0xd   :  { %s4004_s25 = smov 0  }
   0xe LB: > { %5023 = sst [smem:[#allocation11_spill]] %s3909_s15  ;;  %s3311_s26 = sadd.s32 4294967295, %s3949_s25   ;;  %s3949_s25 = sphi %s4004_s25, %s22_s25   ;;  %s3945_s24 = sphi %s4002_s24, %s5048_s24   ;;  %s3941_s23 = sphi %s4000_s23, %s5047_s23   ;;  %s3937_s22 = sphi %s3998_s22, %s5046_s22   ;;  %s3933_s21 = sphi %s3996_s21, %s5045_s21   ;;  %s3929_s20 = sphi %s3994_s20, %s5054_s20   ;;  %s3925_s19 = sphi %s3992_s19, %s5053_s19   ;;  %s3921_s18 = sphi %s3990_s18, %s5052_s18   ;;  %s3917_s17 = sphi %s3988_s17, %s5051_s17   ;;  %s3913_s16 = sphi %s3986_s16, %s5050_s16   ;;  %s3909_s15 = sphi %s3984_s15, %s5049_s15  }
   0xf   : > { %5024 = sst [smem:[#allocation12_spill]] %s3941_s23  ;;  %s3312_s27 = sadd.s32 4294967294, %s3949_s25  }
  0x10   : > { %5025 = sst [smem:[#allocation13_spill]] %s3945_s24  ;;  %p96_p0 = scmp.ne.s32.totalorder %s3925_s19, %s3921_s18 }
  0x11   : > { %p4040_p1 = scmp.eq.s32.totalorder %s3311_s26, 0  ;;  %p121_p2 = scmp.ne.s32.totalorder %s3917_s17, %s3913_s16 }
  0x12   : > { %p122_p3 = scmp.eq.s32.totalorder %s3311_s26, 7  ;;  %p127_p5 = scmp.ne.s32.totalorder %s3913_s16, %s3909_s15 }
  0x13   : > { %p4048_p4 = por %p4040_p1, %p96_p0  ;;  %p128_p7 = scmp.eq.s32.totalorder %s3312_s27, 7 }
  0x14   : > { %p4054_p6 = por %p122_p3, %p121_p2  ;;  %p3313_p8 = scmp.ge.s32.totalorder %s3949_s25, 1 }
  0x15   : > { %p163_p9 = scmp.lt.s32.totalorder %s3949_s25, 9  ;;  %p4060_p10 = por %p128_p7, %p127_p5 }
  0x16   : > { %s5028_s30 = scalar_select %p4054_p6, 1, 0 }
  0x17   : > { %s5030_s5 = scalar_select %p4060_p10, 1, 0 }
  0x18   : > { %5029 = sst [smem:[#allocation14_spill]] %s5028_s30  ;;  %p4064_p11 = pnand %p3313_p8, %p163_p9 }
  0x19   : > { %5031 = sst [smem:[#allocation15_spill]] %s5030_s5  ;;  %s3951_s10 = smov [#allocation2]  }
  0x1a   : > { %s5033_s0 = sld [smem:[#allocation18_spill]]  ;;  %p3548_p12 = pneg %p4064_p11 }
  0x1b   : > { %s176_s11 = sshll.u32 %s3951_s10, 4  ;;  %s5009_s12 = smov 128   ;;  %s177_s11 = int_to_ptr.vmem [resolvable:$true] %s176_s11 }
  0x1c   : > { %p3549_p13 = pnand %p3548_p12, %p4040_p1  ;;  %s5010_s13 = smov 8  }
  0x1d   : > { %s31_s14 = sadd.s32 1, %s3941_s23  ;;  %s34_s18 = sadd.s32 1, %s3945_s24 }
  0x1e   : > { %p32_p0 = scmp.ge.s32.totalorder %s31_s14, 4  ;;  %s83_s26 = sadd.s32 1, %s3929_s20 }
  0x1f   : > { %p90_p2 = scmp.ne.s32.totalorder %s3929_s20, %s3925_s19  ;;  %p91_p3 = scmp.eq.s32.totalorder %s3949_s25, 0 }
  0x20   : > { %s174_s9 = sshll.u32 %s5033_s0, 4  ;;  %s5056_s14 = smov (%p32_p0, %s31_s14), 0  ;;  %s175_s9 = int_to_ptr.hbm [resolvable:$true] %s174_s9 }
  0x21   : > { %3551 = dma.hbm_to_vmem [thread:$0]  (!%p3549_p13), %s175_s9, 2304, %s177_s11, [#allocation3], %s5009_s12, %s5009_s12, %s5010_s13  }
  0x22   : > { %5034 = sst [smem:[#allocation16_spill]] %s5056_s14  ;;  %s5058_s18 = smov (!%p32_p0, %s34_s18), %s3945_s24 }
  0x23   : > { %p4087_p5 = por %p91_p3, %p90_p2  ;;  %s107_s7 = ssub.s32 %s3941_s23, %s5056_s14 }
  0x24   : > { %p36_p7 = scmp.ge.s32.totalorder %s5058_s18, 2  ;;  %s111_s8 = sadd.s32 1, %s3917_s17 }
  0x25   : > { %p3561_p8 = scmp.lt.s32.totalorder %s3949_s25, 8  ;;  %s193_s9 = sand.u32 1, %s3929_s20  }
  0x26   : > { %s5060_s18 = smov (%p36_p7, %s5058_s18), 0  ;;  %s3537_s10 = smul.u32 544, %s193_s9 }
  0x27   : > { %5036 = sst [smem:[#allocation17_spill]] %s5060_s18  ;;  %s80_s11 = ssub.s32 %s3945_s24, %s5060_s18 }
  0x28   : > { %s3538_s12 = smul.u32 544, %s3945_s24  ;;  %p81_p9 = scmp.eq.s32.totalorder %s80_s11, 0 }
  0x29   : > { %s108_s13 = sor.u32 %s107_s7, %s80_s11  ;;  %s197_s4 = scalar_lea.vmem [#allocation5], %s3537_s10 }
  0x2a   : > { %p109_p12 = scmp.eq.s32.totalorder %s108_s13, 0  ;;  %s202_s15 = scalar_lea.hbm %s5006_s2, %s3538_s12 }
  0x2b   : > { %s4102_s0 = scalar_select %p81_p9, %s3929_s20, %s83_s26  }
  0x2c   : > { %s4105_s5 = scalar_select %p109_p12, %s3917_s17, %s111_s8  }
  0x2d   : > { %s205_s30 = sshll.u32 %s197_s4, 4  ;;  %s203_s3 = sshll.u32 %s202_s15, 4  ;;  %s206_s30 = int_to_ptr.vmem [resolvable:$true] %s205_s30  ;;  %s204_s3 = int_to_ptr.hbm [resolvable:$true] %s203_s3 }
  0x2e   : > { %p3553_p13 = pnand %p3561_p8, %p4087_p5  ;;  %s194_s18 = scalar_lea.sflag [#allocation6], %s193_s9 }
  0x2f   : > { %s5037_s24 = smov 8   ;;  %s5038_s7 = smov 128  }
  0x30   : > { %3555 = dma.hbm_to_vmem [thread:$0]  (!%p3553_p13), %s204_s3, 8704, %s206_s30, %s194_s18, %s5038_s7, %s5038_s7, %s5037_s24  }
  0x31   : > { %217 = sbr.rel (%p4064_p11) target bundleno = 734 (0x2de), region = 32 }
  0x36   : > { %3896 = dma.done.wait (%p4040_p1), [#allocation3], 2304  }
  0x37   : > { %3898 = vsyncadd (%p4040_p1), [#allocation3], 4294964992  ;;  %s224_s4 = sand.u32 1, %s3925_s19  }
  0x38   : > { %s3539_s15 = smul.u32 544, %s224_s4  ;;  %s225_s23 = scalar_lea.sflag [#allocation6], %s224_s4 }
  0x3a   : > { %s228_s12 = scalar_lea.vmem [#allocation5], %s3539_s15 }
  0x3b   : > { %3900 = dma.done.wait (%p4048_p4), %s225_s23, 8704  }
  0x3c   : > { %3902 = vsyncadd (%p4048_p4), %s225_s23, 4294958592  ;;  %s3526_s3 = sshll.u32 %s3933_s21, 7  ;;  %s3954_s28 = smov 127   ;;  %v4148_v8 = vld [vmem:[#allocation2] sm:$0xff]  ;;  %vm336_vm0 = vcmask 130048   ;;  %v4163_v12 = vld [vmem:[#allocation2 + $0x8] sm:$0xff] }
  0x3d   : > { %s4129_s24 = scalar_lea.vmem %s228_s12, %s3526_s3 [#allocation5]  ;;  %s3955_s29 = smov 126   ;;  %v4188_v19 = vld [vmem:[#allocation2 + $0x30] sm:$0xff]  ;;  %v4202_v23 = vld [vmem:[#allocation2 + $0x38] sm:$0xff]  ;;  %v4217_v29 = vld [vmem:[%s5005_s1] sm:$0xff]  ;;  %v3956_v30 = vmov 0   ;;  %vm681_vm1 = vcmask 261120  }
  0x3e   : > { %v4132_v0 = vld [vmem:[%s4129_s24 + $0x18] sm:$0xff]  ;;  %v4135_v1 = vld [vmem:[%s4129_s24 + $0x28] sm:$0xff]  ;;  %v276_v2 = vld [vmem:[%s4129_s24] sm:$0xff]  ;;  %3720 = vset.pattern.permute.xlu0 %v3956_v30  ;;  %3721 = vset.pattern.permute.xlu1 %v3956_v30  ;;  %s249_s18 = sand.u32 1, %s3913_s16   ;;  %s3536_s8 = sshll.u32 %s3933_s21, 4 }
  0x3f   : > { %v3670_v3 = vpack.i.bf16 %v4135_v1, %v4132_v0  ;;  %v277_v4 = vld [vmem:[%s4129_s24 + $0x8] sm:$0xff]  ;;  %v4142_v5 = vld [vmem:[%s4129_s24 + $0x10] sm:$0xff]  ;;  %458 = vmatpush.msra.mxu3 %v4132_v0  ;;  %v4153_v9 = vld [vmem:[%s4129_s24 + $0x20] sm:$0xff]  ;;  %3762 = vset.pattern.permute.xlu2 %v3956_v30  ;;  %s3319_s26 = sshll.u32 %s249_s18, 7  ;;  %s3522_s9 = sshll.u32 %s3937_s22, 6 }
  0x40   : > { %v3660_v6 = vpack.i.bf16 %v276_v2, %v277_v4  ;;  %v3680_v7 = vpack.i.bf16 %v4142_v5, %v4132_v0  ;;  %386 = vmatpush.msra.mxu1 %v277_v4  ;;  %v3675_v10 = vpack.i.bf16 %v4153_v9, %v4142_v5  ;;  %v3685_v11 = vpack.i.bf16 %v4153_v9, %v4135_v1  ;;  %v4167_v13 = vld [vmem:[%s4129_s24 + $0x30] sm:$0xff]  ;;  %v4170_v14 = vld [vmem:[%s4129_s24 + $0x38] sm:$0xff]  ;;  %v4180_v16 = vld [vmem:[%s4129_s24 + $0x40] sm:$0xff]  ;;  %s4634_s27 = scalar_lea.vmem [#allocation7], %s3319_s26  ;;  %s3124_s10 = sadd.s32 %s3536_s8, %s3522_s9 }
  0x41   : > { %3671 = vrot.lane.b32.xlu1 %v3670_v3, %s3954_s28  ;;  %459 = vmatpush.msra.mxu3 %v4142_v5  ;;  %v3695_v15 = vpack.i.bf16 %v4167_v13, %v4170_v14  ;;  %v4183_v17 = vld [vmem:[%s4129_s24 + $0x48] sm:$0xff]  ;;  %v4193_v20 = vld [vmem:[%s4129_s24 + $0x50] sm:$0xff]  ;;  %v4196_v21 = vld [vmem:[%s4129_s24 + $0x58] sm:$0xff]  ;;  %s3523_s11 = sshll.u32 %s3124_s10, 3  ;;  %s5039_s15 = sld [smem:[#allocation19_spill]] }
  0x42   : > { %3661 = vrot.lane.b32.xlu0 %v3660_v6, %s3955_s29  ;;  %3681 = vrot.lane.b32.xlu2 %v3680_v7, %s3955_s29  ;;  %v3705_v18 = vpack.i.bf16 %v4180_v16, %v4183_v17  ;;  %v3710_v22 = vpack.i.bf16 %v4193_v20, %v4196_v21  ;;  %v4206_v27 = vld [vmem:[#allocation2 + $0x50] sm:$0xff]  ;;  %v4210_v28 = vld [vmem:[#allocation2 + $0x58] sm:$0xff]  ;;  %v4236_v40 = vld [vmem:[#allocation2 + $0x20] sm:$0xff]  ;;  %s3127_s3 = sshll.u32 %s4634_s27, 4  ;;  %s3128_s3 = int_to_ptr.vmem [resolvable:$true] %s3127_s3 }
  0x43   : > { %387 = vmatpush.msra.mxu1 %v276_v2  ;;  %3367 = vmatmul.msk.f32.vlgmr.msra.gmra.mxu3 %vm336_vm0, %v4188_v19  ;;  %v4222_v31 = vld [vmem:[%s4129_s24 + $0x70] sm:$0xff]  ;;  %v4225_v32 = vld [vmem:[%s4129_s24 + $0x78] sm:$0xff]  ;;  %v4251_v49 = vld [vmem:[#allocation2 + $0x28] sm:$0xff] }
  0x44   : > { %3363 = vmatmul.msk.f32.vlgmr.msra.gmra.mxu1 %vm336_vm0, %v4148_v8  ;;  %v4229_v34 = vpack.i.bf16 %v4222_v31, %v4225_v32  ;;  %v4243_v45 = vld [vmem:[#allocation2 + $0x70] sm:$0xff]  ;;  %v4260_v52 = vld [vmem:[#allocation2 + $0x78] sm:$0xff]  ;;  %v4270_v55 = vld [vmem:[%s4129_s24 + $0x60] sm:$0xff] }
  0x45   : > { %v4249_v47 = vld [vmem:[#allocation2 + $0x10] sm:$0xff]  ;;  %v4273_v56 = vld [vmem:[%s4129_s24 + $0x68] sm:$0xff]  ;;  %v4286_v59 = vld [vmem:[#allocation2 + $0x18] sm:$0xff] }
  0x46   : > { %v4282_v58 = vld [vmem:[%s5005_s1 + $0x8] sm:$0xff]  ;;  %v4288_v60 = vld [vmem:[#allocation2 + $0x60] sm:$0xff]  ;;  %v3722_v62 = vpack.i.bf16 %v4270_v55, %v4273_v56  ;;  %v4305_v63 = vld [vmem:[%s4129_s24 + $0x90] sm:$0xff] }
  0x47   : > { %v4321_v3 = vld [vmem:[#allocation2 + $0x40] sm:$0xff]  ;;  %v4323_v4 = vld [vmem:[#allocation2 + $0x68] sm:$0xff]  ;;  %s5040_s12 = smov %s5039_s15  ;;  %s3126_s23 = scalar_lea.hbm %s5039_s15, %s3523_s11 }
  0x48   : > { %v4344_v7 = vld [vmem:[%s4129_s24 + $0x88] sm:$0xff]  ;;  %s3843_s26 = scalar_lea.hbm %s5040_s12, 1024 }
  0x49   : > { %3676 = vrot.lane.b32.xlu1 %v3675_v10, %s3954_s28  ;;  %v4348_v10 = vld [vmem:[#allocation2 + $0x48] sm:$0xff] }
  0x4a   : > { %3666 = vrot.lane.b32.xlu0 %v3660_v6, %s3954_s28  ;;  %3686 = vrot.lane.b32.xlu2 %v3685_v11, %s3955_s29  ;;  %v4341_v6 = vld [vmem:[%s4129_s24 + $0x80] sm:$0xff] }
  0x4b   : > { %3368 = vmatmul.msk.f32.gmra.mxu3 %vm336_vm0, %v4202_v23 }
  0x4c   : > { %3364 = vmatmul.msk.f32.gmra.mxu1 %vm336_vm0, %v4163_v12 }
  0x51   : > { %3696 = vrot.lane.b32.xlu1 %v3695_v15, %s3955_s29 }
  0x52   : > { %3691 = vrot.lane.b32.xlu0 %v3695_v15, %s3954_s28  ;;  %3701 = vrot.lane.b32.xlu2 %v3705_v18, %s3955_s29  ;;  %v4366_v15 = vld [vmem:[#allocation2 + $0x80] sm:$0xff] }
  0x59   : > { %3711 = vrot.lane.b32.xlu1 %v3710_v22, %s3954_s28 }
  0x5a   : > { %3706 = vrot.lane.b32.xlu0 %v3705_v18, %s3954_s28  ;;  %3716 = vrot.lane.b32.xlu2 %v3710_v22, %s3955_s29 }
  0x61   : > { %676 = vperm.xlu1 %3721, %v4282_v58  }
  0x62   : > { %671 = vperm.xlu0 %3720, %v4217_v29   ;;  %3723 = vrot.lane.b32.xlu2 %v3722_v62, %s3954_s28 }
  0x69   : > { %1013 = vperm.xlu1 %3721, %v4217_v29  }
  0x6a   : > { %3738 = vrot.lane.b32.xlu0 %v4229_v34, %s3955_s29  ;;  %3728 = vrot.lane.b32.xlu2 %v3722_v62, %s3955_s29 }
  0x72   : > { %1018 = vperm.xlu0 %3720, %v4282_v58   ;;  %3733 = vrot.lane.b32.xlu2 %v4229_v34, %s3954_s28 }
  0x9c   : > { %v3682_v24 = vpop.permute.xlu2 %3681 }
  0x9d   : > { %v3683_v25 = vunpack.i.l.bf16 %v3682_v24  ;;  %v3684_v26 = vunpack.i.h.bf16 %v3682_v24 }
  0x9f   : > { %540 = vmatpush.msrb.mxu1 %v3683_v25 }
  0xa1   : > { %541 = vmatpush.msrb.mxu1 %v3684_v26 }
  0xa2   : > { %3371 = vmatmul.msk.f32.vlgmr.msrb.gmra.mxu1 %vm336_vm0, %v4206_v27 }
  0xa4   : > { %v3687_v50 = vpop.permute.xlu2 %3686 }
  0xa5   : > { %v4263_v53 = vunpack.i.l.bf16 %v3687_v50  ;;  %v4275_v57 = vunpack.i.h.bf16 %v3687_v50 }
  0xaa   : > { %3372 = vmatmul.msk.f32.gmra.mxu1 %vm336_vm0, %v4210_v28 }
  0xb3   : > { %v3672_v33 = vpop.permute.xlu1 %3671 }
  0xb4   : > { %v4231_v35 = vunpack.i.h.bf16 %v3672_v33  ;;  %v3673_v36 = vunpack.i.l.bf16 %v3672_v33  ;;  %v3662_v37 = vpop.permute.xlu0 %3661 }
  0xb5   : > { %v3663_v38 = vunpack.i.l.bf16 %v3662_v37  ;;  %v3664_v39 = vunpack.i.h.bf16 %v3662_v37 }
  0xb6   : > { %616 = vmatpush.msrb.mxu3 %v4231_v35  ;;  %726 = vmatpush.msra.mxu1 %v3673_v36 }
  0xb7   : > { %424 = vmatpush.msra.mxu2 %v3663_v38 }
  0xb9   : > { %425 = vmatpush.msra.mxu2 %v3664_v39 }
  0xba   : > { %3365 = vmatmul.msk.f32.vlgmr.msra.gmra.mxu2 %vm336_vm0, %v4236_v40 }
  0xbb   : > { %v3677_v41 = vpop.permute.xlu1 %3676  ;;  %574 = vmatpush.msrb.mxu2 %v4135_v1 }
  0xbc   : > { %v4241_v42 = vunpack.i.h.bf16 %v3677_v41  ;;  %v3678_v43 = vunpack.i.l.bf16 %v3677_v41  ;;  %v3667_v44 = vpop.permute.xlu0 %3666 }
  0xbd   : > { %v3668_v46 = vunpack.i.l.bf16 %v3667_v44  ;;  %575 = vmatpush.msrb.mxu2 %v4153_v9  ;;  %v3669_v48 = vunpack.i.h.bf16 %v3667_v44 }
  0xbe   : > { %617 = vmatpush.msrb.mxu3 %v4241_v42  ;;  %727 = vmatpush.msra.mxu1 %v3678_v43 }
  0xbf   : > { %357 = vmatpush.msra.mxu0 %v3668_v46  ;;  %3375 = vmatmul.msk.f32.vlgmr.msrb.gmra.mxu3 %vm336_vm0, %v4243_v45 }
  0xc0   : > { %3379 = vmatmul.msk.f32.vlgmr.msra.gmra.mxu1 %vm336_vm0, %v4249_v47  ;;  %786 = vmatpush.msra.mxu3 %v3683_v25  ;;  %v4385_v25 = vld [vmem:[#allocation2 + $0x88] sm:$0xff] }
  0xc1   : > { %358 = vmatpush.msra.mxu0 %v3669_v48  ;;  %852 = vmatpush.msrb.mxu1 %v4231_v35 }
  0xc2   : > { %3361 = vmatmul.msk.f32.vlgmr.msra.gmra.mxu0 %vm336_vm0, %v4249_v47  ;;  %3366 = vmatmul.msk.f32.gmra.mxu2 %vm336_vm0, %v4251_v49 }
  0xc3   : > { %500 = vmatpush.msrb.mxu0 %v3673_v36  ;;  %787 = vmatpush.msra.mxu3 %v3684_v26  ;;  %v3697_v51 = vpop.permute.xlu1 %3696  ;;  %v3702_v26 = vpop.permute.xlu2 %3701 }
  0xc4   : > { %853 = vmatpush.msrb.mxu1 %v4241_v42  ;;  %755 = vmatpush.msra.mxu2 %v4132_v0  ;;  %v4266_v54 = vunpack.i.l.bf16 %v3697_v51  ;;  %v4290_v61 = vunpack.i.h.bf16 %v3697_v51  ;;  %v4308_v0 = vld [vmem:[%s4129_s24 + $0x98] sm:$0xff]  ;;  %v4413_v30 = vunpack.i.l.bf16 %v3702_v26  ;;  %v4417_v33 = vunpack.i.h.bf16 %v3702_v26  ;;  %s3129_s24 = sshll.u32 %s3126_s23, 4  ;;  %s3130_s24 = int_to_ptr.hbm [resolvable:$true] %s3129_s24 }
  0xc5   : > { %501 = vmatpush.msrb.mxu0 %v3678_v43  ;;  %918 = vmatpush.msrb.mxu3 %v4170_v14  ;;  %v4317_v2 = vpack.i.bf16 %v4305_v63, %v4308_v0  ;;  %s3837_s30 = sshra.s32 %s3130_s24, 4  ;;  %s3838_s30 = int_to_ptr.hbm [resolvable:$true] %s3837_s30 }
  0xc6   : > { %756 = vmatpush.msra.mxu2 %v4142_v5  ;;  %998 = vmatpush.msra.mxu1 %v4266_v54  ;;  %v3692_v5 = vpop.permute.xlu0 %3691  ;;  %v461_v39 = vpop.f32.mrf.mxu3  ;;  %s3839_s6 = scalar_lea.hbm %s3838_s30, 128  ;;  %p3844_p0 = scmp.lt.s32.totalorder %s3838_s30, %s5040_s12 }
  0xc7   : > { %656 = vmatpush.msra.mxu0 %v4263_v53  ;;  %3376 = vmatmul.msk.f32.gmra.mxu3 %vm336_vm0, %v4260_v52  ;;  %v3693_v18 = vunpack.i.l.bf16 %v3692_v5  ;;  %v3694_v24 = vunpack.i.h.bf16 %v3692_v5  ;;  %p3840_p1 = scmp.ne.s32.totalorder %s3838_s30, %s3839_s6  ;;  %p3845_p2 = scmp.lt.s32.totalorder %s3843_s26, %s3839_s6 }
  0xc8   : > { %3380 = vmatmul.msk.f32.gmra.mxu1 %vm336_vm0, %v4286_v59  ;;  %919 = vmatpush.msrb.mxu3 %v4167_v13 }
  0xc9   : > { %657 = vmatpush.msra.mxu0 %v4275_v57  ;;  %999 = vmatpush.msra.mxu1 %v4290_v61  ;;  %p3841_p4 = pnand %p3840_p1, %p4054_p6  ;;  %p3846_p3 = por %p3845_p2, %p3844_p0 }
  0xca   : > { %3362 = vmatmul.msk.f32.gmra.mxu0 %vm336_vm0, %v4286_v59  ;;  %3373 = vmatmul.msk.f32.vlgmr.msrb.gmra.mxu2 %vm336_vm0, %v4288_v60 }
  0xcb   : > { %885 = vmatpush.msrb.mxu2 %v4263_v53  ;;  %3753 = vrot.lane.b32.xlu0 %v4317_v2, %s3954_s28  ;;  %v3717_v34 = vpop.permute.xlu2 %3716  ;;  %v3712_v37 = vpop.permute.xlu1 %3711  ;;  %p3842_p11 = pneg %p3841_p4 }
  0xcc   : > { %v4461_v36 = vunpack.i.h.bf16 %v3717_v34  ;;  %v3713_v38 = vunpack.i.l.bf16 %v3712_v37 }
  0xcd   : > { %886 = vmatpush.msrb.mxu2 %v4275_v57  ;;  %p3847_p5 = pnand %p3846_p3, %p3842_p11 }
  0xce   : > { %v464_v43 = vpop.f32.mrf.mxu3 }
  0xcf   : > { %3383 = vmatmul.msk.f32.vlgmr.msra.gmra.mxu3 %vm336_vm0, %v4236_v40 }
  0xd0   : > { %3387 = vmatmul.msk.f32.vlgmr.msrb.gmra.mxu1 %vm336_vm0, %v4321_v3  ;;  %1097 = vmatpush.msra.mxu3 %v4135_v1 }
  0xd1   : > { %1161 = vmatpush.msrb.mxu1 %v4170_v14 }
  0xd2   : > { %3369 = vmatmul.msk.f32.vlgmr.msrb.gmra.mxu0 %vm336_vm0, %v4321_v3  ;;  %3374 = vmatmul.msk.f32.gmra.mxu2 %vm336_vm0, %v4323_v4 }
  0xd3   : > { %819 = vmatpush.msrb.mxu0 %v4135_v1  ;;  %1098 = vmatpush.msra.mxu3 %v4153_v9  ;;  %v3747_v1 = vpack.i.bf16 %v4341_v6, %v4344_v7 }
  0xd4   : > { %1162 = vmatpush.msrb.mxu1 %v4167_v13  ;;  %1360 = vperm.xlu0 %3720, %v4282_v58  }
  0xd5   : > { %820 = vmatpush.msrb.mxu0 %v4153_v9  ;;  %v3707_v9 = vpop.permute.xlu0 %3706  ;;  %3748 = vrot.lane.b32.xlu1 %v3747_v1, %s3954_s28 }
  0xd6   : > { %v4362_v11 = vunpack.i.l.bf16 %v3707_v9  ;;  %v4370_v22 = vunpack.i.h.bf16 %v3707_v9  ;;  %3743 = vrot.lane.b32.xlu2 %v3747_v1, %s3955_s29 }
  0xd7   : > { %3384 = vmatmul.msk.f32.gmra.mxu3 %vm336_vm0, %v4251_v49 }
  0xd8   : > { %3388 = vmatmul.msk.f32.gmra.mxu1 %vm336_vm0, %v4348_v10 }
  0xda   : > { %3370 = vmatmul.msk.f32.gmra.mxu0 %vm336_vm0, %v4348_v10  ;;  %3381 = vmatmul.msk.f32.vlgmr.msra.gmra.mxu2 %vm336_vm0, %v4148_v8 }
  0xdb   : > { %1068 = vmatpush.msra.mxu2 %v4231_v35  ;;  %v4453_v35 = vunpack.i.l.bf16 %v3717_v34  ;;  %v677_v34 = vpop.permute.xlu1 %676 }
  0xdc   : > { %1697 = vperm.xlu0 %3720, %v4217_v29  }
  0xdd   : > { %1069 = vmatpush.msra.mxu2 %v4241_v42  ;;  %1355 = vperm.xlu1 %3721, %v4217_v29   ;;  %v4547_v51 = vpop.permute.xlu0 %671 }
  0xde   : > { %3758 = vrot.lane.b32.xlu2 %v4317_v2, %s3955_s29  ;;  %s3103_s29 = scalar_lea.sflag [#allocation4], %s249_s18 }
  0xdf   : > { %3391 = vmatmul.msk.f32.vlgmr.msrb.gmra.mxu3 %vm336_vm0, %v4288_v60 }
  0xe0   : > { %3395 = vmatmul.msk.f32.vlgmr.msra.gmra.mxu1 %vm336_vm0, %v4366_v15  ;;  %1227 = vmatpush.msrb.mxu3 %v4266_v54 }
  0xe1   : > { %1301 = vmatpush.msra.mxu1 %v4362_v11 }
  0xe2   : > { %3377 = vmatmul.msk.f32.vlgmr.msra.gmra.mxu0 %vm336_vm0, %v4366_v15  ;;  %3382 = vmatmul.msk.f32.gmra.mxu2 %vm336_vm0, %v4163_v12 }
  0xe3   : > { %1228 = vmatpush.msrb.mxu3 %v4290_v61  ;;  %959 = vmatpush.msra.mxu0 %v3693_v18 }
  0xe4   : > { %1302 = vmatpush.msra.mxu1 %v4370_v22  ;;  %2386 = vperm.xlu0 %3720, %v4282_v58  }
  0xe5   : > { %960 = vmatpush.msra.mxu0 %v3694_v24  ;;  %2044 = vperm.xlu1 %3721, %v4282_v58   ;;  %v3739_v62 = vpop.permute.xlu0 %3738 }
  0xe6   : > { %1702 = vperm.xlu2 %3762, %v4282_v58   ;;  %v4568_v2 = vunpack.i.l.bf16 %v3739_v62 }
  0xe7   : > { %3392 = vmatmul.msk.f32.gmra.mxu3 %vm336_vm0, %v4323_v4 }
  0xe8   : > { %3396 = vmatmul.msk.f32.gmra.mxu1 %vm336_vm0, %v4385_v25 }
  0xea   : > { %3378 = vmatmul.msk.f32.gmra.mxu0 %vm336_vm0, %v4385_v25  ;;  %3389 = vmatmul.msk.f32.vlgmr.msrb.gmra.mxu2 %vm336_vm0, %v4206_v27 }
  0xeb   : > { %1194 = vmatpush.msrb.mxu2 %v3693_v18 }
  0xec   : > { %3070 = vperm.xlu0 %3720, %v4282_v58  }
  0xed   : > { %1195 = vmatpush.msrb.mxu2 %v3694_v24  ;;  %2381 = vperm.xlu1 %3721, %v4217_v29  }
  0xee   : > { %2039 = vperm.xlu2 %3762, %v4217_v29  }
  0xef   : > { %3401 = vmatmul.msk.f32.vlgmr.msra.gmra.mxu3 %vm336_vm0, %v4148_v8 }
  0xf0   : > { %3405 = vmatmul.msk.f32.vlgmr.msrb.gmra.mxu1 %vm336_vm0, %v4188_v19  ;;  %1410 = vmatpush.msra.mxu3 %v3693_v18 }
  0xf1   : > { %1470 = vmatpush.msrb.mxu1 %v4266_v54 }
  0xf2   : > { %3385 = vmatmul.msk.f32.vlgmr.msrb.gmra.mxu0 %vm336_vm0, %v4188_v19  ;;  %3390 = vmatmul.msk.f32.gmra.mxu2 %vm336_vm0, %v4210_v28 }
  0xf3   : > { %1128 = vmatpush.msrb.mxu0 %v4263_v53  ;;  %1411 = vmatpush.msra.mxu3 %v3694_v24 }
  0xf4   : > { %1471 = vmatpush.msrb.mxu1 %v4290_v61 }
  0xf5   : > { %1129 = vmatpush.msrb.mxu0 %v4275_v57  ;;  %2723 = vperm.xlu1 %3721, %v4217_v29  }
  0xf6   : > { %3065 = vperm.xlu2 %3762, %v4217_v29  }
  0xf7   : > { %3402 = vmatmul.msk.f32.gmra.mxu3 %vm336_vm0, %v4163_v12 }
  0xf8   : > { %3406 = vmatmul.msk.f32.gmra.mxu1 %vm336_vm0, %v4202_v23 }
  0xfa   : > { %3386 = vmatmul.msk.f32.gmra.mxu0 %vm336_vm0, %v4202_v23  ;;  %3399 = vmatmul.msk.f32.vlgmr.msra.gmra.mxu2 %vm336_vm0, %v4249_v47 }
  0xfb   : > { %1340 = vmatpush.msra.mxu2 %v4413_v30 }
  0xfd   : > { %1341 = vmatpush.msra.mxu2 %v4417_v33  ;;  %2728 = vperm.xlu1 %3721, %v4282_v58  }
  0xff   : > { %3409 = vmatmul.msk.f32.vlgmr.msrb.gmra.mxu3 %vm336_vm0, %v4206_v27 }
 0x100   : > { %3413 = vmatmul.msk.f32.vlgmr.msra.gmra.mxu1 %vm336_vm0, %v4243_v45  ;;  %1536 = vmatpush.msrb.mxu3 %v4362_v11 }
 0x101   : > { %1602 = vmatpush.msra.mxu1 %v4196_v21 }
 0x102   : > { %3393 = vmatmul.msk.f32.vlgmr.msra.gmra.mxu0 %vm336_vm0, %v4243_v45  ;;  %3400 = vmatmul.msk.f32.gmra.mxu2 %vm336_vm0, %v4286_v59 }
 0x103   : > { %1260 = vmatpush.msra.mxu0 %v4183_v17  ;;  %1537 = vmatpush.msrb.mxu3 %v4370_v22 }
 0x104   : > { %1603 = vmatpush.msra.mxu1 %v4193_v20 }
 0x105   : > { %1261 = vmatpush.msra.mxu0 %v4180_v16 }
 0x107   : > { %3410 = vmatmul.msk.f32.gmra.mxu3 %vm336_vm0, %v4210_v28 }
 0x108   : > { %3414 = vmatmul.msk.f32.gmra.mxu1 %vm336_vm0, %v4260_v52 }
 0x10a   : > { %3394 = vmatmul.msk.f32.gmra.mxu0 %vm336_vm0, %v4260_v52  ;;  %3407 = vmatmul.msk.f32.vlgmr.msrb.gmra.mxu2 %vm336_vm0, %v4321_v3 }
 0x10b   : > { %1503 = vmatpush.msrb.mxu2 %v4183_v17 }
 0x10d   : > { %1504 = vmatpush.msrb.mxu2 %v4180_v16 }
 0x10f   : > { %3419 = vmatmul.msk.f32.vlgmr.msra.gmra.mxu3 %vm336_vm0, %v4249_v47 }
 0x110   : > { %3423 = vmatmul.msk.f32.vlgmr.msrb.gmra.mxu1 %vm336_vm0, %v4236_v40  ;;  %1682 = vmatpush.msra.mxu3 %v4453_v35 }
 0x111   : > { %1781 = vmatpush.msrb.mxu1 %v4183_v17  ;;  %v3714_v17 = vunpack.i.h.bf16 %v3712_v37 }
 0x112   : > { %3403 = vmatmul.msk.f32.vlgmr.msrb.gmra.mxu0 %vm336_vm0, %v4236_v40  ;;  %3408 = vmatmul.msk.f32.gmra.mxu2 %vm336_vm0, %v4348_v10 }
 0x113   : > { %1439 = vmatpush.msrb.mxu0 %v4170_v14  ;;  %1782 = vmatpush.msrb.mxu1 %v4180_v16  ;;  %v3724_v16 = vpop.permute.xlu2 %3723 }
 0x114   : > { %1683 = vmatpush.msra.mxu3 %v4461_v36  ;;  %v4508_v29 = vunpack.i.l.bf16 %v3724_v16  ;;  %v4515_v41 = vunpack.i.h.bf16 %v3724_v16 }
 0x115   : > { %1440 = vmatpush.msrb.mxu0 %v4167_v13  ;;  %v389_v13 = vpop.f32.mrf.mxu1 }
 0x117   : > { %3420 = vmatmul.msk.f32.gmra.mxu3 %vm336_vm0, %v4286_v59 }
 0x118   : > { %3424 = vmatmul.msk.f32.gmra.mxu1 %vm336_vm0, %v4251_v49 }
 0x11a   : > { %3404 = vmatmul.msk.f32.gmra.mxu0 %vm336_vm0, %v4251_v49  ;;  %3415 = vmatmul.msk.f32.vlgmr.msra.gmra.mxu2 %vm336_vm0, %v4366_v15 }
 0x11b   : > { %1643 = vmatpush.msra.mxu2 %v3713_v38  ;;  %v3729_v5 = vpop.permute.xlu2 %3728 }
 0x11c   : > { %v4581_v18 = vunpack.i.l.bf16 %v3729_v5 }
 0x11d   : > { %1644 = vmatpush.msra.mxu2 %v3714_v17  ;;  %v4499_v14 = vpop.f32.mrf.mxu1 }
 0x11f   : > { %3427 = vmatmul.msk.f32.vlgmr.msrb.gmra.mxu3 %vm336_vm0, %v4321_v3 }
 0x120   : > { %3431 = vmatmul.msk.f32.vlgmr.msra.gmra.mxu1 %vm336_vm0, %v4288_v60  ;;  %1845 = vmatpush.msrb.mxu3 %v4196_v21 }
 0x121   : > { %1911 = vmatpush.msra.mxu1 %v4453_v35 }
 0x122   : > { %3411 = vmatmul.msk.f32.vlgmr.msra.gmra.mxu0 %vm336_vm0, %v4288_v60  ;;  %3416 = vmatmul.msk.f32.gmra.mxu2 %vm336_vm0, %v4385_v25 }
 0x123   : > { %1569 = vmatpush.msra.mxu0 %v4413_v30  ;;  %1912 = vmatpush.msra.mxu1 %v4461_v36 }
 0x124   : > { %1846 = vmatpush.msrb.mxu3 %v4193_v20 }
 0x125   : > { %1570 = vmatpush.msra.mxu0 %v4417_v33  ;;  %v4518_v42 = vpop.f32.mrf.mxu1 }
 0x127   : > { %3428 = vmatmul.msk.f32.gmra.mxu3 %vm336_vm0, %v4348_v10 }
 0x128   : > { %3432 = vmatmul.msk.f32.gmra.mxu1 %vm336_vm0, %v4323_v4 }
 0x12a   : > { %3412 = vmatmul.msk.f32.gmra.mxu0 %vm336_vm0, %v4323_v4  ;;  %3425 = vmatmul.msk.f32.vlgmr.msrb.gmra.mxu2 %vm336_vm0, %v4188_v19 }
 0x12b   : > { %1812 = vmatpush.msrb.mxu2 %v4413_v30 }
 0x12d   : > { %1813 = vmatpush.msrb.mxu2 %v4417_v33  ;;  %v4531_v44 = vpop.f32.mrf.mxu1 }
 0x12f   : > { %3435 = vmatmul.msk.f32.vlgmr.msra.gmra.mxu3 %vm336_vm0, %v4366_v15 }
 0x130   : > { %3441 = vmatmul.msk.f32.vlgmr.msrb.gmra.mxu1 %vm336_vm0, %v4148_v8  ;;  %1985 = vmatpush.msra.mxu3 %v4508_v29 }
 0x131   : > { %2094 = vmatpush.msrb.mxu1 %v3713_v38 }
 0x132   : > { %3421 = vmatmul.msk.f32.vlgmr.msrb.gmra.mxu0 %vm336_vm0, %v4148_v8  ;;  %3426 = vmatmul.msk.f32.gmra.mxu2 %vm336_vm0, %v4202_v23 }
 0x133   : > { %1752 = vmatpush.msrb.mxu0 %v4362_v11  ;;  %2095 = vmatpush.msrb.mxu1 %v3714_v17  ;;  %v4574_v11 = vunpack.i.h.bf16 %v3739_v62  ;;  %v3734_v62 = vpop.permute.xlu2 %3733 }
 0x134   : > { %1986 = vmatpush.msra.mxu3 %v4515_v41 }
 0x135   : > { %1753 = vmatpush.msrb.mxu0 %v4370_v22  ;;  %v4590_v22 = vunpack.i.h.bf16 %v3729_v5 }
 0x137   : > { %3436 = vmatmul.msk.f32.gmra.mxu3 %vm336_vm0, %v4385_v25 }
 0x138   : > { %3442 = vmatmul.msk.f32.gmra.mxu1 %vm336_vm0, %v4163_v12 }
 0x13a   : > { %3422 = vmatmul.msk.f32.gmra.mxu0 %vm336_vm0, %v4163_v12  ;;  %3433 = vmatmul.msk.f32.vlgmr.msra.gmra.mxu2 %vm336_vm0, %v4243_v45 }
 0x13b   : > { %1944 = vmatpush.msra.mxu2 %v4273_v56 }
 0x13d   : > { %v427_v46 = vpop.f32.mrf.mxu2  ;;  %1945 = vmatpush.msra.mxu2 %v4270_v55  ;;  %v4544_v50 = vpop.f32.mrf.mxu1 }
 0x13f   : > { %v360_v48 = vpop.f32.mrf.mxu0  ;;  %3445 = vmatmul.msk.f32.vlgmr.msrb.gmra.mxu3 %vm336_vm0, %v4188_v19 }
 0x140   : > { %2154 = vmatpush.msrb.mxu3 %v4453_v35  ;;  %3449 = vmatmul.msk.f32.vlgmr.msra.gmra.mxu1 %vm336_vm0, %v4206_v27  ;;  %v390_v57 = vadd.f32 %v389_v13, %v360_v48 }
 0x141   : > { %2220 = vmatpush.msra.mxu1 %v4508_v29 }
 0x142   : > { %3429 = vmatmul.msk.f32.vlgmr.msra.gmra.mxu0 %vm336_vm0, %v4206_v27  ;;  %3434 = vmatmul.msk.f32.gmra.mxu2 %vm336_vm0, %v4260_v52  ;;  %v619_v53 = vpop.f32.mrf.mxu3  ;;  %v433_v61 = vadd.f32 %v427_v46, %v390_v57 }
 0x143   : > { %1878 = vmatpush.msra.mxu0 %v3713_v38  ;;  %2155 = vmatpush.msrb.mxu3 %v4461_v36 }
 0x144   : > { %2221 = vmatpush.msra.mxu1 %v4515_v41 }
 0x145   : > { %1879 = vmatpush.msra.mxu0 %v3714_v17  ;;  %v430_v19 = vpop.f32.mrf.mxu2  ;;  %v4559_v27 = vpop.f32.mrf.mxu1 }
 0x147   : > { %v363_v54 = vpop.f32.mrf.mxu0  ;;  %3446 = vmatmul.msk.f32.gmra.mxu3 %vm336_vm0, %v4202_v23 }
 0x148   : > { %3450 = vmatmul.msk.f32.gmra.mxu1 %vm336_vm0, %v4210_v28  ;;  %v393_v9 = vadd.f32 %v4499_v14, %v363_v54 }
 0x14a   : > { %3430 = vmatmul.msk.f32.gmra.mxu0 %vm336_vm0, %v4210_v28  ;;  %3443 = vmatmul.msk.f32.vlgmr.msrb.gmra.mxu2 %vm336_vm0, %v4236_v40  ;;  %v4565_v58 = vpop.f32.mrf.mxu3  ;;  %v467_v28 = vadd.f32 %v461_v39, %v433_v61  ;;  %v434_v24 = vadd.f32 %v430_v19, %v393_v9 }
 0x14b   : > { %2123 = vmatpush.msrb.mxu2 %v4196_v21 }
 0x14c   : > { %v468_v33 = vadd.f32 %v464_v43, %v434_v24  ;;  %v4624_v43 = vpop.permute.xlu1 %1013 }
 0x14d   : > { %v577_v23 = vpop.f32.mrf.mxu2  ;;  %2124 = vmatpush.msrb.mxu2 %v4193_v20  ;;  %v4579_v21 = vpop.f32.mrf.mxu1 }
 0x14f   : > { %v503_v1 = vpop.f32.mrf.mxu0  ;;  %3453 = vmatmul.msk.f32.vlgmr.msra.gmra.mxu3 %vm336_vm0, %v4243_v45 }
 0x150   : > { %3459 = vmatmul.msk.f32.vlgmr.msrb.gmra.mxu1 %vm336_vm0, %v4249_v47  ;;  %2286 = vmatpush.msra.mxu3 %v4225_v32  ;;  %v509_v20 = vadd.f32 %v503_v1, %v467_v28  ;;  %v3736_v28 = vunpack.i.h.bf16 %v3734_v62 }
 0x151   : > { %2366 = vmatpush.msrb.mxu1 %v4568_v2 }
 0x152   : > { %3439 = vmatmul.msk.f32.vlgmr.msrb.gmra.mxu0 %vm336_vm0, %v4249_v47  ;;  %3444 = vmatmul.msk.f32.gmra.mxu2 %vm336_vm0, %v4251_v49  ;;  %v4588_v45 = vpop.f32.mrf.mxu3  ;;  %v549_v47 = vadd.f32 %v4518_v42, %v509_v20 }
 0x153   : > { %2024 = vmatpush.msrb.mxu0 %v4581_v18  ;;  %2287 = vmatpush.msra.mxu3 %v4222_v31 }
 0x154   : > { %2367 = vmatpush.msrb.mxu1 %v4574_v11  ;;  %v583_v36 = vadd.f32 %v577_v23, %v549_v47 }
 0x155   : > { %v580_v26 = vpop.f32.mrf.mxu2  ;;  %2025 = vmatpush.msrb.mxu0 %v4590_v22  ;;  %v4601_v35 = vpop.f32.mrf.mxu1 }
 0x156   : > { %v625_v17 = vadd.f32 %v619_v53, %v583_v36 }
 0x157   : > { %v506_v30 = vpop.f32.mrf.mxu0  ;;  %3454 = vmatmul.msk.f32.gmra.mxu3 %vm336_vm0, %v4260_v52 }
 0x158   : > { %3460 = vmatmul.msk.f32.gmra.mxu1 %vm336_vm0, %v4286_v59  ;;  %v510_v37 = vadd.f32 %v506_v30, %v468_v33 }
 0x15a   : > { %3440 = vmatmul.msk.f32.gmra.mxu0 %vm336_vm0, %v4286_v59  ;;  %3451 = vmatmul.msk.f32.vlgmr.msra.gmra.mxu2 %vm336_vm0, %v4288_v60  ;;  %v4607_v38 = vpop.f32.mrf.mxu3  ;;  %v550_v13 = vadd.f32 %v4531_v44, %v510_v37 }
 0x15b   : > { %2253 = vmatpush.msra.mxu2 %v4581_v18 }
 0x15c   : > { %v584_v39 = vadd.f32 %v580_v26, %v550_v13 }
 0x15d   : > { %v758_v52 = vpop.f32.mrf.mxu2  ;;  %2254 = vmatpush.msra.mxu2 %v4590_v22  ;;  %v4620_v16 = vpop.f32.mrf.mxu1 }
 0x15e   : > { %v626_v48 = vadd.f32 %v4565_v58, %v584_v39  ;;  %v759_v57 = vadd.f32 %v758_v52, %v4544_v50 }
 0x15f   : > { %v659_v14 = vpop.f32.mrf.mxu0  ;;  %3463 = vmatmul.msk.f32.vlgmr.msrb.gmra.mxu3 %vm336_vm0, %v4236_v40 }
 0x160   : > { %v665_v59 = vadd.f32 %v659_v14, %v625_v17  ;;  %3467 = vmatmul.msk.f32.vlgmr.msra.gmra.mxu1 %vm336_vm0, %v4321_v3  ;;  %2465 = vmatpush.msrb.mxu3 %v4273_v56  ;;  %v795_v50 = vadd.f32 %v4588_v45, %v759_v57  ;;  %v4715_v17 = vld [vmem:[#allocation2 + $0x58] sm:$0xff] }
 0x161   : > { %2529 = vmatpush.msra.mxu1 %v4225_v32 }
 0x162   : > { %v679_v42 = vadd.f32 %v4547_v51, %v665_v59  ;;  %3447 = vmatmul.msk.f32.vlgmr.msra.gmra.mxu0 %vm336_vm0, %v4321_v3  ;;  %3452 = vmatmul.msk.f32.gmra.mxu2 %vm336_vm0, %v4323_v4  ;;  %v4630_v40 = vpop.f32.mrf.mxu3 }
 0x163   : > { %2187 = vmatpush.msra.mxu0 %v4273_v56  ;;  %2466 = vmatpush.msrb.mxu3 %v4270_v55 }
 0x164   : > { %682 = vst.msk [vmem:[%s4634_s27] sm:$0xff] %vm681_vm1, %v679_v42  ;;  %v684_v44 = vsel %vm681_vm1, %v679_v42, 0.0  ;;  %v692_v46 = vmul.f32 %v679_v42, %v679_v42  ;;  %2530 = vmatpush.msra.mxu1 %v4222_v31 }
 0x165   : > { %685 = vadd.xlane.f32.xlu1 %v684_v44  ;;  %v761_v3 = vpop.f32.mrf.mxu2  ;;  %2188 = vmatpush.msra.mxu0 %v4270_v55  ;;  %v4647_v19 = vpop.f32.mrf.mxu1 }
 0x166   : > { %v694_v56 = vsel %vm681_vm1, %v692_v46, 0.0  ;;  %v762_v20 = vadd.f32 %v761_v3, %v4559_v27  ;;  %v2414_v3 = vld [vmem:[#allocation2 + $0x10] sm:$0xff] }
 0x167   : > { %v662_v51 = vpop.f32.mrf.mxu0  ;;  %695 = vadd.xlane.f32.xlu2 %v694_v56  ;;  %3464 = vmatmul.msk.f32.gmra.mxu3 %vm336_vm0, %v4251_v49  ;;  %v4659_v49 = vpop.permute.xlu1 %3748 }
 0x168   : > { %v666_v53 = vadd.f32 %v662_v51, %v626_v48  ;;  %3468 = vmatmul.msk.f32.gmra.mxu1 %vm336_vm0, %v4348_v10  ;;  %v3750_v23 = vunpack.i.l.bf16 %v4659_v49  ;;  %v3751_v1 = vunpack.i.h.bf16 %v4659_v49  ;;  %v4793_v49 = vld [vmem:[#allocation2 + $0x40] sm:$0xff] }
 0x16a   : > { %v680_v54 = vadd.f32 %v677_v34, %v666_v53  ;;  %3448 = vmatmul.msk.f32.gmra.mxu0 %vm336_vm0, %v4348_v10  ;;  %3461 = vmatmul.msk.f32.vlgmr.msrb.gmra.mxu2 %vm336_vm0, %v4148_v8  ;;  %v4653_v55 = vpop.f32.mrf.mxu3  ;;  %v1019_v53 = vpop.permute.xlu0 %1018 }
 0x16b   : > { %2436 = vmatpush.msrb.mxu2 %v4508_v29  ;;  %v3735_v29 = vunpack.i.l.bf16 %v3734_v62  ;;  %v4758_v62 = vld [vmem:[#allocation2 + $0x70] sm:$0xff] }
 0x16c   : > { %683 = vst.msk [vmem:[%s4634_s27 + $0x8] sm:$0xff] %vm681_vm1, %v680_v54  ;;  %v687_v58 = vsel %vm681_vm1, %v680_v54, 0.0  ;;  %v693_v61 = vmul.f32 %v680_v54, %v680_v54 }
 0x16d   : > { %2437 = vmatpush.msrb.mxu2 %v4515_v41  ;;  %688 = vadd.xlane.f32.xlu0 %v687_v58  ;;  %v888_v8 = vpop.f32.mrf.mxu2  ;;  %v4672_v41 = vpop.f32.mrf.mxu1 }
 0x16e   : > { %v697_v10 = vsel %vm681_vm1, %v693_v61, 0.0 }
 0x16f   : > { %v822_v5 = vpop.f32.mrf.mxu0  ;;  %698 = vadd.xlane.f32.xlu1 %v697_v10  ;;  %3471 = vmatmul.msk.f32.vlgmr.msra.gmra.mxu3 %vm336_vm0, %v4288_v60 }
 0x170   : > { %3475 = vmatmul.msk.f32.vlgmr.msrb.gmra.mxu1 %vm336_vm0, %v4366_v15  ;;  %2595 = vmatpush.msra.mxu3 %v4568_v2  ;;  %v828_v9 = vadd.f32 %v822_v5, %v795_v50 }
 0x171   : > { %2669 = vmatpush.msrb.mxu1 %v3750_v23 }
 0x172   : > { %3455 = vmatmul.msk.f32.vlgmr.msrb.gmra.mxu0 %vm336_vm0, %v4366_v15  ;;  %3462 = vmatmul.msk.f32.gmra.mxu2 %vm336_vm0, %v4163_v12  ;;  %v4680_v60 = vpop.f32.mrf.mxu3  ;;  %v861_v24 = vadd.f32 %v4579_v21, %v828_v9  ;;  %v4689_v15 = vld [vmem:[#allocation2 + $0x50] sm:$0xff]  ;;  %v796_v12 = vadd.f32 %v4607_v38, %v762_v20  ;;  %v4784_v20 = vld [vmem:[#allocation2 + $0x78] sm:$0xff] }
 0x173   : > { %2327 = vmatpush.msrb.mxu0 %v3735_v29  ;;  %2596 = vmatpush.msra.mxu3 %v4574_v11  ;;  %v4708_v38 = vld [vmem:[#allocation2 + $0x30] sm:$0xff] }
 0x174   : > { %2670 = vmatpush.msrb.mxu1 %v3751_v1  ;;  %v894_v27 = vadd.f32 %v888_v8, %v861_v24 }
 0x175   : > { %v891_v45 = vpop.f32.mrf.mxu2  ;;  %2328 = vmatpush.msrb.mxu0 %v3736_v28  ;;  %v4694_v47 = vpop.f32.mrf.mxu1 }
 0x176   : > { %v927_v34 = vadd.f32 %v4630_v40, %v894_v27 }
 0x177   : > { %v825_v26 = vpop.f32.mrf.mxu0  ;;  %3472 = vmatmul.msk.f32.gmra.mxu3 %vm336_vm0, %v4323_v4  ;;  %v4702_v4 = vld [vmem:[#allocation2] sm:$0xff] }
 0x178   : > { %3476 = vmatmul.msk.f32.gmra.mxu1 %vm336_vm0, %v4385_v25  ;;  %v829_v30 = vadd.f32 %v825_v26, %v796_v12 }
 0x17a   : > { %3456 = vmatmul.msk.f32.gmra.mxu0 %vm336_vm0, %v4385_v25  ;;  %3469 = vmatmul.msk.f32.vlgmr.msra.gmra.mxu2 %vm336_vm0, %v4689_v15  ;;  %v4700_v21 = vpop.f32.mrf.mxu3  ;;  %v862_v36 = vadd.f32 %v4601_v35, %v829_v30 }
 0x17b   : > { %2562 = vmatpush.msra.mxu2 %v3735_v29 }
 0x17c   : > { %v895_v13 = vadd.f32 %v891_v45, %v862_v36 }
 0x17d   : > { %v1071_v33 = vpop.f32.mrf.mxu2  ;;  %2563 = vmatpush.msra.mxu2 %v3736_v28  ;;  %v4712_v52 = vpop.f32.mrf.mxu1 }
 0x17e   : > { %v928_v39 = vadd.f32 %v4653_v55, %v895_v13  ;;  %v1101_v8 = vadd.f32 %v4680_v60, %v1071_v33  ;;  %v2474_v33 = vld [vmem:[#allocation2 + $0x20] sm:$0xff] }
 0x17f   : > { %v962_v37 = vpop.f32.mrf.mxu0  ;;  %3481 = vmatmul.msk.f32.vlgmr.msrb.gmra.mxu3 %vm336_vm0, %v4702_v4 }
 0x180   : > { %v968_v25 = vadd.f32 %v962_v37, %v927_v34  ;;  %2778 = vmatpush.msrb.mxu3 %v3735_v29  ;;  %3485 = vmatmul.msk.f32.vlgmr.msra.gmra.mxu1 %vm336_vm0, %v4708_v38  ;;  %v2415_v29 = vld [vmem:[#allocation2 + $0x18] sm:$0xff] }
 0x181   : > { %2838 = vmatpush.msra.mxu1 %v4568_v2  ;;  %v4727_v2 = vld [vmem:[#allocation2 + $0x8] sm:$0xff] }
 0x182   : > { %v1007_v35 = vadd.f32 %v4620_v16, %v968_v25  ;;  %3465 = vmatmul.msk.f32.vlgmr.msra.gmra.mxu0 %vm336_vm0, %v4708_v38  ;;  %2779 = vmatpush.msrb.mxu3 %v3736_v28  ;;  %v4720_v14 = vpop.f32.mrf.mxu3  ;;  %v4809_v25 = vld [vmem:[#allocation2 + $0x48] sm:$0xff] }
 0x183   : > { %2496 = vmatpush.msra.mxu0 %v4581_v18  ;;  %2839 = vmatpush.msra.mxu1 %v4574_v11  ;;  %v4734_v18 = vpop.permute.xlu2 %3743 }
 0x184   : > { %v1021_v59 = vadd.f32 %v4624_v43, %v1007_v35  ;;  %3470 = vmatmul.msk.f32.gmra.mxu2 %vm336_vm0, %v4715_v17  ;;  %v4736_v43 = vld [vmem:[#allocation2 + $0x38] sm:$0xff]  ;;  %v3745_v48 = vunpack.i.l.bf16 %v4734_v18  ;;  %v3746_v54 = vunpack.i.h.bf16 %v4734_v18 }
 0x185   : > { %2497 = vmatpush.msra.mxu0 %v4590_v22  ;;  %v1074_v16 = vpop.f32.mrf.mxu2  ;;  %v4741_v46 = vpop.f32.mrf.mxu1 }
 0x186   : > { %3397 = vst.msk [vmem:[%s4634_s27 + $0x10] sm:$0xff] %vm681_vm1, %v1021_v59  ;;  %v1026_v42 = vsel %vm681_vm1, %v1021_v59, 0.0  ;;  %v1034_v40 = vmul.f32 %v1021_v59, %v1021_v59  ;;  %v1104_v45 = vadd.f32 %v4700_v21, %v1074_v16 }
 0x187   : > { %v965_v11 = vpop.f32.mrf.mxu0  ;;  %1027 = vadd.xlane.f32.xlu0 %v1026_v42  ;;  %3482 = vmatmul.msk.f32.gmra.mxu3 %vm336_vm0, %v4727_v2  ;;  %v2475_v42 = vld [vmem:[#allocation2 + $0x28] sm:$0xff] }
 0x188   : > { %v969_v44 = vadd.f32 %v965_v11, %v928_v39  ;;  %v1036_v22 = vsel %vm681_vm1, %v1034_v40, 0.0  ;;  %3486 = vmatmul.msk.f32.gmra.mxu1 %vm336_vm0, %v4736_v43 }
 0x189   : > { %1037 = vadd.xlane.f32.xlu1 %v1036_v22 }
 0x18a   : > { %v1008_v56 = vadd.f32 %v4647_v19, %v969_v44  ;;  %3466 = vmatmul.msk.f32.gmra.mxu0 %vm336_vm0, %v4736_v43  ;;  %v4749_v51 = vpop.f32.mrf.mxu3 }
 0x18b   : > { %v3759_v24 = vpop.permute.xlu2 %3758 }
 0x18c   : > { %v1022_v55 = vadd.f32 %v1019_v53, %v1008_v56  ;;  %3479 = vmatmul.msk.f32.vlgmr.msrb.gmra.mxu2 %vm336_vm0, %v2414_v3  ;;  %v3760_v12 = vunpack.i.l.bf16 %v3759_v24  ;;  %v3761_v34 = vunpack.i.h.bf16 %v3759_v24 }
 0x18d   : > { %v1197_v57 = vpop.f32.mrf.mxu2  ;;  %2708 = vmatpush.msrb.mxu2 %v3745_v48  ;;  %v4766_v5 = vpop.f32.mrf.mxu1 }
 0x18e   : > { %3398 = vst.msk [vmem:[%s4634_s27 + $0x18] sm:$0xff] %vm681_vm1, %v1022_v55  ;;  %v1029_v58 = vsel %vm681_vm1, %v1022_v55, 0.0  ;;  %v1035_v19 = vmul.f32 %v1022_v55, %v1022_v55 }
 0x18f   : > { %v1131_v61 = vpop.f32.mrf.mxu0  ;;  %1030 = vadd.xlane.f32.xlu2 %v1029_v58  ;;  %2709 = vmatpush.msrb.mxu2 %v3746_v54 }
 0x190   : > { %v1039_v10 = vsel %vm681_vm1, %v1035_v19, 0.0  ;;  %3489 = vmatmul.msk.f32.vlgmr.msra.gmra.mxu3 %vm336_vm0, %v4689_v15  ;;  %3493 = vmatmul.msk.f32.vlgmr.msrb.gmra.mxu1 %vm336_vm0, %v4758_v62  ;;  %v1137_v50 = vadd.f32 %v1131_v61, %v1101_v8  ;;  %v2606_v8 = vld [vmem:[#allocation2 + $0x60] sm:$0xff] }
 0x191   : > { %1040 = vadd.xlane.f32.xlu1 %v1039_v10  ;;  %2904 = vmatpush.msra.mxu3 %v3750_v23 }
 0x192   : > { %3473 = vmatmul.msk.f32.vlgmr.msrb.gmra.mxu0 %vm336_vm0, %v4758_v62  ;;  %v4774_v28 = vpop.f32.mrf.mxu3  ;;  %2970 = vmatpush.msrb.mxu1 %v4308_v0  ;;  %v1170_v23 = vadd.f32 %v4672_v41, %v1137_v50  ;;  %v2681_v50 = vld [vmem:[#allocation2 + $0x88] sm:$0xff] }
 0x193   : > { %2628 = vmatpush.msrb.mxu0 %v4344_v7  ;;  %2905 = vmatpush.msra.mxu3 %v3751_v1 }
 0x194   : > { %3480 = vmatmul.msk.f32.gmra.mxu2 %vm336_vm0, %v2415_v29  ;;  %2971 = vmatpush.msrb.mxu1 %v4305_v63  ;;  %v1203_v63 = vadd.f32 %v1197_v57, %v1170_v23 }
 0x195   : > { %v1200_v9 = vpop.f32.mrf.mxu2  ;;  %2629 = vmatpush.msrb.mxu0 %v4341_v6  ;;  %v4789_v0 = vpop.f32.mrf.mxu1 }
 0x196   : > { %v1236_v27 = vadd.f32 %v4720_v14, %v1203_v63  ;;  %v1356_v14 = vpop.permute.xlu1 %1355 }
 0x197   : > { %v1134_v60 = vpop.f32.mrf.mxu0 }
 0x198   : > { %3490 = vmatmul.msk.f32.gmra.mxu3 %vm336_vm0, %v4715_v17  ;;  %3494 = vmatmul.msk.f32.gmra.mxu1 %vm336_vm0, %v4784_v20  ;;  %v1138_v1 = vadd.f32 %v1134_v60, %v1104_v45 }
 0x19a   : > { %3474 = vmatmul.msk.f32.gmra.mxu0 %vm336_vm0, %v4784_v20  ;;  %v4797_v41 = vpop.f32.mrf.mxu3  ;;  %v1171_v30 = vadd.f32 %v4694_v47, %v1138_v1  ;;  %v2607_v1 = vld [vmem:[#allocation2 + $0x68] sm:$0xff] }
 0x19c   : > { %3487 = vmatmul.msk.f32.vlgmr.msra.gmra.mxu2 %vm336_vm0, %v4793_v49 }
 0x19d   : > { %v1343_v26 = vpop.f32.mrf.mxu2  ;;  %2871 = vmatpush.msra.mxu2 %v4344_v7  ;;  %v4806_v37 = vpop.f32.mrf.mxu1  ;;  %v1204_v7 = vadd.f32 %v1200_v9, %v1171_v30 }
 0x19f   : > { %v1263_v21 = vpop.f32.mrf.mxu0  ;;  %2872 = vmatpush.msra.mxu2 %v4341_v6  ;;  %v3754_v6 = vpop.permute.xlu0 %3753  ;;  %v1237_v16 = vadd.f32 %v4749_v51, %v1204_v7 }
 0x1a0   : > { %v1269_v36 = vadd.f32 %v1263_v21, %v1236_v27  ;;  %3499 = vmatmul.msk.f32.vlgmr.msrb.gmra.mxu3 %vm336_vm0, %v2414_v3  ;;  %3503 = vmatmul.msk.f32.vlgmr.msra.gmra.mxu1 %vm336_vm0, %v2474_v33  ;;  %v3755_v22 = vunpack.i.l.bf16 %v3754_v6  ;;  %v3756_v53 = vunpack.i.h.bf16 %v3754_v6 }
 0x1a1   : > { %3050 = vmatpush.msrb.mxu3 %v3760_v12 }
 0x1a2   : > { %v1310_v13 = vadd.f32 %v4712_v52, %v1269_v36  ;;  %3483 = vmatmul.msk.f32.vlgmr.msra.gmra.mxu0 %vm336_vm0, %v2474_v33  ;;  %v4813_v47 = vpop.f32.mrf.mxu3  ;;  %v4865_v36 = vpop.permute.xlu1 %2044 }
 0x1a3   : > { %2807 = vmatpush.msra.mxu0 %v4225_v32  ;;  %3051 = vmatpush.msrb.mxu3 %v3761_v34 }
 0x1a4   : > { %v1349_v35 = vadd.f32 %v1343_v26, %v1310_v13  ;;  %3488 = vmatmul.msk.f32.gmra.mxu2 %vm336_vm0, %v4809_v25 }
 0x1a5   : > { %v1346_v59 = vpop.f32.mrf.mxu2  ;;  %2808 = vmatpush.msra.mxu0 %v4222_v31  ;;  %v4824_v44 = vpop.f32.mrf.mxu1  ;;  %v2680_v31 = vld [vmem:[#allocation2 + $0x80] sm:$0xff] }
 0x1a6   : > { %v1363_v39 = vadd.f32 %v1356_v14, %v1349_v35 }
 0x1a7   : > { %v1266_v52 = vpop.f32.mrf.mxu0  ;;  %v1361_v57 = vpop.permute.xlu0 %1360 }
 0x1a8   : > { %3417 = vst.msk [vmem:[%s4634_s27 + $0x20] sm:$0xff] %vm681_vm1, %v1363_v39  ;;  %v1270_v40 = vadd.f32 %v1266_v52, %v1237_v16  ;;  %v1368_v11 = vsel %vm681_vm1, %v1363_v39, 0.0  ;;  %v1376_v32 = vmul.f32 %v1363_v39, %v1363_v39  ;;  %3500 = vmatmul.msk.f32.gmra.mxu3 %vm336_vm0, %v2415_v29  ;;  %3504 = vmatmul.msk.f32.gmra.mxu1 %vm336_vm0, %v2475_v42 }
 0x1a9   : > { %1369 = vadd.xlane.f32.xlu2 %v1368_v11 }
 0x1aa   : > { %v1311_v3 = vadd.f32 %v4741_v46, %v1270_v40  ;;  %3484 = vmatmul.msk.f32.gmra.mxu0 %vm336_vm0, %v2475_v42  ;;  %v1378_v56 = vsel %vm681_vm1, %v1376_v32, 0.0  ;;  %v1542_v51 = vpop.f32.mrf.mxu3  ;;  %v1703_v42 = vpop.permute.xlu2 %1702 }
 0x1ab   : > { %1379 = vadd.xlane.f32.xlu1 %v1378_v56  ;;  %v4877_v11 = vpop.permute.xlu1 %2381 }
 0x1ac   : > { %v1350_v55 = vadd.f32 %v1346_v59, %v1311_v3  ;;  %3495 = vmatmul.msk.f32.vlgmr.msrb.gmra.mxu2 %vm336_vm0, %v2680_v31 }
 0x1ad   : > { %v1506_v58 = vpop.f32.mrf.mxu2  ;;  %3011 = vmatpush.msrb.mxu2 %v3755_v22  ;;  %v4836_v29 = vpop.f32.mrf.mxu1 }
 0x1ae   : > { %v1364_v19 = vadd.f32 %v1361_v57, %v1350_v55 }
 0x1af   : > { %v1442_v61 = vpop.f32.mrf.mxu0  ;;  %3012 = vmatpush.msrb.mxu2 %v3756_v53  ;;  %v1698_v7 = vpop.permute.xlu0 %1697 }
 0x1b0   : > { %3418 = vst.msk [vmem:[%s4634_s27 + $0x28] sm:$0xff] %vm681_vm1, %v1364_v19  ;;  %v1371_v46 = vsel %vm681_vm1, %v1364_v19, 0.0  ;;  %v1377_v10 = vmul.f32 %v1364_v19, %v1364_v19  ;;  %3507 = vmatmul.msk.f32.vlgmr.msra.gmra.mxu3 %vm336_vm0, %v4793_v49  ;;  %3511 = vmatmul.msk.f32.vlgmr.msrb.gmra.mxu1 %vm336_vm0, %v2606_v8  ;;  %v1443_v9 = vadd.f32 %v1442_v61, %v4774_v28 }
 0x1b1   : > { %1372 = vadd.xlane.f32.xlu0 %v1371_v46 }
 0x1b2   : > { %3491 = vmatmul.msk.f32.vlgmr.msrb.gmra.mxu0 %vm336_vm0, %v2606_v8  ;;  %v1381_v23 = vsel %vm681_vm1, %v1377_v10, 0.0  ;;  %v1685_v60 = vpop.f32.mrf.mxu3  ;;  %v1479_v49 = vadd.f32 %v4766_v5, %v1443_v9 }
 0x1b3   : > { %2937 = vmatpush.msrb.mxu0 %v3745_v48  ;;  %1382 = vadd.xlane.f32.xlu2 %v1381_v23 }
 0x1b4   : > { %3496 = vmatmul.msk.f32.gmra.mxu2 %vm336_vm0, %v2681_v50  ;;  %v1512_v24 = vadd.f32 %v1506_v58, %v1479_v49 }
 0x1b5   : > { %2938 = vmatpush.msrb.mxu0 %v3746_v54  ;;  %v1509_v45 = vpop.f32.mrf.mxu2  ;;  %v4850_v28 = vpop.f32.mrf.mxu1 }
 0x1b6   : > { %v1545_v54 = vadd.f32 %v4813_v47, %v1512_v24 }
 0x1b7   : > { %v1445_v63 = vpop.f32.mrf.mxu0 }
 0x1b8   : > { %3508 = vmatmul.msk.f32.gmra.mxu3 %vm336_vm0, %v4809_v25  ;;  %3512 = vmatmul.msk.f32.gmra.mxu1 %vm336_vm0, %v2607_v1  ;;  %v1446_v48 = vadd.f32 %v1445_v63, %v4797_v41 }
 0x1ba   : > { %3492 = vmatmul.msk.f32.gmra.mxu0 %vm336_vm0, %v2607_v1  ;;  %v1688_v26 = vpop.f32.mrf.mxu3  ;;  %v1480_v5 = vadd.f32 %v4789_v0, %v1446_v48 }
 0x1bc   : > { %3505 = vmatmul.msk.f32.vlgmr.msra.gmra.mxu2 %vm336_vm0, %v4708_v38  ;;  %v1513_v21 = vadd.f32 %v1509_v45, %v1480_v5 }
 0x1bd   : > { %v1646_v18 = vpop.f32.mrf.mxu2  ;;  %v1914_v30 = vpop.f32.mrf.mxu1 }
 0x1be   : > { %v1546_v0 = vadd.f32 %v1542_v51, %v1513_v21  ;;  %v4887_v51 = vpop.permute.xlu1 %2723 }
 0x1bf   : > { %v1572_v12 = vpop.f32.mrf.mxu0 }
 0x1c0   : > { %v1578_v27 = vadd.f32 %v1572_v12, %v1545_v54  ;;  %3515 = vmatmul.msk.f32.vlgmr.msrb.gmra.mxu3 %vm336_vm0, %v2680_v31  ;;  %v2040_v54 = vpop.permute.xlu2 %2039 }
 0x1c2   : > { %v1611_v41 = vadd.f32 %v4806_v37, %v1578_v27  ;;  %3501 = vmatmul.msk.f32.vlgmr.msra.gmra.mxu0 %vm336_vm0, %v4702_v4  ;;  %v1848_v33 = vpop.f32.mrf.mxu3 }
 0x1c4   : > { %v1652_v34 = vadd.f32 %v1646_v18, %v1611_v41  ;;  %3506 = vmatmul.msk.f32.gmra.mxu2 %vm336_vm0, %v4736_v43 }
 0x1c5   : > { %v1649_v38 = vpop.f32.mrf.mxu2  ;;  %v1917_v14 = vpop.f32.mrf.mxu1 }
 0x1c6   : > { %v1691_v25 = vadd.f32 %v1685_v60, %v1652_v34  ;;  %v4893_v10 = vpop.permute.xlu1 %2728 }
 0x1c7   : > { %v1575_v13 = vpop.f32.mrf.mxu0 }
 0x1c8   : > { %v1705_v47 = vadd.f32 %v1698_v7, %v1691_v25  ;;  %v1579_v6 = vadd.f32 %v1575_v13, %v1546_v0  ;;  %3516 = vmatmul.msk.f32.gmra.mxu3 %vm336_vm0, %v2681_v50 }
 0x1ca   : > { %3437 = vst.msk [vmem:[%s4634_s27 + $0x30] sm:$0xff] %vm681_vm1, %v1705_v47  ;;  %v1612_v4 = vadd.f32 %v4824_v44, %v1579_v6  ;;  %3502 = vmatmul.msk.f32.gmra.mxu0 %vm336_vm0, %v4727_v2  ;;  %v1710_v43 = vsel %vm681_vm1, %v1705_v47, 0.0  ;;  %v1718_v37 = vmul.f32 %v1705_v47, %v1705_v47  ;;  %v1851_v35 = vpop.f32.mrf.mxu3 }
 0x1cb   : > { %1711 = vadd.xlane.f32.xlu1 %v1710_v43 }
 0x1cc   : > { %v1653_v59 = vadd.f32 %v1649_v38, %v1612_v4  ;;  %v1720_v16 = vsel %vm681_vm1, %v1718_v37, 0.0  ;;  %3513 = vmatmul.msk.f32.vlgmr.msrb.gmra.mxu2 %vm336_vm0, %v4758_v62 }
 0x1cd   : > { %1721 = vadd.xlane.f32.xlu0 %v1720_v16  ;;  %v1815_v39 = vpop.f32.mrf.mxu2  ;;  %v2097_v62 = vpop.f32.mrf.mxu1 }
 0x1ce   : > { %v1692_v52 = vadd.f32 %v1688_v26, %v1653_v59 }
 0x1cf   : > { %v1755_v40 = vpop.f32.mrf.mxu0 }
 0x1d0   : > { %v1706_v2 = vadd.f32 %v1703_v42, %v1692_v52  ;;  %v1785_v56 = vadd.f32 %v4836_v29, %v1755_v40 }
 0x1d2   : > { %3438 = vst.msk [vmem:[%s4634_s27 + $0x38] sm:$0xff] %vm681_vm1, %v1706_v2  ;;  %3509 = vmatmul.msk.f32.vlgmr.msrb.gmra.mxu0 %vm336_vm0, %v4689_v15  ;;  %v1713_v32 = vsel %vm681_vm1, %v1706_v2, 0.0  ;;  %v1988_v44 = vpop.f32.mrf.mxu3  ;;  %v1719_v31 = vmul.f32 %v1706_v2, %v1706_v2  ;;  %v1821_v55 = vadd.f32 %v1815_v39, %v1785_v56 }
 0x1d3   : > { %1714 = vadd.xlane.f32.xlu1 %v1713_v32 }
 0x1d4   : > { %3514 = vmatmul.msk.f32.gmra.mxu2 %vm336_vm0, %v4784_v20  ;;  %v1723_v15 = vsel %vm681_vm1, %v1719_v31, 0.0  ;;  %v1854_v20 = vadd.f32 %v1848_v33, %v1821_v55 }
 0x1d5   : > { %v1818_v22 = vpop.f32.mrf.mxu2  ;;  %v2100_v58 = vpop.f32.mrf.mxu1 }
 0x1d7   : > { %v1758_v3 = vpop.f32.mrf.mxu0 }
 0x1d8   : > { %v1788_v61 = vadd.f32 %v4850_v28, %v1758_v3  ;;  %v4895_v1 = vpop.xlane.xlu1 %685 }
 0x1da   : > { %3510 = vmatmul.msk.f32.gmra.mxu0 %vm336_vm0, %v4715_v17  ;;  %v1991_v53 = vpop.f32.mrf.mxu3  ;;  %v1822_v29 = vadd.f32 %v1818_v22, %v1788_v61 }
 0x1db   : > { %1724 = vadd.xlane.f32.xlu1 %v1723_v15 }
 0x1dc   : > { %v1855_v17 = vadd.f32 %v1851_v35, %v1822_v29 }
 0x1dd   : > { %v1947_v57 = vpop.f32.mrf.mxu2  ;;  %v2223_v60 = vpop.f32.mrf.mxu1 }
 0x1df   : > { %v1881_v19 = vpop.f32.mrf.mxu0 }
 0x1e0   : > { %v1887_v8 = vadd.f32 %v1881_v19, %v1854_v20 }
 0x1e2   : > { %v2157_v46 = vpop.f32.mrf.mxu3  ;;  %v1920_v9 = vadd.f32 %v1914_v30, %v1887_v8  ;;  %v699_v21 = vpop.xlane.xlu1 %698 }
 0x1e4   : > { %v1953_v45 = vadd.f32 %v1947_v57, %v1920_v9 }
 0x1e5   : > { %v1950_v50 = vpop.f32.mrf.mxu2  ;;  %v2226_v30 = vpop.f32.mrf.mxu1 }
 0x1e6   : > { %v1994_v48 = vadd.f32 %v1988_v44, %v1953_v45 }
 0x1e7   : > { %v1884_v23 = vpop.f32.mrf.mxu0 }
 0x1e8   : > { %v1888_v49 = vadd.f32 %v1884_v23, %v1855_v17 }
 0x1ea   : > { %v2160_v63 = vpop.f32.mrf.mxu3  ;;  %v1921_v26 = vadd.f32 %v1917_v14, %v1888_v49 }
 0x1ec   : > { %v1954_v5 = vadd.f32 %v1950_v50, %v1921_v26 }
 0x1ed   : > { %v2126_v24 = vpop.f32.mrf.mxu2  ;;  %v2369_v35 = vpop.f32.mrf.mxu1 }
 0x1ee   : > { %v1995_v38 = vadd.f32 %v1991_v53, %v1954_v5  ;;  %v2127_v6 = vadd.f32 %v2126_v24, %v2097_v62  ;;  %v2387_v24 = vpop.permute.xlu0 %2386 }
 0x1ef   : > { %v2027_v28 = vpop.f32.mrf.mxu0 }
 0x1f0   : > { %v2033_v18 = vadd.f32 %v2027_v28, %v1994_v48  ;;  %v2163_v39 = vadd.f32 %v2157_v46, %v2127_v6 }
 0x1f2   : > { %v2047_v12 = vadd.f32 %v2040_v54, %v2033_v18  ;;  %v2289_v27 = vpop.f32.mrf.mxu3 }
 0x1f4   : > { %3457 = vst.msk [vmem:[%s4634_s27 + $0x40] sm:$0xff] %vm681_vm1, %v2047_v12  ;;  %v2052_v41 = vsel %vm681_vm1, %v2047_v12, 0.0  ;;  %v2060_v33 = vmul.f32 %v2047_v12, %v2047_v12 }
 0x1f5   : > { %2053 = vadd.xlane.f32.xlu2 %v2052_v41  ;;  %v2129_v34 = vpop.f32.mrf.mxu2  ;;  %v2372_v44 = vpop.f32.mrf.mxu1 }
 0x1f6   : > { %v2062_v0 = vsel %vm681_vm1, %v2060_v33, 0.0 }
 0x1f7   : > { %v2030_v25 = vpop.f32.mrf.mxu0  ;;  %2063 = vadd.xlane.f32.xlu0 %v2062_v0 }
 0x1f8   : > { %v2034_v7 = vadd.f32 %v2030_v25, %v1995_v38 }
 0x1fa   : > { %v2048_v13 = vadd.f32 %v4865_v36, %v2034_v7  ;;  %v2292_v47 = vpop.f32.mrf.mxu3  ;;  %v2130_v36 = vadd.f32 %v2129_v34, %v2100_v58 }
 0x1fc   : > { %3458 = vst.msk [vmem:[%s4634_s27 + $0x48] sm:$0xff] %vm681_vm1, %v2048_v13  ;;  %v4904_v4 = vpop.xlane.xlu1 %1037  ;;  %v2055_v43 = vsel %vm681_vm1, %v2048_v13, 0.0  ;;  %v2061_v37 = vmul.f32 %v2048_v13, %v2048_v13  ;;  %v2164_v31 = vadd.f32 %v2160_v63, %v2130_v36 }
 0x1fd   : > { %2056 = vadd.xlane.f32.xlu1 %v2055_v43  ;;  %v2256_v14 = vpop.f32.mrf.mxu2  ;;  %v2532_v61 = vpop.f32.mrf.mxu1 }
 0x1fe   : > { %v2065_v59 = vsel %vm681_vm1, %v2061_v37, 0.0 }
 0x1ff   : > { %v2190_v16 = vpop.f32.mrf.mxu0  ;;  %2066 = vadd.xlane.f32.xlu2 %v2065_v59 }
 0x200   : > { %v2196_v52 = vadd.f32 %v2190_v16, %v2163_v39 }
 0x202   : > { %v2468_v42 = vpop.f32.mrf.mxu3  ;;  %v2229_v32 = vadd.f32 %v2223_v60, %v2196_v52 }
 0x204   : > { %v1041_v40 = vpop.xlane.xlu1 %1040  ;;  %v2262_v3 = vadd.f32 %v2256_v14, %v2229_v32 }
 0x205   : > { %v4908_v2 = vadd.f32 %v1041_v40, %v699_v21  ;;  %v2535_v63 = vpop.f32.mrf.mxu1 }
 0x206   : > { %v2295_v53 = vadd.f32 %v2289_v27, %v2262_v3 }
 0x207   : > { %v2193_v62 = vpop.f32.mrf.mxu0  ;;  %v2259_v22 = vpop.f32.mrf.mxu2 }
 0x208   : > { %v2197_v56 = vadd.f32 %v2193_v62, %v2164_v31 }
 0x20a   : > { %v2471_v15 = vpop.f32.mrf.mxu3  ;;  %v2230_v55 = vadd.f32 %v2226_v30, %v2197_v56 }
 0x20c   : > { %v2263_v8 = vadd.f32 %v2259_v22, %v2230_v55 }
 0x20d   : > { %v2672_v30 = vpop.f32.mrf.mxu1 }
 0x20e   : > { %v2296_v50 = vadd.f32 %v2292_v47, %v2263_v8 }
 0x20f   : > { %v2330_v57 = vpop.f32.mrf.mxu0  ;;  %v2439_v19 = vpop.f32.mrf.mxu2 }
 0x210   : > { %v2336_v20 = vadd.f32 %v2330_v57, %v2295_v53  ;;  %v2469_v5 = vadd.f32 %v2468_v42, %v2439_v19 }
 0x212   : > { %v2375_v58 = vadd.f32 %v2369_v35, %v2336_v20 }
 0x213   : > { %v2598_v29 = vpop.f32.mrf.mxu3 }
 0x214   : > { %v2389_v46 = vadd.f32 %v4877_v11, %v2375_v58 }
 0x215   : > { %v2675_v6 = vpop.f32.mrf.mxu1 }
 0x216   : > { %3477 = vst.msk [vmem:[%s4634_s27 + $0x50] sm:$0xff] %vm681_vm1, %v2389_v46  ;;  %v2394_v9 = vsel %vm681_vm1, %v2389_v46, 0.0  ;;  %v2402_v49 = vmul.f32 %v2389_v46, %v2389_v46 }
 0x217   : > { %v2333_v23 = vpop.f32.mrf.mxu0  ;;  %2395 = vadd.xlane.f32.xlu1 %v2394_v9  ;;  %v2442_v17 = vpop.f32.mrf.mxu2 }
 0x218   : > { %v2337_v60 = vadd.f32 %v2333_v23, %v2296_v50  ;;  %v2404_v11 = vsel %vm681_vm1, %v2402_v49, 0.0  ;;  %v2472_v38 = vadd.f32 %v2471_v15, %v2442_v17 }
 0x21a   : > { %v2376_v45 = vadd.f32 %v2372_v44, %v2337_v60 }
 0x21b   : > { %v2601_v28 = vpop.f32.mrf.mxu3 }
 0x21c   : > { %v2390_v48 = vadd.f32 %v2387_v24, %v2376_v45 }
 0x21d   : > { %v2841_v22 = vpop.f32.mrf.mxu1 }
 0x21e   : > { %3478 = vst.msk [vmem:[%s4634_s27 + $0x58] sm:$0xff] %vm681_vm1, %v2390_v48  ;;  %v2397_v26 = vsel %vm681_vm1, %v2390_v48, 0.0  ;;  %v2403_v27 = vmul.f32 %v2390_v48, %v2390_v48 }
 0x21f   : > { %v2499_v18 = vpop.f32.mrf.mxu0  ;;  %2398 = vadd.xlane.f32.xlu0 %v2397_v26  ;;  %2405 = vadd.xlane.f32.xlu1 %v2404_v11  ;;  %v2565_v54 = vpop.f32.mrf.mxu2 }
 0x220   : > { %v2505_v12 = vadd.f32 %v2499_v18, %v2469_v5  ;;  %v2407_v41 = vsel %vm681_vm1, %v2403_v27, 0.0 }
 0x222   : > { %v2538_v21 = vadd.f32 %v2532_v61, %v2505_v12 }
 0x223   : > { %v2781_v0 = vpop.f32.mrf.mxu3 }
 0x224   : > { %v2571_v25 = vadd.f32 %v2565_v54, %v2538_v21 }
 0x225   : > { %v2844_v8 = vpop.f32.mrf.mxu1 }
 0x226   : > { %v2604_v13 = vadd.f32 %v2598_v29, %v2571_v25 }
 0x227   : > { %v2502_v33 = vpop.f32.mrf.mxu0  ;;  %2408 = vadd.xlane.f32.xlu0 %v2407_v41  ;;  %v2568_v34 = vpop.f32.mrf.mxu2 }
 0x228   : > { %v2506_v7 = vadd.f32 %v2502_v33, %v2472_v38 }
 0x22a   : > { %v2539_v47 = vadd.f32 %v2535_v63, %v2506_v7 }
 0x22b   : > { %v2784_v16 = vpop.f32.mrf.mxu3 }
 0x22c   : > { %v2572_v14 = vadd.f32 %v2568_v34, %v2539_v47 }
 0x22e   : > { %v2605_v52 = vadd.f32 %v2601_v28, %v2572_v14  ;;  %v3066_v28 = vpop.permute.xlu2 %3065 }
 0x22f   : > { %v2631_v43 = vpop.f32.mrf.mxu0  ;;  %v2711_v37 = vpop.f32.mrf.mxu2 }
 0x230   : > { %v2637_v35 = vadd.f32 %v2631_v43, %v2604_v13  ;;  %v3071_v13 = vpop.permute.xlu0 %3070 }
 0x232   : > { %v2678_v59 = vadd.f32 %v2672_v30, %v2637_v35 }
 0x233   : > { %v2907_v15 = vpop.f32.mrf.mxu3 }
 0x234   : > { %v2717_v39 = vadd.f32 %v2711_v37, %v2678_v59 }
 0x236   : > { %v2731_v42 = vadd.f32 %v4887_v51, %v2717_v39 }
 0x237   : > { %v2634_v36 = vpop.f32.mrf.mxu0  ;;  %v2714_v40 = vpop.f32.mrf.mxu2 }
 0x238   : > { %3497 = vst.msk [vmem:[%s4634_s27 + $0x60] sm:$0xff] %vm681_vm1, %v2731_v42  ;;  %v2638_v32 = vadd.f32 %v2634_v36, %v2605_v52  ;;  %v2736_v44 = vsel %vm681_vm1, %v2731_v42, 0.0  ;;  %v2744_v62 = vmul.f32 %v2731_v42, %v2731_v42 }
 0x239   : > { %2737 = vadd.xlane.f32.xlu1 %v2736_v44 }
 0x23a   : > { %v2679_v31 = vadd.f32 %v2675_v6, %v2638_v32  ;;  %v2746_v3 = vsel %vm681_vm1, %v2744_v62, 0.0 }
 0x23b   : > { %2747 = vadd.xlane.f32.xlu0 %v2746_v3  ;;  %v2910_v46 = vpop.f32.mrf.mxu3 }
 0x23c   : > { %v2718_v56 = vadd.f32 %v2714_v40, %v2679_v31 }
 0x23e   : > { %v2732_v53 = vadd.f32 %v4893_v10, %v2718_v56  ;;  %v2973_v10 = vpop.f32.mrf.mxu1 }
 0x23f   : > { %v2810_v51 = vpop.f32.mrf.mxu0  ;;  %v2874_v55 = vpop.f32.mrf.mxu2 }
 0x240   : > { %3498 = vst.msk [vmem:[%s4634_s27 + $0x68] sm:$0xff] %vm681_vm1, %v2732_v53  ;;  %v2739_v57 = vsel %vm681_vm1, %v2732_v53, 0.0  ;;  %v2745_v19 = vmul.f32 %v2732_v53, %v2732_v53  ;;  %v2811_v20 = vadd.f32 %v2810_v51, %v2781_v0 }
 0x241   : > { %2740 = vadd.xlane.f32.xlu2 %v2739_v57 }
 0x242   : > { %v2749_v61 = vsel %vm681_vm1, %v2745_v19, 0.0  ;;  %v2847_v58 = vadd.f32 %v2841_v22, %v2811_v20 }
 0x243   : > { %2750 = vadd.xlane.f32.xlu1 %v2749_v61  ;;  %v3053_v24 = vpop.f32.mrf.mxu3 }
 0x244   : > { %v2880_v9 = vadd.f32 %v2874_v55, %v2847_v58 }
 0x246   : > { %v2913_v17 = vadd.f32 %v2907_v15, %v2880_v9  ;;  %v2976_v12 = vpop.f32.mrf.mxu1 }
 0x247   : > { %v2813_v29 = vpop.f32.mrf.mxu0  ;;  %v2877_v50 = vpop.f32.mrf.mxu2 }
 0x248   : > { %v2814_v23 = vadd.f32 %v2813_v29, %v2784_v16 }
 0x24a   : > { %v2848_v60 = vadd.f32 %v2844_v8, %v2814_v23 }
 0x24b   : > { %v3056_v38 = vpop.f32.mrf.mxu3 }
 0x24c   : > { %v2881_v48 = vadd.f32 %v2877_v50, %v2848_v60 }
 0x24e   : > { %v2914_v18 = vadd.f32 %v2910_v46, %v2881_v48 }
 0x24f   : > { %v2940_v45 = vpop.f32.mrf.mxu0  ;;  %v3014_v49 = vpop.f32.mrf.mxu2 }
 0x250   : > { %v2946_v63 = vadd.f32 %v2940_v45, %v2913_v17 }
 0x252   : > { %v2979_v26 = vadd.f32 %v2973_v10, %v2946_v63 }
 0x254   : > { %v3020_v11 = vadd.f32 %v3014_v49, %v2979_v26 }
 0x256   : > { %v3059_v54 = vadd.f32 %v3053_v24, %v3020_v11 }
 0x257   : > { %v2943_v5 = vpop.f32.mrf.mxu0  ;;  %v3017_v21 = vpop.f32.mrf.mxu2 }
 0x258   : > { %v3073_v27 = vadd.f32 %v3066_v28, %v3059_v54  ;;  %v2947_v30 = vadd.f32 %v2943_v5, %v2914_v18 }
 0x25a   : > { %3517 = vst.msk [vmem:[%s4634_s27 + $0x70] sm:$0xff] %vm681_vm1, %v3073_v27  ;;  %v2980_v41 = vadd.f32 %v2976_v12, %v2947_v30  ;;  %v3078_v33 = vsel %vm681_vm1, %v3073_v27, 0.0  ;;  %v3086_v34 = vmul.f32 %v3073_v27, %v3073_v27 }
 0x25b   : > { %3079 = vadd.xlane.f32.xlu2 %v3078_v33 }
 0x25c   : > { %v3021_v0 = vadd.f32 %v3017_v21, %v2980_v41  ;;  %v3088_v25 = vsel %vm681_vm1, %v3086_v34, 0.0 }
 0x25d   : > { %3089 = vadd.xlane.f32.xlu1 %v3088_v25 }
 0x25e   : > { %v3060_v7 = vadd.f32 %v3056_v38, %v3021_v0 }
 0x260   : > { %v3074_v47 = vadd.f32 %v3071_v13, %v3060_v7 }
 0x262   : > { %3518 = vst.msk [vmem:[%s4634_s27 + $0x78] sm:$0xff] %vm681_vm1, %v3074_v47  ;;  %v3081_v6 = vsel %vm681_vm1, %v3074_v47, 0.0  ;;  %v3087_v43 = vmul.f32 %v3074_v47, %v3074_v47 }
 0x263   : > { %3082 = vadd.xlane.f32.xlu0 %v3081_v6 }
 0x264   : > { %3850 = shalt.err (!%p3847_p5)
}
 0x265   : > { %s3957_s18 = smov 128   ;;  %s3958_s27 = smov 8   ;;  %v3091_v37 = vsel %vm681_vm1, %v3087_v43, 0.0  ;;  %v1380_v35 = vpop.xlane.xlu1 %1379  ;;  %v689_v59 = vpop.xlane.xlu0 %688  ;;  %vm3096_vm2 = vcmask 7168   ;;  %vm3099_vm3 = vcmask 15360  }
 0x266   : > { %3546 = dma.vmem_to_hbm [thread:$0]  (%p4054_p6), %s3128_s3, 2048, %s3130_s24, %s3103_s29, %s3957_s18, %s3957_s18, %s3958_s27   ;;  %3092 = vadd.xlane.f32.xlu2 %v3091_v37  ;;  %v696_v39 = vpop.xlane.xlu2 %695 }
 0x267   : > { %p264_p6 = scmp.lt.s32.totalorder %s3937_s22, 1  ;;  %p266_p7 = scmp.lt.s32.totalorder %s3933_s21, 3  ;;  %v1042_v20 = vadd.f32 %v4904_v4, %v696_v39 }
 0x268   : > { %s5042_s15 = sld [smem:[#allocation20_spill]] }
 0x269   : > { %s5062_s22 = smov (!%p264_p6, %s3937_s22), 1  ;;  %s5064_s21 = smov (!%p266_p7, %s3933_s21), 3  ;;  %v1384_v58 = vadd.f32 %v1380_v35, %v1042_v20 }
 0x26a   : > { %s3320_s10 = sshll.u32 %s5064_s21, 1  ;;  %s3321_s11 = sshll.u32 %s5062_s22, 3 }
 0x26b   : > { %s270_s7 = sadd.s32 %s3321_s11, %s3320_s10 }
 0x26c   : > { %s3322_s4 = sshll.u32 %s270_s7, 3 }
 0x26d   : > { %v1712_v14 = vpop.xlane.xlu1 %1711  ;;  %v1028_v52 = vpop.xlane.xlu0 %1027 }
 0x26e   : > { %v1031_v42 = vpop.xlane.xlu2 %1030  ;;  %v1032_v19 = vadd.f32 %v1028_v52, %v4895_v1  ;;  %s272_s23 = scalar_lea.vmem %s5042_s15, %s3322_s4 }
 0x26f   : > { %v1033_v10 = vadd.f32 %v1031_v42, %v689_v59 }
 0x275   : > { %v1715_v16 = vpop.xlane.xlu1 %1714  ;;  %v1373_v40 = vpop.xlane.xlu0 %1372 }
 0x276   : > { %v1370_v32 = vpop.xlane.xlu2 %1369  ;;  %v1375_v49 = vadd.f32 %v1373_v40, %v1033_v10 }
 0x277   : > { %v1374_v8 = vadd.f32 %v1370_v32, %v1032_v19 }
 0x278   : > { %v1717_v48 = vadd.f32 %v1715_v16, %v1375_v49 }
 0x279   : > { %v1716_v29 = vadd.f32 %v1712_v14, %v1374_v8 }
 0x27d   : > { %v1725_v36 = vpop.xlane.xlu1 %1724  ;;  %v1722_v62 = vpop.xlane.xlu0 %1721 }
 0x27e   : > { %v1383_v22 = vpop.xlane.xlu2 %1382  ;;  %v1726_v50 = vadd.f32 %v1722_v62, %v1384_v58 }
 0x27f   : > { %v1385_v1 = vadd.f32 %v1383_v22, %v4908_v2 }
 0x281   : > { %v1727_v11 = vadd.f32 %v1725_v36, %v1385_v1 }
 0x285   : > { %v2057_v44 = vpop.xlane.xlu1 %2056  ;;  %v2064_v3 = vpop.xlane.xlu0 %2063 }
 0x286   : > { %v2054_v56 = vpop.xlane.xlu2 %2053  ;;  %v2068_v23 = vadd.f32 %v2064_v3, %v1726_v50  ;;  %v2059_v54 = vadd.f32 %v2057_v44, %v1717_v48 }
 0x287   : > { %v2058_v9 = vadd.f32 %v2054_v56, %v1716_v29 }
 0x28d   : > { %v2396_v31 = vpop.xlane.xlu1 %2395 }
 0x28e   : > { %v2067_v51 = vpop.xlane.xlu2 %2066  ;;  %v2400_v60 = vadd.f32 %v2396_v31, %v2058_v9 }
 0x28f   : > { %v2069_v5 = vadd.f32 %v2067_v51, %v1727_v11 }
 0x292   : > { %v2399_v53 = vpop.xlane.xlu0 %2398 }
 0x293   : > { %v2401_v27 = vadd.f32 %v2399_v53, %v2059_v54 }
 0x295   : > { %v2406_v15 = vpop.xlane.xlu1 %2405 }
 0x296   : > { %v2410_v45 = vadd.f32 %v2406_v15, %v2068_v23 }
 0x29a   : > { %v2409_v57 = vpop.xlane.xlu0 %2408 }
 0x29b   : > { %v2411_v2 = vadd.f32 %v2409_v57, %v2069_v5 }
 0x2ac   : > { %v2738_v55 = vpop.xlane.xlu1 %2737 }
 0x2ad   : > { %v2742_v4 = vadd.f32 %v2738_v55, %v2400_v60 }
 0x2ae   : > { %v2748_v17 = vpop.xlane.xlu0 %2747 }
 0x2af   : > { %v2752_v24 = vadd.f32 %v2748_v17, %v2410_v45 }
 0x2b4   : > { %v2741_v61 = vpop.xlane.xlu2 %2740 }
 0x2b5   : > { %v2743_v21 = vadd.f32 %v2741_v61, %v2401_v27 }
 0x2b6   : > { %v2751_v46 = vpop.xlane.xlu1 %2750 }
 0x2b7   : > { %v2753_v41 = vadd.f32 %v2751_v46, %v2411_v2 }
 0x2ce   : > { %v3080_v63 = vpop.xlane.xlu2 %3079 }
 0x2cf   : > { %v3084_v28 = vadd.f32 %v3080_v63, %v2742_v4 }
 0x2d0   : > { %v3090_v26 = vpop.xlane.xlu1 %3089 }
 0x2d1   : > { %v3094_v18 = vadd.f32 %v3090_v26, %v2752_v24 }
 0x2d3   : > { %v3097_v12 = vsel %vm3096_vm2, %v3084_v28, %v3094_v18 }
 0x2d4   : > { %3100 = vst.msk [vmem:[%s272_s23] sm:$0xff] %vm3099_vm3, %v3097_v12 }
 0x2d6   : > { %v3083_v30 = vpop.xlane.xlu0 %3082 }
 0x2d7   : > { %v3085_v34 = vadd.f32 %v3083_v30, %v2743_v21 }
 0x2d9   : > { %v3093_v33 = vpop.xlane.xlu2 %3092 }
 0x2da   : > { %v3095_v38 = vadd.f32 %v3093_v33, %v2753_v41 }
 0x2dc   : > { %v3098_v0 = vsel %vm3096_vm2, %v3085_v34, %v3095_v38 }
 0x2dd   : > { %3101 = vst.msk [vmem:[%s272_s23 + $0x8] sm:$0xff] %vm3099_vm3, %v3098_v0 }
 0x2de PF: > { %s5043_s3 = sld [smem:[#allocation11_spill]]  ;;  %p3563_p8 = scmp.ge.s32.totalorder %s3949_s25, 2 }
 0x2e0   : > { %p3557_p9 = pnand %p3563_p8, %p4060_p10 }
 0x2e2   : > { %p3558_p12 = pneg %p3557_p9 }
 0x2e4   : > { %s3147_s28 = sand.u32 1, %s5043_s3  }
 0x2e5   : > { %s3148_s29 = scalar_lea.sflag [#allocation4], %s3147_s28 }
 0x2e6   : > { %3904 = dma.done.wait (%p3558_p12), %s3148_s29, 2048  }
 0x2e7   : > { %3906 = vsyncadd (%p3558_p12), %s3148_s29, 4294965248  ;;  %s22_s25 = sadd.s32 1, %s3949_s25   ;;  %s5045_s21 = sld [smem:[#allocation12_spill]] }
 0x2e8   : > { %p19_p13 = scmp.ge.s32.totalorder %s22_s25, 10   ;;  %s5046_s22 = sld [smem:[#allocation13_spill]] }
 0x2e9   : > { %s5047_s23 = sld [smem:[#allocation16_spill]]  ;;  %s5049_s15 = smov %s3913_s16 }
 0x2ea   : > { %s5048_s24 = sld [smem:[#allocation17_spill]]  ;;  %s5050_s16 = smov %s3917_s17 }
 0x2eb   : > { %s5051_s17 = smov %s4105_s5  ;;  %s5052_s18 = smov %s3925_s19 }
 0x2ec   : > { %s5053_s19 = smov %s3929_s20  ;;  %s5054_s20 = smov %s4102_s0 }
 0x2ed   :  { %21 = sbr.rel (!%p19_p13) target bundleno = 14 (0xe), region = 119 }
 0x2f2   :  { %3166 = vsyncpa [#allocation3], 1 }
 0x2f3   :  { %3168 = vsyncpa [#allocation3 + $0x1], 1 }
 0x2f4   :  { %3169 = vsyncpa [#allocation6], 1 }
 0x2f5   :  { %3171 = vsyncpa [#allocation6 + $0x1], 1 }
 0x2f6   :  { %3172 = vsyncpa [#allocation4], 1 }
 0x2f7   :  { %3174 = vsyncpa [#allocation4 + $0x1], 1 }

</bundles_post_ra>
